<compile_context>
chip_gen: v7x
topology: tpu7x:2x2x1
jax: 0.10.0
libtpu: 0.0.40
codegen_flags: <defaults>
</compile_context>

<pallas_src>
import functools

import jax
import jax.numpy as jnp
from jax import lax
from jax.experimental import pallas as pl
from jax.experimental.pallas import tpu as pltpu

NUM_GROUPS = 20
EPS = 1e-6
LANES = 128

_ITEMSIZE = {jnp.float32: 4, jnp.bfloat16: 2}


def _round_up(x, m):
    return ((x + m - 1) // m) * m


# ----------------------------------------------------------------------------
# In-kernel helpers (shared by both fused kernels)
# ----------------------------------------------------------------------------
def _gn_swish(x_hwc, gamma, beta, gmap, inv_count, eps):
    """GroupNorm(affine) + x*sigmoid(x). All statistics / elementwise math in f32.

    x_hwc: (H, W, Cp). gamma/beta: (1, Cp). gmap: (G, Cp) 0/1 channel->group map
    (padded channels have zero gamma/beta/gmap columns -> output 0).
    Returns (H*W, Cp) f32.
    """
    H, W, Cp = x_hwc.shape
    x2 = x_hwc.reshape(H * W, Cp).astype(jnp.float32)
    s = jnp.sum(x2, axis=0, keepdims=True)                 # (1, Cp) per-channel sum
    sq = jnp.sum(x2 * x2, axis=0, keepdims=True)           # (1, Cp) per-channel sum sq
    gmean = jnp.sum(s * gmap, axis=1, keepdims=True) * inv_count    # (G, 1)
    gex2 = jnp.sum(sq * gmap, axis=1, keepdims=True) * inv_count    # (G, 1)
    gvar = jnp.maximum(gex2 - gmean * gmean, 0.0)           # clamp cancellation -> >= 0
    mean_c = jnp.sum(gmap * gmean, axis=0, keepdims=True)   # (1, Cp)
    var_c = jnp.sum(gmap * gvar, axis=0, keepdims=True)     # (1, Cp)
    inv = lax.rsqrt(var_c + eps)
    y = (x2 - mean_c) * (inv * gamma) + beta
    return y / (1.0 + jnp.exp(-y))                          # swish (exp on EUP, f32)


def _fill_halo(pad_ref, val_hwc):
    """Zero the (H+2, W+2, C) VMEM scratch and copy val into its interior (pad=1)."""
    H, W, _ = val_hwc.shape
    pad_ref[...] = jnp.zeros_like(pad_ref)
    pad_ref[1:H + 1, 1:W + 1, :] = val_hwc.astype(pad_ref.dtype)


def _conv3x3_acc(pad_ref, w9_ref, H, W):
    """Fused im2col: 9 shifted (H*W, Cin)x(Cin, Cout) bf16 matmuls, f32 accumulator."""
    Cin = pad_ref.shape[-1]
    Cout = w9_ref.shape[-1]
    acc = jnp.zeros((H * W, Cout), jnp.float32)
    for kh in range(3):
        for kw in range(3):
            tap = pad_ref[kh:kh + H, kw:kw + W, :].astype(jnp.bfloat16)
            acc = acc + jnp.dot(tap.reshape(H * W, Cin), w9_ref[kh * 3 + kw],
                                preferred_element_type=jnp.float32)
    return acc


# ----------------------------------------------------------------------------
# Fused kernels
# ----------------------------------------------------------------------------
def _gn_conv1_kernel(x_ref, g_ref, b_ref, gm_ref, w9_ref, bias_ref,
                     o_ref, pad_ref, *, inv_count, eps):
    # x_ref: (1, H, W, Cin_p) f32. o_ref: (1, H, W, Cout_p) bf16 (inter-kernel act).
    _, H, W, _ = x_ref.shape
    y = _gn_swish(x_ref[0], g_ref[...], b_ref[...], gm_ref[...], inv_count, eps)
    _fill_halo(pad_ref, y.reshape(H, W, -1))
    Cout = o_ref.shape[-1]
    acc = _conv3x3_acc(pad_ref, w9_ref, H, W) + bias_ref[...]
    o_ref[0] = acc.reshape(H, W, Cout).astype(o_ref.dtype)


def _gn_conv2_id_kernel(h_ref, g_ref, b_ref, gm_ref, w9_ref, bias_ref, x_ref,
                        o_ref, pad_ref, *, inv_count, eps):
    # Identity shortcut: out = conv2(swish(GN2(h))) + x
    _, H, W, _ = h_ref.shape
    y = _gn_swish(h_ref[0], g_ref[...], b_ref[...], gm_ref[...], inv_count, eps)
    _fill_halo(pad_ref, y.reshape(H, W, -1))
    Cout = o_ref.shape[-1]
    acc = _conv3x3_acc(pad_ref, w9_ref, H, W) + bias_ref[...]
    res = x_ref[0].reshape(H * W, Cout).astype(jnp.float32)
    o_ref[0] = (acc + res).reshape(H, W, Cout).astype(o_ref.dtype)


def _gn_conv2_nin_kernel(h_ref, g_ref, b_ref, gm_ref, w9_ref, bias_ref, x_ref,
                         scw_ref, scb_ref, o_ref, pad_ref, *, inv_count, eps):
    # 1x1 nin_shortcut fused as a 10th matmul on the resident x slab.
    _, H, W, _ = h_ref.shape
    y = _gn_swish(h_ref[0], g_ref[...], b_ref[...], gm_ref[...], inv_count, eps)
    _fill_halo(pad_ref, y.reshape(H, W, -1))
    Cout = o_ref.shape[-1]
    acc = _conv3x3_acc(pad_ref, w9_ref, H, W) + bias_ref[...]
    Cin = x_ref.shape[-1]
    x2 = x_ref[0].reshape(H * W, Cin).astype(jnp.bfloat16)
    res = jnp.dot(x2, scw_ref[...], preferred_element_type=jnp.float32) + scb_ref[...]
    o_ref[0] = (acc + res).reshape(H, W, Cout).astype(o_ref.dtype)


def _gn_conv2_csc_kernel(h_ref, g_ref, b_ref, gm_ref, w9_ref, bias_ref, x_ref,
                         scw9_ref, scb_ref, o_ref, pad_ref, xpad_ref, *, inv_count, eps):
    # 3x3 conv_shortcut fused as 9 extra taps on a second halo scratch.
    _, H, W, _ = h_ref.shape
    y = _gn_swish(h_ref[0], g_ref[...], b_ref[...], gm_ref[...], inv_count, eps)
    _fill_halo(pad_ref, y.reshape(H, W, -1))
    Cout = o_ref.shape[-1]
    acc = _conv3x3_acc(pad_ref, w9_ref, H, W) + bias_ref[...]
    _fill_halo(xpad_ref, x_ref[0])
    res = _conv3x3_acc(xpad_ref, scw9_ref, H, W) + scb_ref[...]
    o_ref[0] = (acc + res).reshape(H, W, Cout).astype(o_ref.dtype)


# ----------------------------------------------------------------------------
# Wrapper glue (weight reshapes, padding, BlockSpecs)
# ----------------------------------------------------------------------------
def _pad_vec(v, cp):
    return jnp.zeros((1, cp), jnp.float32).at[0, :v.shape[0]].set(v.astype(jnp.float32))


def _gn_consts(gamma, beta, c_real, cp):
    assert c_real % NUM_GROUPS == 0, "channels must be divisible by num_groups=20"
    cg = c_real // NUM_GROUPS
    ch = jnp.arange(cp)
    grp = jnp.arange(NUM_GROUPS)
    gmap = (((ch[None, :] // cg) == grp[:, None]) & (ch[None, :] < c_real))
    return _pad_vec(gamma, cp), _pad_vec(beta, cp), gmap.astype(jnp.float32)


def _prep_w3x3(w_oihw, cin_p, cout_p):
    # (Cout, Cin, 3, 3) -> (kh, kw, Cin, Cout) -> (9, Cin_p, Cout_p) bf16, lane-dense.
    cout, cin = w_oihw.shape[0], w_oihw.shape[1]
    w9 = jnp.transpose(w_oihw, (2, 3, 1, 0)).reshape(9, cin, cout)
    w9 = jnp.pad(w9, ((0, 0), (0, cin_p - cin), (0, cout_p - cout)))
    return w9.astype(jnp.bfloat16)


def _prep_w1x1(w_oi11, cin_p, cout_p):
    cout, cin = w_oi11.shape[0], w_oi11.shape[1]
    w = jnp.transpose(w_oi11.reshape(cout, cin), (1, 0))
    w = jnp.pad(w, ((0, cin_p - cin), (0, cout_p - cout)))
    return w.astype(jnp.bfloat16)


def _vmem_limit(items):
    """Working set (double-buffered blocks + scratch + slack), clamped to [32,96] MiB."""
    nbytes = 0
    for shape, dt in items:
        n = 1
        for d in shape:
            n *= d
        nbytes += n * _ITEMSIZE[dt]
    return int(min(max(2 * nbytes + (8 << 20), 32 << 20), 96 << 20))


def _const_spec(shape):
    # Constant-index operand (weights/bias/group-map): same block every grid step.
    nd = len(shape)
    return pl.BlockSpec(shape, lambda n: (0,) * nd)


def _fused_gn_swish_conv1(x_p, params, c_in):
    N, H, W, Cin_p = x_p.shape
    w = params["conv1_w"]
    Cout = w.shape[0]
    Cout_p = _round_up(Cout, LANES)
    g_p, b_p, gmap = _gn_consts(params["norm1_g"], params["norm1_b"], c_in, Cin_p)
    w9 = _prep_w3x3(w, Cin_p, Cout_p)
    bias = _pad_vec(params["conv1_b"], Cout_p)
    inv_count = 1.0 / float(H * W * (c_in // NUM_GROUPS))
    kernel = functools.partial(_gn_conv1_kernel, inv_count=inv_count, eps=EPS)

    vmem = _vmem_limit([
        ((1, H, W, Cin_p), jnp.float32),        # input block
        ((1, H, W, Cout_p), jnp.bfloat16),      # output block (bf16 inter-kernel act)
        ((9, Cin_p, Cout_p), jnp.bfloat16),     # weights
        ((H + 2, W + 2, Cin_p), jnp.float32),   # halo scratch
        ((H * W, Cout_p), jnp.float32),         # accumulator
    ])
    return pl.pallas_call(
        kernel,
        out_shape=jax.ShapeDtypeStruct((N, H, W, Cout_p), jnp.bfloat16),
        grid_spec=pltpu.PrefetchScalarGridSpec(
            num_scalar_prefetch=0,
            grid=(N,),
            in_specs=[
                pl.BlockSpec((1, H, W, Cin_p), lambda n: (n, 0, 0, 0)),
                _const_spec((1, Cin_p)),
                _const_spec((1, Cin_p)),
                _const_spec((NUM_GROUPS, Cin_p)),
                _const_spec((9, Cin_p, Cout_p)),
                _const_spec((1, Cout_p)),
            ],
            out_specs=pl.BlockSpec((1, H, W, Cout_p), lambda n: (n, 0, 0, 0)),
            scratch_shapes=[pltpu.VMEM((H + 2, W + 2, Cin_p), jnp.float32)],
        ),
        compiler_params=pltpu.CompilerParams(
            dimension_semantics=("parallel",), vmem_limit_bytes=vmem),
    )(x_p, g_p, b_p, gmap, w9, bias)


def _fused_gn_swish_conv2_add(h_p, x_p, params, c_out, conv_shortcut, has_shortcut):
    N, H, W, Cout_p = h_p.shape
    Cin_p = x_p.shape[-1]
    g_p, b_p, gmap = _gn_consts(params["norm2_g"], params["norm2_b"], c_out, Cout_p)
    w9 = _prep_w3x3(params["conv2_w"], Cout_p, Cout_p)
    bias = _pad_vec(params["conv2_b"], Cout_p)
    inv_count = 1.0 / float(H * W * (c_out // NUM_GROUPS))

    in_specs = [
        pl.BlockSpec((1, H, W, Cout_p), lambda n: (n, 0, 0, 0)),   # h (bf16)
        _const_spec((1, Cout_p)),
        _const_spec((1, Cout_p)),
        _const_spec((NUM_GROUPS, Cout_p)),
        _const_spec((9, Cout_p, Cout_p)),
        _const_spec((1, Cout_p)),
        pl.BlockSpec((1, H, W, Cin_p), lambda n: (n, 0, 0, 0)),    # x residual (f32)
    ]
    args = [h_p, g_p, b_p, gmap, w9, bias, x_p]
    scratch = [pltpu.VMEM((H + 2, W + 2, Cout_p), jnp.float32)]
    vmem_items = [
        ((1, H, W, Cout_p), jnp.bfloat16),
        ((1, H, W, Cin_p), jnp.float32),
        ((1, H, W, Cout_p), jnp.float32),
        ((9, Cout_p, Cout_p), jnp.bfloat16),
        ((H + 2, W + 2, Cout_p), jnp.float32),
        ((H * W, Cout_p), jnp.float32),
    ]

    if not has_shortcut:
        kernel = functools.partial(_gn_conv2_id_kernel, inv_count=inv_count, eps=EPS)
    else:
        scb = _pad_vec(params["sc_b"], Cout_p)
        if conv_shortcut:
            scw = _prep_w3x3(params["sc_w"], Cin_p, Cout_p)
            in_specs += [_const_spec((9, Cin_p, Cout_p)), _const_spec((1, Cout_p))]
            args += [scw, scb]
            scratch.append(pltpu.VMEM((H + 2, W + 2, Cin_p), jnp.float32))
            vmem_items += [((9, Cin_p, Cout_p), jnp.bfloat16),
                           ((H + 2, W + 2, Cin_p), jnp.float32)]
            kernel = functools.partial(_gn_conv2_csc_kernel, inv_count=inv_count, eps=EPS)
        else:
            scw = _prep_w1x1(params["sc_w"], Cin_p, Cout_p)
            in_specs += [_const_spec((Cin_p, Cout_p)), _const_spec((1, Cout_p))]
            args += [scw, scb]
            vmem_items += [((Cin_p, Cout_p), jnp.bfloat16)]
            kernel = functools.partial(_gn_conv2_nin_kernel, inv_count=inv_count, eps=EPS)

    return pl.pallas_call(
        kernel,
        out_shape=jax.ShapeDtypeStruct((N, H, W, Cout_p), jnp.float32),
        grid_spec=pltpu.PrefetchScalarGridSpec(
            num_scalar_prefetch=0,
            grid=(N,),
            in_specs=in_specs,
            out_specs=pl.BlockSpec((1, H, W, Cout_p), lambda n: (n, 0, 0, 0)),
            scratch_shapes=scratch,
        ),
        compiler_params=pltpu.CompilerParams(
            dimension_semantics=("parallel",),
            vmem_limit_bytes=_vmem_limit(vmem_items)),
    )(*args)


def resnet_block_nhwc(x_p, params, c_in, conv_shortcut=False):
    """Core block on channel-padded NHWC activations (chainable, no layout ops)."""
    c_out = params["conv1_w"].shape[0]
    h = _fused_gn_swish_conv1(x_p, params, c_in)
    return _fused_gn_swish_conv2_add(h, x_p, params, c_out, conv_shortcut,
                                     has_shortcut=(c_in != c_out))


@functools.partial(jax.jit, static_argnames=("conv_shortcut",))
def resnet_block(x_nchw, params, conv_shortcut=False):
    """zfgan.ResnetBlock forward (inference). x_nchw: (N, Cin, H, W) f32, NCHW."""
    N, Cin, H, W = x_nchw.shape
    Cout = params["conv1_w"].shape[0]
    Cin_p = _round_up(Cin, LANES)
    x = jnp.transpose(x_nchw, (0, 2, 3, 1)).astype(jnp.float32)        # NHWC
    x = jnp.pad(x, ((0, 0), (0, 0), (0, 0), (0, Cin_p - Cin)))          # lane pad
    # TODO(synk): torch.nn.Dropout is identity at inference; training-mode stochastic
    # masking (pltpu.prng_*) is not implemented here.
    out_p = resnet_block_nhwc(x, params, Cin, conv_shortcut)
    return jnp.transpose(out_p[..., :Cout], (0, 3, 1, 2))               # back to NCHW


# ----------------------------------------------------------------------------
# Plain-JAX reference for validation
# ----------------------------------------------------------------------------
def _group_norm_ref(x, gamma, beta, groups=NUM_GROUPS, eps=EPS):
    N, C, H, W = x.shape
    xg = x.reshape(N, groups, C // groups, H, W)
    mean = jnp.mean(xg, axis=(2, 3, 4), keepdims=True)
    var = jnp.mean((xg - mean) ** 2, axis=(2, 3, 4), keepdims=True)
    xn = ((xg - mean) / jnp.sqrt(var + eps)).reshape(N, C, H, W)
    return xn * gamma.reshape(1, C, 1, 1) + beta.reshape(1, C, 1, 1)


def _swish(x):
    return x * jax.nn.sigmoid(x)


def _conv_ref(x, w, b, pad):
    out = lax.conv_general_dilated(
        x, w, window_strides=(1, 1), padding=((pad, pad), (pad, pad)),
        dimension_numbers=("NCHW", "OIHW", "NCHW"),
        precision=lax.Precision.HIGHEST)
    return out + b.reshape(1, -1, 1, 1)


def resnet_block_ref(x, params, conv_shortcut=False):
    Cin = x.shape[1]
    Cout = params["conv1_w"].shape[0]
    h = _swish(_group_norm_ref(x, params["norm1_g"], params["norm1_b"]))
    h = _conv_ref(h, params["conv1_w"], params["conv1_b"], 1)
    h = _swish(_group_norm_ref(h, params["norm2_g"], params["norm2_b"]))
    h = _conv_ref(h, params["conv2_w"], params["conv2_b"], 1)
    if Cin != Cout:
        if conv_shortcut:
            x = _conv_ref(x, params["sc_w"], params["sc_b"], 1)
        else:
            x = _conv_ref(x, params["sc_w"], params["sc_b"], 0)
    return x + h


def _make_params(key, cin, cout, conv_shortcut):
    ks = jax.random.split(key, 10)
    p = {
        "norm1_g": 1.0 + 0.1 * jax.random.normal(ks[0], (cin,), jnp.float32),
        "norm1_b": 0.1 * jax.random.normal(ks[1], (cin,), jnp.float32),
        "conv1_w": 0.1 * jax.random.normal(ks[2], (cout, cin, 3, 3), jnp.float32),
        "conv1_b": 0.1 * jax.random.normal(ks[3], (cout,), jnp.float32),
        "norm2_g": 1.0 + 0.1 * jax.random.normal(ks[4], (cout,), jnp.float32),
        "norm2_b": 0.1 * jax.random.normal(ks[5], (cout,), jnp.float32),
        "conv2_w": 0.1 * jax.random.normal(ks[6], (cout, cout, 3, 3), jnp.float32),
        "conv2_b": 0.1 * jax.random.normal(ks[7], (cout,), jnp.float32),
    }
    if cin != cout:
        kshape = (cout, cin, 3, 3) if conv_shortcut else (cout, cin, 1, 1)
        p["sc_w"] = 0.1 * jax.random.normal(ks[8], kshape, jnp.float32)
        p["sc_b"] = 0.1 * jax.random.normal(ks[9], (cout,), jnp.float32)
    return p


# ----------------------------------------------------------------------------
if __name__ == "__main__":
    key = jax.random.PRNGKey(0)
    N, H, W = 2, 16, 16
    # channels must be divisible by num_groups=20 (as in the PyTorch module)
    configs = [
        (20, 20, False),   # identity shortcut
        (20, 40, False),   # nin_shortcut (1x1 conv, fused)
        (20, 40, True),    # conv_shortcut (3x3 conv, fused)
    ]
    ok = True
    for cin, cout, cs in configs:
        kx, kp, key = jax.random.split(key, 3)
        x = jax.random.normal(kx, (N, cin, H, W), dtype=jnp.float32)
        params = _make_params(kp, cin, cout, cs)

        out = jax.block_until_ready(resnet_block(x, params, conv_shortcut=cs))
        ref = resnet_block_ref(x, params, conv_shortcut=cs)

        ok = ok and (out.shape == (N, cout, H, W))
        # Tolerance reflects bf16 MXU operands + bf16 inter-kernel activation
        # (f32 reference); a halo/tap bug would produce O(0.5+) errors.
        ok = ok and bool(jnp.allclose(out, ref, atol=3e-2, rtol=3e-2))

    print("KERNEL_OK" if ok else "KERNEL_MISMATCH")
</pallas_src>

<mosaic_0001>
module attributes {stable_mosaic.version = 11 : i64} {
  func.func @_gn_conv1_kernel(%arg0: i32, %arg1: memref<1x16x16x128xf32, #tpu.memory_space<vmem>>, %arg2: memref<1x128xf32, #tpu.memory_space<vmem>>, %arg3: memref<1x128xf32, #tpu.memory_space<vmem>>, %arg4: memref<20x128xf32, #tpu.memory_space<vmem>>, %arg5: memref<9x128x128xbf16, #tpu.memory_space<vmem>>, %arg6: memref<1x128xf32, #tpu.memory_space<vmem>>, %arg7: memref<1x16x16x128xbf16, #tpu.memory_space<vmem>>, %arg8: memref<18x18x128xf32, #tpu.memory_space<vmem>>) attributes {dimension_semantics = [#tpu.dimension_semantics<parallel>], iteration_bounds = array<i64: 2>, scalar_prefetch = 0 : i64, scratch_operands = 1 : i64, tpu.core_type = #tpu.core_type<tc>, window_params = [{transform_indices = @transform_0, window_bounds = array<i64: 1, 16, 16, 128>}, {pipeline_mode = #tpu.pipeline_mode<synchronous>, transform_indices = @transform_1, window_bounds = array<i64: 1, 128>}, {pipeline_mode = #tpu.pipeline_mode<synchronous>, transform_indices = @transform_2, window_bounds = array<i64: 1, 128>}, {pipeline_mode = #tpu.pipeline_mode<synchronous>, transform_indices = @transform_3, window_bounds = array<i64: 20, 128>}, {pipeline_mode = #tpu.pipeline_mode<synchronous>, transform_indices = @transform_4, window_bounds = array<i64: 9, 128, 128>}, {pipeline_mode = #tpu.pipeline_mode<synchronous>, transform_indices = @transform_5, window_bounds = array<i64: 1, 128>}, {transform_indices = @transform_6, window_bounds = array<i64: 1, 16, 16, 128>}]} {
    %c0 = arith.constant 0 : index
    %c0_0 = arith.constant 0 : index
    %c0_1 = arith.constant 0 : index
    %c0_2 = arith.constant 0 : index
    %0 = vector.load %arg1[%c0, %c0_0, %c0_1, %c0_2] : memref<1x16x16x128xf32, #tpu.memory_space<vmem>>, vector<1x16x16x128xf32>
    %1 = vector.shape_cast %0 : vector<1x16x16x128xf32> to vector<16x16x128xf32>
    %c0_3 = arith.constant 0 : index
    %c0_4 = arith.constant 0 : index
    %2 = vector.load %arg2[%c0_3, %c0_4] : memref<1x128xf32, #tpu.memory_space<vmem>>, vector<1x128xf32>
    %c0_5 = arith.constant 0 : index
    %c0_6 = arith.constant 0 : index
    %3 = vector.load %arg3[%c0_5, %c0_6] : memref<1x128xf32, #tpu.memory_space<vmem>>, vector<1x128xf32>
    %c0_7 = arith.constant 0 : index
    %c0_8 = arith.constant 0 : index
    %4 = vector.load %arg4[%c0_7, %c0_8] : memref<20x128xf32, #tpu.memory_space<vmem>>, vector<20x128xf32>
    %5 = vector.shape_cast %1 : vector<16x16x128xf32> to vector<256x128xf32>
    %cst = arith.constant dense<0.000000e+00> : vector<128xf32>
    %6 = vector.multi_reduction <add>, %5, %cst [0] : vector<256x128xf32> to vector<128xf32>
    %7 = vector.shape_cast %6 : vector<128xf32> to vector<1x128xf32>
    %8 = arith.mulf %5, %5 : vector<256x128xf32>
    %cst_9 = arith.constant dense<0.000000e+00> : vector<128xf32>
    %9 = vector.multi_reduction <add>, %8, %cst_9 [0] : vector<256x128xf32> to vector<128xf32>
    %10 = vector.shape_cast %9 : vector<128xf32> to vector<1x128xf32>
    %11 = vector.broadcast %7 : vector<1x128xf32> to vector<20x128xf32>
    %12 = arith.mulf %11, %4 : vector<20x128xf32>
    %cst_10 = arith.constant dense<0.000000e+00> : vector<20xf32>
    %13 = vector.multi_reduction <add>, %12, %cst_10 [1] : vector<20x128xf32> to vector<20xf32>
    %14 = vector.shape_cast %13 : vector<20xf32> to vector<20x1xf32>
    %cst_11 = arith.constant 3.906250e-03 : f32
    %15 = vector.broadcast %cst_11 : f32 to vector<20x1xf32>
    %16 = arith.mulf %14, %15 : vector<20x1xf32>
    %17 = vector.broadcast %10 : vector<1x128xf32> to vector<20x128xf32>
    %18 = arith.mulf %17, %4 : vector<20x128xf32>
    %cst_12 = arith.constant dense<0.000000e+00> : vector<20xf32>
    %19 = vector.multi_reduction <add>, %18, %cst_12 [1] : vector<20x128xf32> to vector<20xf32>
    %20 = vector.shape_cast %19 : vector<20xf32> to vector<20x1xf32>
    %cst_13 = arith.constant 3.906250e-03 : f32
    %21 = vector.broadcast %cst_13 : f32 to vector<20x1xf32>
    %22 = arith.mulf %20, %21 : vector<20x1xf32>
    %23 = arith.mulf %16, %16 : vector<20x1xf32>
    %24 = arith.subf %22, %23 : vector<20x1xf32>
    %cst_14 = arith.constant 0.000000e+00 : f32
    %25 = vector.broadcast %cst_14 : f32 to vector<20x1xf32>
    %26 = arith.maximumf %24, %25 : vector<20x1xf32>
    %27 = vector.broadcast %16 : vector<20x1xf32> to vector<20x128xf32>
    %28 = arith.mulf %4, %27 : vector<20x128xf32>
    %cst_15 = arith.constant dense<0.000000e+00> : vector<128xf32>
    %29 = vector.multi_reduction <add>, %28, %cst_15 [0] : vector<20x128xf32> to vector<128xf32>
    %30 = vector.shape_cast %29 : vector<128xf32> to vector<1x128xf32>
    %31 = vector.broadcast %26 : vector<20x1xf32> to vector<20x128xf32>
    %32 = arith.mulf %4, %31 : vector<20x128xf32>
    %cst_16 = arith.constant dense<0.000000e+00> : vector<128xf32>
    %33 = vector.multi_reduction <add>, %32, %cst_16 [0] : vector<20x128xf32> to vector<128xf32>
    %34 = vector.shape_cast %33 : vector<128xf32> to vector<1x128xf32>
    %cst_17 = arith.constant 9.99999997E-7 : f32
    %35 = vector.broadcast %cst_17 : f32 to vector<1x128xf32>
    %36 = arith.addf %34, %35 : vector<1x128xf32>
    %37 = math.rsqrt %36 : vector<1x128xf32>
    %38 = vector.broadcast %30 : vector<1x128xf32> to vector<256x128xf32>
    %39 = arith.subf %5, %38 : vector<256x128xf32>
    %40 = arith.mulf %37, %2 : vector<1x128xf32>
    %41 = vector.broadcast %40 : vector<1x128xf32> to vector<256x128xf32>
    %42 = arith.mulf %39, %41 : vector<256x128xf32>
    %43 = vector.broadcast %3 : vector<1x128xf32> to vector<256x128xf32>
    %44 = arith.addf %42, %43 : vector<256x128xf32>
    %cst_18 = arith.constant 0.000000e+00 : f32
    %45 = vector.broadcast %cst_18 : f32 to vector<256x128xf32>
    %46 = arith.subf %45, %44 : vector<256x128xf32>
    %47 = math.exp %46 : vector<256x128xf32>
    %cst_19 = arith.constant 1.000000e+00 : f32
    %48 = vector.broadcast %cst_19 : f32 to vector<256x128xf32>
    %49 = arith.addf %48, %47 : vector<256x128xf32>
    %50 = arith.divf %44, %49 : vector<256x128xf32>
    %51 = vector.shape_cast %50 : vector<256x128xf32> to vector<16x16x128xf32>
    %cst_20 = arith.constant 0.000000e+00 : f32
    %52 = vector.broadcast %cst_20 : f32 to vector<18x18x128xf32>
    %c0_21 = arith.constant 0 : index
    %c0_22 = arith.constant 0 : index
    %c0_23 = arith.constant 0 : index
    %53 = vector.load %arg8[%c0_21, %c0_22, %c0_23] : memref<18x18x128xf32, #tpu.memory_space<vmem>>, vector<18x18x128xf32>
    tpu.vector_store %arg8[%c0_21, %c0_22, %c0_23], %52 {strides = array<i32>} : memref<18x18x128xf32, #tpu.memory_space<vmem>>, vector<18x18x128xf32>,
    %c1 = arith.constant 1 : index
    %c1_24 = arith.constant 1 : index
    %c0_25 = arith.constant 0 : index
    %54 = vector.load %arg8[%c1, %c1_24, %c0_25] : memref<18x18x128xf32, #tpu.memory_space<vmem>>, vector<16x16x128xf32>
    tpu.vector_store %arg8[%c1, %c1_24, %c0_25], %51 {strides = array<i32>} : memref<18x18x128xf32, #tpu.memory_space<vmem>>, vector<16x16x128xf32>,
    %cst_26 = arith.constant 0.000000e+00 : f32
    %55 = vector.broadcast %cst_26 : f32 to vector<256x128xf32>
    %c0_27 = arith.constant 0 : index
    %c0_28 = arith.constant 0 : index
    %c0_29 = arith.constant 0 : index
    %56 = vector.load %arg8[%c0_27, %c0_28, %c0_29] : memref<18x18x128xf32, #tpu.memory_space<vmem>>, vector<16x16x128xf32>
    %57 = arith.truncf %56 : vector<16x16x128xf32> to vector<16x16x128xbf16>
    %58 = vector.shape_cast %57 : vector<16x16x128xbf16> to vector<256x128xbf16>
    %c0_30 = arith.constant 0 : index
    %c0_31 = arith.constant 0 : index
    %c0_32 = arith.constant 0 : index
    %59 = vector.load %arg5[%c0_30, %c0_31, %c0_32] : memref<9x128x128xbf16, #tpu.memory_space<vmem>>, vector<1x128x128xbf16>
    %60 = vector.shape_cast %59 : vector<1x128x128xbf16> to vector<128x128xbf16>
    %cst_33 = arith.constant dense<0.000000e+00> : vector<256x128xf32>
    %61 = tpu.matmul %58, %60, %cst_33 {dimension_numbers = #tpu.dot_dimension_numbers<[1], [0], [0], [1], [0, 0, 1, 1], [], []>} : vector<256x128xbf16>, vector<128x128xbf16>, vector<256x128xf32> -> vector<256x128xf32>
    %62 = arith.addf %55, %61 : vector<256x128xf32>
    %c0_34 = arith.constant 0 : index
    %c1_35 = arith.constant 1 : index
    %c0_36 = arith.constant 0 : index
    %63 = vector.load %arg8[%c0_34, %c1_35, %c0_36] : memref<18x18x128xf32, #tpu.memory_space<vmem>>, vector<16x16x128xf32>
    %64 = arith.truncf %63 : vector<16x16x128xf32> to vector<16x16x128xbf16>
    %65 = vector.shape_cast %64 : vector<16x16x128xbf16> to vector<256x128xbf16>
    %c1_37 = arith.constant 1 : index
    %c0_38 = arith.constant 0 : index
    %c0_39 = arith.constant 0 : index
    %66 = vector.load %arg5[%c1_37, %c0_38, %c0_39] : memref<9x128x128xbf16, #tpu.memory_space<vmem>>, vector<1x128x128xbf16>
    %67 = vector.shape_cast %66 : vector<1x128x128xbf16> to vector<128x128xbf16>
    %cst_40 = arith.constant dense<0.000000e+00> : vector<256x128xf32>
    %68 = tpu.matmul %65, %67, %cst_40 {dimension_numbers = #tpu.dot_dimension_numbers<[1], [0], [0], [1], [0, 0, 1, 1], [], []>} : vector<256x128xbf16>, vector<128x128xbf16>, vector<256x128xf32> -> vector<256x128xf32>
    %69 = arith.addf %62, %68 : vector<256x128xf32>
    %c0_41 = arith.constant 0 : index
    %c2 = arith.constant 2 : index
    %c0_42 = arith.constant 0 : index
    %70 = vector.load %arg8[%c0_41, %c2, %c0_42] : memref<18x18x128xf32, #tpu.memory_space<vmem>>, vector<16x16x128xf32>
    %71 = arith.truncf %70 : vector<16x16x128xf32> to vector<16x16x128xbf16>
    %72 = vector.shape_cast %71 : vector<16x16x128xbf16> to vector<256x128xbf16>
    %c2_43 = arith.constant 2 : index
    %c0_44 = arith.constant 0 : index
    %c0_45 = arith.constant 0 : index
    %73 = vector.load %arg5[%c2_43, %c0_44, %c0_45] : memref<9x128x128xbf16, #tpu.memory_space<vmem>>, vector<1x128x128xbf16>
    %74 = vector.shape_cast %73 : vector<1x128x128xbf16> to vector<128x128xbf16>
    %cst_46 = arith.constant dense<0.000000e+00> : vector<256x128xf32>
    %75 = tpu.matmul %72, %74, %cst_46 {dimension_numbers = #tpu.dot_dimension_numbers<[1], [0], [0], [1], [0, 0, 1, 1], [], []>} : vector<256x128xbf16>, vector<128x128xbf16>, vector<256x128xf32> -> vector<256x128xf32>
    %76 = arith.addf %69, %75 : vector<256x128xf32>
    %c1_47 = arith.constant 1 : index
    %c0_48 = arith.constant 0 : index
    %c0_49 = arith.constant 0 : index
    %77 = vector.load %arg8[%c1_47, %c0_48, %c0_49] : memref<18x18x128xf32, #tpu.memory_space<vmem>>, vector<16x16x128xf32>
    %78 = arith.truncf %77 : vector<16x16x128xf32> to vector<16x16x128xbf16>
    %79 = vector.shape_cast %78 : vector<16x16x128xbf16> to vector<256x128xbf16>
    %c3 = arith.constant 3 : index
    %c0_50 = arith.constant 0 : index
    %c0_51 = arith.constant 0 : index
    %80 = vector.load %arg5[%c3, %c0_50, %c0_51] : memref<9x128x128xbf16, #tpu.memory_space<vmem>>, vector<1x128x128xbf16>
    %81 = vector.shape_cast %80 : vector<1x128x128xbf16> to vector<128x128xbf16>
    %cst_52 = arith.constant dense<0.000000e+00> : vector<256x128xf32>
    %82 = tpu.matmul %79, %81, %cst_52 {dimension_numbers = #tpu.dot_dimension_numbers<[1], [0], [0], [1], [0, 0, 1, 1], [], []>} : vector<256x128xbf16>, vector<128x128xbf16>, vector<256x128xf32> -> vector<256x128xf32>
    %83 = arith.addf %76, %82 : vector<256x128xf32>
    %c1_53 = arith.constant 1 : index
    %c1_54 = arith.constant 1 : index
    %c0_55 = arith.constant 0 : index
    %84 = vector.load %arg8[%c1_53, %c1_54, %c0_55] : memref<18x18x128xf32, #tpu.memory_space<vmem>>, vector<16x16x128xf32>
    %85 = arith.truncf %84 : vector<16x16x128xf32> to vector<16x16x128xbf16>
    %86 = vector.shape_cast %85 : vector<16x16x128xbf16> to vector<256x128xbf16>
    %c4 = arith.constant 4 : index
    %c0_56 = arith.constant 0 : index
    %c0_57 = arith.constant 0 : index
    %87 = vector.load %arg5[%c4, %c0_56, %c0_57] : memref<9x128x128xbf16, #tpu.memory_space<vmem>>, vector<1x128x128xbf16>
    %88 = vector.shape_cast %87 : vector<1x128x128xbf16> to vector<128x128xbf16>
    %cst_58 = arith.constant dense<0.000000e+00> : vector<256x128xf32>
    %89 = tpu.matmul %86, %88, %cst_58 {dimension_numbers = #tpu.dot_dimension_numbers<[1], [0], [0], [1], [0, 0, 1, 1], [], []>} : vector<256x128xbf16>, vector<128x128xbf16>, vector<256x128xf32> -> vector<256x128xf32>
    %90 = arith.addf %83, %89 : vector<256x128xf32>
    %c1_59 = arith.constant 1 : index
    %c2_60 = arith.constant 2 : index
    %c0_61 = arith.constant 0 : index
    %91 = vector.load %arg8[%c1_59, %c2_60, %c0_61] : memref<18x18x128xf32, #tpu.memory_space<vmem>>, vector<16x16x128xf32>
    %92 = arith.truncf %91 : vector<16x16x128xf32> to vector<16x16x128xbf16>
    %93 = vector.shape_cast %92 : vector<16x16x128xbf16> to vector<256x128xbf16>
    %c5 = arith.constant 5 : index
    %c0_62 = arith.constant 0 : index
    %c0_63 = arith.constant 0 : index
    %94 = vector.load %arg5[%c5, %c0_62, %c0_63] : memref<9x128x128xbf16, #tpu.memory_space<vmem>>, vector<1x128x128xbf16>
    %95 = vector.shape_cast %94 : vector<1x128x128xbf16> to vector<128x128xbf16>
    %cst_64 = arith.constant dense<0.000000e+00> : vector<256x128xf32>
    %96 = tpu.matmul %93, %95, %cst_64 {dimension_numbers = #tpu.dot_dimension_numbers<[1], [0], [0], [1], [0, 0, 1, 1], [], []>} : vector<256x128xbf16>, vector<128x128xbf16>, vector<256x128xf32> -> vector<256x128xf32>
    %97 = arith.addf %90, %96 : vector<256x128xf32>
    %c2_65 = arith.constant 2 : index
    %c0_66 = arith.constant 0 : index
    %c0_67 = arith.constant 0 : index
    %98 = vector.load %arg8[%c2_65, %c0_66, %c0_67] : memref<18x18x128xf32, #tpu.memory_space<vmem>>, vector<16x16x128xf32>
    %99 = arith.truncf %98 : vector<16x16x128xf32> to vector<16x16x128xbf16>
    %100 = vector.shape_cast %99 : vector<16x16x128xbf16> to vector<256x128xbf16>
    %c6 = arith.constant 6 : index
    %c0_68 = arith.constant 0 : index
    %c0_69 = arith.constant 0 : index
    %101 = vector.load %arg5[%c6, %c0_68, %c0_69] : memref<9x128x128xbf16, #tpu.memory_space<vmem>>, vector<1x128x128xbf16>
    %102 = vector.shape_cast %101 : vector<1x128x128xbf16> to vector<128x128xbf16>
    %cst_70 = arith.constant dense<0.000000e+00> : vector<256x128xf32>
    %103 = tpu.matmul %100, %102, %cst_70 {dimension_numbers = #tpu.dot_dimension_numbers<[1], [0], [0], [1], [0, 0, 1, 1], [], []>} : vector<256x128xbf16>, vector<128x128xbf16>, vector<256x128xf32> -> vector<256x128xf32>
    %104 = arith.addf %97, %103 : vector<256x128xf32>
    %c2_71 = arith.constant 2 : index
    %c1_72 = arith.constant 1 : index
    %c0_73 = arith.constant 0 : index
    %105 = vector.load %arg8[%c2_71, %c1_72, %c0_73] : memref<18x18x128xf32, #tpu.memory_space<vmem>>, vector<16x16x128xf32>
    %106 = arith.truncf %105 : vector<16x16x128xf32> to vector<16x16x128xbf16>
    %107 = vector.shape_cast %106 : vector<16x16x128xbf16> to vector<256x128xbf16>
    %c7 = arith.constant 7 : index
    %c0_74 = arith.constant 0 : index
    %c0_75 = arith.constant 0 : index
    %108 = vector.load %arg5[%c7, %c0_74, %c0_75] : memref<9x128x128xbf16, #tpu.memory_space<vmem>>, vector<1x128x128xbf16>
    %109 = vector.shape_cast %108 : vector<1x128x128xbf16> to vector<128x128xbf16>
    %cst_76 = arith.constant dense<0.000000e+00> : vector<256x128xf32>
    %110 = tpu.matmul %107, %109, %cst_76 {dimension_numbers = #tpu.dot_dimension_numbers<[1], [0], [0], [1], [0, 0, 1, 1], [], []>} : vector<256x128xbf16>, vector<128x128xbf16>, vector<256x128xf32> -> vector<256x128xf32>
    %111 = arith.addf %104, %110 : vector<256x128xf32>
    %c2_77 = arith.constant 2 : index
    %c2_78 = arith.constant 2 : index
    %c0_79 = arith.constant 0 : index
    %112 = vector.load %arg8[%c2_77, %c2_78, %c0_79] : memref<18x18x128xf32, #tpu.memory_space<vmem>>, vector<16x16x128xf32>
    %113 = arith.truncf %112 : vector<16x16x128xf32> to vector<16x16x128xbf16>
    %114 = vector.shape_cast %113 : vector<16x16x128xbf16> to vector<256x128xbf16>
    %c8 = arith.constant 8 : index
    %c0_80 = arith.constant 0 : index
    %c0_81 = arith.constant 0 : index
    %115 = vector.load %arg5[%c8, %c0_80, %c0_81] : memref<9x128x128xbf16, #tpu.memory_space<vmem>>, vector<1x128x128xbf16>
    %116 = vector.shape_cast %115 : vector<1x128x128xbf16> to vector<128x128xbf16>
    %cst_82 = arith.constant dense<0.000000e+00> : vector<256x128xf32>
    %117 = tpu.matmul %114, %116, %cst_82 {dimension_numbers = #tpu.dot_dimension_numbers<[1], [0], [0], [1], [0, 0, 1, 1], [], []>} : vector<256x128xbf16>, vector<128x128xbf16>, vector<256x128xf32> -> vector<256x128xf32>
    %118 = arith.addf %111, %117 : vector<256x128xf32>
    %c0_83 = arith.constant 0 : index
    %c0_84 = arith.constant 0 : index
    %119 = vector.load %arg6[%c0_83, %c0_84] : memref<1x128xf32, #tpu.memory_space<vmem>>, vector<1x128xf32>
    %120 = vector.broadcast %119 : vector<1x128xf32> to vector<256x128xf32>
    %121 = arith.addf %118, %120 : vector<256x128xf32>
    %122 = vector.shape_cast %121 : vector<256x128xf32> to vector<16x16x128xf32>
    %123 = arith.truncf %122 : vector<16x16x128xf32> to vector<16x16x128xbf16>
    %c0_85 = arith.constant 0 : index
    %c0_86 = arith.constant 0 : index
    %c0_87 = arith.constant 0 : index
    %c0_88 = arith.constant 0 : index
    %124 = vector.load %arg7[%c0_85, %c0_86, %c0_87, %c0_88] : memref<1x16x16x128xbf16, #tpu.memory_space<vmem>>, vector<1x16x16x128xbf16>
    %125 = vector.shape_cast %124 : vector<1x16x16x128xbf16> to vector<16x16x128xbf16>
    %126 = vector.shape_cast %123 : vector<16x16x128xbf16> to vector<1x16x16x128xbf16>
    tpu.vector_store %arg7[%c0_85, %c0_86, %c0_87, %c0_88], %126 {strides = array<i32>} : memref<1x16x16x128xbf16, #tpu.memory_space<vmem>>, vector<1x16x16x128xbf16>,
    return
  }
  func.func @transform_0(%arg0: i32) -> (i32, i32, i32, i32) {
    %c0_i32 = arith.constant 0 : i32
    %c0_i32_0 = arith.constant 0 : i32
    %c0_i32_1 = arith.constant 0 : i32
    %c0_i32_2 = arith.constant 0 : i32
    return %arg0, %c0_i32, %c0_i32_0, %c0_i32_1 : i32, i32, i32, i32
  }
  func.func @transform_1(%arg0: i32) -> (i32, i32) {
    %c0_i32 = arith.constant 0 : i32
    %c0_i32_0 = arith.constant 0 : i32
    %c0_i32_1 = arith.constant 0 : i32
    return %c0_i32, %c0_i32_0 : i32, i32
  }
  func.func @transform_2(%arg0: i32) -> (i32, i32) {
    %c0_i32 = arith.constant 0 : i32
    %c0_i32_0 = arith.constant 0 : i32
    %c0_i32_1 = arith.constant 0 : i32
    return %c0_i32, %c0_i32_0 : i32, i32
  }
  func.func @transform_3(%arg0: i32) -> (i32, i32) {
    %c0_i32 = arith.constant 0 : i32
    %c0_i32_0 = arith.constant 0 : i32
    %c0_i32_1 = arith.constant 0 : i32
    return %c0_i32, %c0_i32_0 : i32, i32
  }
  func.func @transform_4(%arg0: i32) -> (i32, i32, i32) {
    %c0_i32 = arith.constant 0 : i32
    %c0_i32_0 = arith.constant 0 : i32
    %c0_i32_1 = arith.constant 0 : i32
    %c0_i32_2 = arith.constant 0 : i32
    return %c0_i32, %c0_i32_0, %c0_i32_1 : i32, i32, i32
  }
  func.func @transform_5(%arg0: i32) -> (i32, i32) {
    %c0_i32 = arith.constant 0 : i32
    %c0_i32_0 = arith.constant 0 : i32
    %c0_i32_1 = arith.constant 0 : i32
    return %c0_i32, %c0_i32_0 : i32, i32
  }
  func.func @transform_6(%arg0: i32) -> (i32, i32, i32, i32) {
    %c0_i32 = arith.constant 0 : i32
    %c0_i32_0 = arith.constant 0 : i32
    %c0_i32_1 = arith.constant 0 : i32
    %c0_i32_2 = arith.constant 0 : i32
    return %arg0, %c0_i32, %c0_i32_0, %c0_i32_1 : i32, i32, i32, i32
  }
}

module attributes {stable_mosaic.version = 11 : i64} {
  func.func @_gn_conv2_id_kernel(%arg0: i32, %arg1: memref<1x16x16x128xbf16, #tpu.memory_space<vmem>>, %arg2: memref<1x128xf32, #tpu.memory_space<vmem>>, %arg3: memref<1x128xf32, #tpu.memory_space<vmem>>, %arg4: memref<20x128xf32, #tpu.memory_space<vmem>>, %arg5: memref<9x128x128xbf16, #tpu.memory_space<vmem>>, %arg6: memref<1x128xf32, #tpu.memory_space<vmem>>, %arg7: memref<1x16x16x128xf32, #tpu.memory_space<vmem>>, %arg8: memref<1x16x16x128xf32, #tpu.memory_space<vmem>>, %arg9: memref<18x18x128xf32, #tpu.memory_space<vmem>>) attributes {dimension_semantics = [#tpu.dimension_semantics<parallel>], iteration_bounds = array<i64: 2>, scalar_prefetch = 0 : i64, scratch_operands = 1 : i64, tpu.core_type = #tpu.core_type<tc>, window_params = [{transform_indices = @transform_0, window_bounds = array<i64: 1, 16, 16, 128>}, {pipeline_mode = #tpu.pipeline_mode<synchronous>, transform_indices = @transform_1, window_bounds = array<i64: 1, 128>}, {pipeline_mode = #tpu.pipeline_mode<synchronous>, transform_indices = @transform_2, window_bounds = array<i64: 1, 128>}, {pipeline_mode = #tpu.pipeline_mode<synchronous>, transform_indices = @transform_3, window_bounds = array<i64: 20, 128>}, {pipeline_mode = #tpu.pipeline_mode<synchronous>, transform_indices = @transform_4, window_bounds = array<i64: 9, 128, 128>}, {pipeline_mode = #tpu.pipeline_mode<synchronous>, transform_indices = @transform_5, window_bounds = array<i64: 1, 128>}, {transform_indices = @transform_6, window_bounds = array<i64: 1, 16, 16, 128>}, {transform_indices = @transform_7, window_bounds = array<i64: 1, 16, 16, 128>}]} {
    %c0 = arith.constant 0 : index
    %c0_0 = arith.constant 0 : index
    %c0_1 = arith.constant 0 : index
    %c0_2 = arith.constant 0 : index
    %0 = vector.load %arg1[%c0, %c0_0, %c0_1, %c0_2] : memref<1x16x16x128xbf16, #tpu.memory_space<vmem>>, vector<1x16x16x128xbf16>
    %1 = vector.shape_cast %0 : vector<1x16x16x128xbf16> to vector<16x16x128xbf16>
    %c0_3 = arith.constant 0 : index
    %c0_4 = arith.constant 0 : index
    %2 = vector.load %arg2[%c0_3, %c0_4] : memref<1x128xf32, #tpu.memory_space<vmem>>, vector<1x128xf32>
    %c0_5 = arith.constant 0 : index
    %c0_6 = arith.constant 0 : index
    %3 = vector.load %arg3[%c0_5, %c0_6] : memref<1x128xf32, #tpu.memory_space<vmem>>, vector<1x128xf32>
    %c0_7 = arith.constant 0 : index
    %c0_8 = arith.constant 0 : index
    %4 = vector.load %arg4[%c0_7, %c0_8] : memref<20x128xf32, #tpu.memory_space<vmem>>, vector<20x128xf32>
    %5 = vector.shape_cast %1 : vector<16x16x128xbf16> to vector<256x128xbf16>
    %6 = arith.extf %5 : vector<256x128xbf16> to vector<256x128xf32>
    %cst = arith.constant dense<0.000000e+00> : vector<128xf32>
    %7 = vector.multi_reduction <add>, %6, %cst [0] : vector<256x128xf32> to vector<128xf32>
    %8 = vector.shape_cast %7 : vector<128xf32> to vector<1x128xf32>
    %9 = arith.mulf %6, %6 : vector<256x128xf32>
    %cst_9 = arith.constant dense<0.000000e+00> : vector<128xf32>
    %10 = vector.multi_reduction <add>, %9, %cst_9 [0] : vector<256x128xf32> to vector<128xf32>
    %11 = vector.shape_cast %10 : vector<128xf32> to vector<1x128xf32>
    %12 = vector.broadcast %8 : vector<1x128xf32> to vector<20x128xf32>
    %13 = arith.mulf %12, %4 : vector<20x128xf32>
    %cst_10 = arith.constant dense<0.000000e+00> : vector<20xf32>
    %14 = vector.multi_reduction <add>, %13, %cst_10 [1] : vector<20x128xf32> to vector<20xf32>
    %15 = vector.shape_cast %14 : vector<20xf32> to vector<20x1xf32>
    %cst_11 = arith.constant 3.906250e-03 : f32
    %16 = vector.broadcast %cst_11 : f32 to vector<20x1xf32>
    %17 = arith.mulf %15, %16 : vector<20x1xf32>
    %18 = vector.broadcast %11 : vector<1x128xf32> to vector<20x128xf32>
    %19 = arith.mulf %18, %4 : vector<20x128xf32>
    %cst_12 = arith.constant dense<0.000000e+00> : vector<20xf32>
    %20 = vector.multi_reduction <add>, %19, %cst_12 [1] : vector<20x128xf32> to vector<20xf32>
    %21 = vector.shape_cast %20 : vector<20xf32> to vector<20x1xf32>
    %cst_13 = arith.constant 3.906250e-03 : f32
    %22 = vector.broadcast %cst_13 : f32 to vector<20x1xf32>
    %23 = arith.mulf %21, %22 : vector<20x1xf32>
    %24 = arith.mulf %17, %17 : vector<20x1xf32>
    %25 = arith.subf %23, %24 : vector<20x1xf32>
    %cst_14 = arith.constant 0.000000e+00 : f32
    %26 = vector.broadcast %cst_14 : f32 to vector<20x1xf32>
    %27 = arith.maximumf %25, %26 : vector<20x1xf32>
    %28 = vector.broadcast %17 : vector<20x1xf32> to vector<20x128xf32>
    %29 = arith.mulf %4, %28 : vector<20x128xf32>
    %cst_15 = arith.constant dense<0.000000e+00> : vector<128xf32>
    %30 = vector.multi_reduction <add>, %29, %cst_15 [0] : vector<20x128xf32> to vector<128xf32>
    %31 = vector.shape_cast %30 : vector<128xf32> to vector<1x128xf32>
    %32 = vector.broadcast %27 : vector<20x1xf32> to vector<20x128xf32>
    %33 = arith.mulf %4, %32 : vector<20x128xf32>
    %cst_16 = arith.constant dense<0.000000e+00> : vector<128xf32>
    %34 = vector.multi_reduction <add>, %33, %cst_16 [0] : vector<20x128xf32> to vector<128xf32>
    %35 = vector.shape_cast %34 : vector<128xf32> to vector<1x128xf32>
    %cst_17 = arith.constant 9.99999997E-7 : f32
    %36 = vector.broadcast %cst_17 : f32 to vector<1x128xf32>
    %37 = arith.addf %35, %36 : vector<1x128xf32>
    %38 = math.rsqrt %37 : vector<1x128xf32>
    %39 = vector.broadcast %31 : vector<1x128xf32> to vector<256x128xf32>
    %40 = arith.subf %6, %39 : vector<256x128xf32>
    %41 = arith.mulf %38, %2 : vector<1x128xf32>
    %42 = vector.broadcast %41 : vector<1x128xf32> to vector<256x128xf32>
    %43 = arith.mulf %40, %42 : vector<256x128xf32>
    %44 = vector.broadcast %3 : vector<1x128xf32> to vector<256x128xf32>
    %45 = arith.addf %43, %44 : vector<256x128xf32>
    %cst_18 = arith.constant 0.000000e+00 : f32
    %46 = vector.broadcast %cst_18 : f32 to vector<256x128xf32>
    %47 = arith.subf %46, %45 : vector<256x128xf32>
    %48 = math.exp %47 : vector<256x128xf32>
    %cst_19 = arith.constant 1.000000e+00 : f32
    %49 = vector.broadcast %cst_19 : f32 to vector<256x128xf32>
    %50 = arith.addf %49, %48 : vector<256x128xf32>
    %51 = arith.divf %45, %50 : vector<256x128xf32>
    %52 = vector.shape_cast %51 : vector<256x128xf32> to vector<16x16x128xf32>
    %cst_20 = arith.constant 0.000000e+00 : f32
    %53 = vector.broadcast %cst_20 : f32 to vector<18x18x128xf32>
    %c0_21 = arith.constant 0 : index
    %c0_22 = arith.constant 0 : index
    %c0_23 = arith.constant 0 : index
    %54 = vector.load %arg9[%c0_21, %c0_22, %c0_23] : memref<18x18x128xf32, #tpu.memory_space<vmem>>, vector<18x18x128xf32>
    tpu.vector_store %arg9[%c0_21, %c0_22, %c0_23], %53 {strides = array<i32>} : memref<18x18x128xf32, #tpu.memory_space<vmem>>, vector<18x18x128xf32>,
    %c1 = arith.constant 1 : index
    %c1_24 = arith.constant 1 : index
    %c0_25 = arith.constant 0 : index
    %55 = vector.load %arg9[%c1, %c1_24, %c0_25] : memref<18x18x128xf32, #tpu.memory_space<vmem>>, vector<16x16x128xf32>
    tpu.vector_store %arg9[%c1, %c1_24, %c0_25], %52 {strides = array<i32>} : memref<18x18x128xf32, #tpu.memory_space<vmem>>, vector<16x16x128xf32>,
    %cst_26 = arith.constant 0.000000e+00 : f32
    %56 = vector.broadcast %cst_26 : f32 to vector<256x128xf32>
    %c0_27 = arith.constant 0 : index
    %c0_28 = arith.constant 0 : index
    %c0_29 = arith.constant 0 : index
    %57 = vector.load %arg9[%c0_27, %c0_28, %c0_29] : memref<18x18x128xf32, #tpu.memory_space<vmem>>, vector<16x16x128xf32>
    %58 = arith.truncf %57 : vector<16x16x128xf32> to vector<16x16x128xbf16>
    %59 = vector.shape_cast %58 : vector<16x16x128xbf16> to vector<256x128xbf16>
    %c0_30 = arith.constant 0 : index
    %c0_31 = arith.constant 0 : index
    %c0_32 = arith.constant 0 : index
    %60 = vector.load %arg5[%c0_30, %c0_31, %c0_32] : memref<9x128x128xbf16, #tpu.memory_space<vmem>>, vector<1x128x128xbf16>
    %61 = vector.shape_cast %60 : vector<1x128x128xbf16> to vector<128x128xbf16>
    %cst_33 = arith.constant dense<0.000000e+00> : vector<256x128xf32>
    %62 = tpu.matmul %59, %61, %cst_33 {dimension_numbers = #tpu.dot_dimension_numbers<[1], [0], [0], [1], [0, 0, 1, 1], [], []>} : vector<256x128xbf16>, vector<128x128xbf16>, vector<256x128xf32> -> vector<256x128xf32>
    %63 = arith.addf %56, %62 : vector<256x128xf32>
    %c0_34 = arith.constant 0 : index
    %c1_35 = arith.constant 1 : index
    %c0_36 = arith.constant 0 : index
    %64 = vector.load %arg9[%c0_34, %c1_35, %c0_36] : memref<18x18x128xf32, #tpu.memory_space<vmem>>, vector<16x16x128xf32>
    %65 = arith.truncf %64 : vector<16x16x128xf32> to vector<16x16x128xbf16>
    %66 = vector.shape_cast %65 : vector<16x16x128xbf16> to vector<256x128xbf16>
    %c1_37 = arith.constant 1 : index
    %c0_38 = arith.constant 0 : index
    %c0_39 = arith.constant 0 : index
    %67 = vector.load %arg5[%c1_37, %c0_38, %c0_39] : memref<9x128x128xbf16, #tpu.memory_space<vmem>>, vector<1x128x128xbf16>
    %68 = vector.shape_cast %67 : vector<1x128x128xbf16> to vector<128x128xbf16>
    %cst_40 = arith.constant dense<0.000000e+00> : vector<256x128xf32>
    %69 = tpu.matmul %66, %68, %cst_40 {dimension_numbers = #tpu.dot_dimension_numbers<[1], [0], [0], [1], [0, 0, 1, 1], [], []>} : vector<256x128xbf16>, vector<128x128xbf16>, vector<256x128xf32> -> vector<256x128xf32>
    %70 = arith.addf %63, %69 : vector<256x128xf32>
    %c0_41 = arith.constant 0 : index
    %c2 = arith.constant 2 : index
    %c0_42 = arith.constant 0 : index
    %71 = vector.load %arg9[%c0_41, %c2, %c0_42] : memref<18x18x128xf32, #tpu.memory_space<vmem>>, vector<16x16x128xf32>
    %72 = arith.truncf %71 : vector<16x16x128xf32> to vector<16x16x128xbf16>
    %73 = vector.shape_cast %72 : vector<16x16x128xbf16> to vector<256x128xbf16>
    %c2_43 = arith.constant 2 : index
    %c0_44 = arith.constant 0 : index
    %c0_45 = arith.constant 0 : index
    %74 = vector.load %arg5[%c2_43, %c0_44, %c0_45] : memref<9x128x128xbf16, #tpu.memory_space<vmem>>, vector<1x128x128xbf16>
    %75 = vector.shape_cast %74 : vector<1x128x128xbf16> to vector<128x128xbf16>
    %cst_46 = arith.constant dense<0.000000e+00> : vector<256x128xf32>
    %76 = tpu.matmul %73, %75, %cst_46 {dimension_numbers = #tpu.dot_dimension_numbers<[1], [0], [0], [1], [0, 0, 1, 1], [], []>} : vector<256x128xbf16>, vector<128x128xbf16>, vector<256x128xf32> -> vector<256x128xf32>
    %77 = arith.addf %70, %76 : vector<256x128xf32>
    %c1_47 = arith.constant 1 : index
    %c0_48 = arith.constant 0 : index
    %c0_49 = arith.constant 0 : index
    %78 = vector.load %arg9[%c1_47, %c0_48, %c0_49] : memref<18x18x128xf32, #tpu.memory_space<vmem>>, vector<16x16x128xf32>
    %79 = arith.truncf %78 : vector<16x16x128xf32> to vector<16x16x128xbf16>
    %80 = vector.shape_cast %79 : vector<16x16x128xbf16> to vector<256x128xbf16>
    %c3 = arith.constant 3 : index
    %c0_50 = arith.constant 0 : index
    %c0_51 = arith.constant 0 : index
    %81 = vector.load %arg5[%c3, %c0_50, %c0_51] : memref<9x128x128xbf16, #tpu.memory_space<vmem>>, vector<1x128x128xbf16>
    %82 = vector.shape_cast %81 : vector<1x128x128xbf16> to vector<128x128xbf16>
    %cst_52 = arith.constant dense<0.000000e+00> : vector<256x128xf32>
    %83 = tpu.matmul %80, %82, %cst_52 {dimension_numbers = #tpu.dot_dimension_numbers<[1], [0], [0], [1], [0, 0, 1, 1], [], []>} : vector<256x128xbf16>, vector<128x128xbf16>, vector<256x128xf32> -> vector<256x128xf32>
    %84 = arith.addf %77, %83 : vector<256x128xf32>
    %c1_53 = arith.constant 1 : index
    %c1_54 = arith.constant 1 : index
    %c0_55 = arith.constant 0 : index
    %85 = vector.load %arg9[%c1_53, %c1_54, %c0_55] : memref<18x18x128xf32, #tpu.memory_space<vmem>>, vector<16x16x128xf32>
    %86 = arith.truncf %85 : vector<16x16x128xf32> to vector<16x16x128xbf16>
    %87 = vector.shape_cast %86 : vector<16x16x128xbf16> to vector<256x128xbf16>
    %c4 = arith.constant 4 : index
    %c0_56 = arith.constant 0 : index
    %c0_57 = arith.constant 0 : index
    %88 = vector.load %arg5[%c4, %c0_56, %c0_57] : memref<9x128x128xbf16, #tpu.memory_space<vmem>>, vector<1x128x128xbf16>
    %89 = vector.shape_cast %88 : vector<1x128x128xbf16> to vector<128x128xbf16>
    %cst_58 = arith.constant dense<0.000000e+00> : vector<256x128xf32>
    %90 = tpu.matmul %87, %89, %cst_58 {dimension_numbers = #tpu.dot_dimension_numbers<[1], [0], [0], [1], [0, 0, 1, 1], [], []>} : vector<256x128xbf16>, vector<128x128xbf16>, vector<256x128xf32> -> vector<256x128xf32>
    %91 = arith.addf %84, %90 : vector<256x128xf32>
    %c1_59 = arith.constant 1 : index
    %c2_60 = arith.constant 2 : index
    %c0_61 = arith.constant 0 : index
    %92 = vector.load %arg9[%c1_59, %c2_60, %c0_61] : memref<18x18x128xf32, #tpu.memory_space<vmem>>, vector<16x16x128xf32>
    %93 = arith.truncf %92 : vector<16x16x128xf32> to vector<16x16x128xbf16>
    %94 = vector.shape_cast %93 : vector<16x16x128xbf16> to vector<256x128xbf16>
    %c5 = arith.constant 5 : index
    %c0_62 = arith.constant 0 : index
    %c0_63 = arith.constant 0 : index
    %95 = vector.load %arg5[%c5, %c0_62, %c0_63] : memref<9x128x128xbf16, #tpu.memory_space<vmem>>, vector<1x128x128xbf16>
    %96 = vector.shape_cast %95 : vector<1x128x128xbf16> to vector<128x128xbf16>
    %cst_64 = arith.constant dense<0.000000e+00> : vector<256x128xf32>
    %97 = tpu.matmul %94, %96, %cst_64 {dimension_numbers = #tpu.dot_dimension_numbers<[1], [0], [0], [1], [0, 0, 1, 1], [], []>} : vector<256x128xbf16>, vector<128x128xbf16>, vector<256x128xf32> -> vector<256x128xf32>
    %98 = arith.addf %91, %97 : vector<256x128xf32>
    %c2_65 = arith.constant 2 : index
    %c0_66 = arith.constant 0 : index
    %c0_67 = arith.constant 0 : index
    %99 = vector.load %arg9[%c2_65, %c0_66, %c0_67] : memref<18x18x128xf32, #tpu.memory_space<vmem>>, vector<16x16x128xf32>
    %100 = arith.truncf %99 : vector<16x16x128xf32> to vector<16x16x128xbf16>
    %101 = vector.shape_cast %100 : vector<16x16x128xbf16> to vector<256x128xbf16>
    %c6 = arith.constant 6 : index
    %c0_68 = arith.constant 0 : index
    %c0_69 = arith.constant 0 : index
    %102 = vector.load %arg5[%c6, %c0_68, %c0_69] : memref<9x128x128xbf16, #tpu.memory_space<vmem>>, vector<1x128x128xbf16>
    %103 = vector.shape_cast %102 : vector<1x128x128xbf16> to vector<128x128xbf16>
    %cst_70 = arith.constant dense<0.000000e+00> : vector<256x128xf32>
    %104 = tpu.matmul %101, %103, %cst_70 {dimension_numbers = #tpu.dot_dimension_numbers<[1], [0], [0], [1], [0, 0, 1, 1], [], []>} : vector<256x128xbf16>, vector<128x128xbf16>, vector<256x128xf32> -> vector<256x128xf32>
    %105 = arith.addf %98, %104 : vector<256x128xf32>
    %c2_71 = arith.constant 2 : index
    %c1_72 = arith.constant 1 : index
    %c0_73 = arith.constant 0 : index
    %106 = vector.load %arg9[%c2_71, %c1_72, %c0_73] : memref<18x18x128xf32, #tpu.memory_space<vmem>>, vector<16x16x128xf32>
    %107 = arith.truncf %106 : vector<16x16x128xf32> to vector<16x16x128xbf16>
    %108 = vector.shape_cast %107 : vector<16x16x128xbf16> to vector<256x128xbf16>
    %c7 = arith.constant 7 : index
    %c0_74 = arith.constant 0 : index
    %c0_75 = arith.constant 0 : index
    %109 = vector.load %arg5[%c7, %c0_74, %c0_75] : memref<9x128x128xbf16, #tpu.memory_space<vmem>>, vector<1x128x128xbf16>
    %110 = vector.shape_cast %109 : vector<1x128x128xbf16> to vector<128x128xbf16>
    %cst_76 = arith.constant dense<0.000000e+00> : vector<256x128xf32>
    %111 = tpu.matmul %108, %110, %cst_76 {dimension_numbers = #tpu.dot_dimension_numbers<[1], [0], [0], [1], [0, 0, 1, 1], [], []>} : vector<256x128xbf16>, vector<128x128xbf16>, vector<256x128xf32> -> vector<256x128xf32>
    %112 = arith.addf %105, %111 : vector<256x128xf32>
    %c2_77 = arith.constant 2 : index
    %c2_78 = arith.constant 2 : index
    %c0_79 = arith.constant 0 : index
    %113 = vector.load %arg9[%c2_77, %c2_78, %c0_79] : memref<18x18x128xf32, #tpu.memory_space<vmem>>, vector<16x16x128xf32>
    %114 = arith.truncf %113 : vector<16x16x128xf32> to vector<16x16x128xbf16>
    %115 = vector.shape_cast %114 : vector<16x16x128xbf16> to vector<256x128xbf16>
    %c8 = arith.constant 8 : index
    %c0_80 = arith.constant 0 : index
    %c0_81 = arith.constant 0 : index
    %116 = vector.load %arg5[%c8, %c0_80, %c0_81] : memref<9x128x128xbf16, #tpu.memory_space<vmem>>, vector<1x128x128xbf16>
    %117 = vector.shape_cast %116 : vector<1x128x128xbf16> to vector<128x128xbf16>
    %cst_82 = arith.constant dense<0.000000e+00> : vector<256x128xf32>
    %118 = tpu.matmul %115, %117, %cst_82 {dimension_numbers = #tpu.dot_dimension_numbers<[1], [0], [0], [1], [0, 0, 1, 1], [], []>} : vector<256x128xbf16>, vector<128x128xbf16>, vector<256x128xf32> -> vector<256x128xf32>
    %119 = arith.addf %112, %118 : vector<256x128xf32>
    %c0_83 = arith.constant 0 : index
    %c0_84 = arith.constant 0 : index
    %120 = vector.load %arg6[%c0_83, %c0_84] : memref<1x128xf32, #tpu.memory_space<vmem>>, vector<1x128xf32>
    %121 = vector.broadcast %120 : vector<1x128xf32> to vector<256x128xf32>
    %122 = arith.addf %119, %121 : vector<256x128xf32>
    %c0_85 = arith.constant 0 : index
    %c0_86 = arith.constant 0 : index
    %c0_87 = arith.constant 0 : index
    %c0_88 = arith.constant 0 : index
    %123 = vector.load %arg7[%c0_85, %c0_86, %c0_87, %c0_88] : memref<1x16x16x128xf32, #tpu.memory_space<vmem>>, vector<1x16x16x128xf32>
    %124 = vector.shape_cast %123 : vector<1x16x16x128xf32> to vector<16x16x128xf32>
    %125 = vector.shape_cast %124 : vector<16x16x128xf32> to vector<256x128xf32>
    %126 = arith.addf %122, %125 : vector<256x128xf32>
    %127 = vector.shape_cast %126 : vector<256x128xf32> to vector<16x16x128xf32>
    %c0_89 = arith.constant 0 : index
    %c0_90 = arith.constant 0 : index
    %c0_91 = arith.constant 0 : index
    %c0_92 = arith.constant 0 : index
    %128 = vector.load %arg8[%c0_89, %c0_90, %c0_91, %c0_92] : memref<1x16x16x128xf32, #tpu.memory_space<vmem>>, vector<1x16x16x128xf32>
    %129 = vector.shape_cast %128 : vector<1x16x16x128xf32> to vector<16x16x128xf32>
    %130 = vector.shape_cast %127 : vector<16x16x128xf32> to vector<1x16x16x128xf32>
    tpu.vector_store %arg8[%c0_89, %c0_90, %c0_91, %c0_92], %130 {strides = array<i32>} : memref<1x16x16x128xf32, #tpu.memory_space<vmem>>, vector<1x16x16x128xf32>,
    return
  }
  func.func @transform_0(%arg0: i32) -> (i32, i32, i32, i32) {
    %c0_i32 = arith.constant 0 : i32
    %c0_i32_0 = arith.constant 0 : i32
    %c0_i32_1 = arith.constant 0 : i32
    %c0_i32_2 = arith.constant 0 : i32
    return %arg0, %c0_i32, %c0_i32_0, %c0_i32_1 : i32, i32, i32, i32
  }
  func.func @transform_1(%arg0: i32) -> (i32, i32) {
    %c0_i32 = arith.constant 0 : i32
    %c0_i32_0 = arith.constant 0 : i32
    %c0_i32_1 = arith.constant 0 : i32
    return %c0_i32, %c0_i32_0 : i32, i32
  }
  func.func @transform_2(%arg0: i32) -> (i32, i32) {
    %c0_i32 = arith.constant 0 : i32
    %c0_i32_0 = arith.constant 0 : i32
    %c0_i32_1 = arith.constant 0 : i32
    return %c0_i32, %c0_i32_0 : i32, i32
  }
  func.func @transform_3(%arg0: i32) -> (i32, i32) {
    %c0_i32 = arith.constant 0 : i32
    %c0_i32_0 = arith.constant 0 : i32
    %c0_i32_1 = arith.constant 0 : i32
    return %c0_i32, %c0_i32_0 : i32, i32
  }
  func.func @transform_4(%arg0: i32) -> (i32, i32, i32) {
    %c0_i32 = arith.constant 0 : i32
    %c0_i32_0 = arith.constant 0 : i32
    %c0_i32_1 = arith.constant 0 : i32
    %c0_i32_2 = arith.constant 0 : i32
    return %c0_i32, %c0_i32_0, %c0_i32_1 : i32, i32, i32
  }
  func.func @transform_5(%arg0: i32) -> (i32, i32) {
    %c0_i32 = arith.constant 0 : i32
    %c0_i32_0 = arith.constant 0 : i32
    %c0_i32_1 = arith.constant 0 : i32
    return %c0_i32, %c0_i32_0 : i32, i32
  }
  func.func @transform_6(%arg0: i32) -> (i32, i32, i32, i32) {
    %c0_i32 = arith.constant 0 : i32
    %c0_i32_0 = arith.constant 0 : i32
    %c0_i32_1 = arith.constant 0 : i32
    %c0_i32_2 = arith.constant 0 : i32
    return %arg0, %c0_i32, %c0_i32_0, %c0_i32_1 : i32, i32, i32, i32
  }
  func.func @transform_7(%arg0: i32) -> (i32, i32, i32, i32) {
    %c0_i32 = arith.constant 0 : i32
    %c0_i32_0 = arith.constant 0 : i32
    %c0_i32_1 = arith.constant 0 : i32
    %c0_i32_2 = arith.constant 0 : i32
    return %arg0, %c0_i32, %c0_i32_0, %c0_i32_1 : i32, i32, i32, i32
  }
}

</mosaic_0001>

<bundles_post_ra>
// kernel: resnet_block.2
= control target key start
LH: loop header
LB: loop body
LE: loop exit
PB: predicated region body
PF: predicated region fallthrough
CT: control target
= control target key end

     0   :  { %s5351_s21 = smov 0   ;;  %s6410_s0 = inlined_call_operand.vmem [shape: f32[2,16,16,128], index: 0, kind: input, shape index: {}]   ;;  %s6411_s1 = inlined_call_operand.vmem [shape: f32[1,128], index: 1, kind: input, shape index: {}]   ;;  %s6412_s2 = inlined_call_operand.vmem [shape: f32[1,128], index: 2, kind: input, shape index: {}]   ;;  %s6413_s3 = inlined_call_operand.vmem [shape: f32[20,128], index: 3, kind: input, shape index: {}]   ;;  %s6414_s4 = inlined_call_operand.vmem [shape: bf16[9,128,128], index: 4, kind: input, shape index: {}]   ;;  %s6415_s5 = inlined_call_operand.vmem [shape: f32[1,128], index: 5, kind: input, shape index: {}]   ;;  %s6416_s6 = inlined_call_operand.vmem [shape: bf16[2,16,16,128], index: 6, kind: output, shape index: {}]  }
   0x1 LB: > { %s3788_s22 = sadd.s32 4294967295, %s5313_s21   ;;  %p3792_p0 = scmp.ge.s32.totalorder %s5313_s21, 1  ;;  %s5313_s21 = sphi %s5351_s21, %s16_s21  }
   0x2   : > { %p212_p1 = scmp.lt.s32.totalorder %s5313_s21, 3 }
   0x4   : > { %p213_p2 = pnand %p3792_p0, %p212_p1 }
   0x5   : > { %p5361_p3 = scmp.lt.s32.totalorder (!%p213_p2), %s3788_s22, 1  ;;  %v5315_v0 = vmov (!%p213_p2), 0.0   ;;  %vm403_vm0 = vcmask (!%p213_p2), 1043456  }
   0x6   : > { %216 = sbr.rel (%p213_p2) target bundleno = 854 (0x356), region = 44  ;;  %799 = vst [vmem:[#allocation2 + $0x150] sm:$0xff] (!%p213_p2), %v5315_v0  ;;  %800 = vst [vmem:[#allocation2 + $0x158] sm:$0xff] (!%p213_p2), %v5315_v0 }
   0x7   : > { %801 = vst [vmem:[#allocation2 + $0x160] sm:$0x3] (!%p213_p2), %v5315_v0  ;;  %802 = vst [vmem:[#allocation2 + $0x168] sm:$0xff] (!%p213_p2), %v5315_v0 }
   0x8   : > { %803 = vst [vmem:[#allocation2 + $0x170] sm:$0xff] (!%p213_p2), %v5315_v0  ;;  %804 = vst [vmem:[#allocation2 + $0x178] sm:$0x3] (!%p213_p2), %v5315_v0 }
   0x9   : > { %805 = vst [vmem:[#allocation2 + $0x180] sm:$0xff] (!%p213_p2), %v5315_v0  ;;  %806 = vst [vmem:[#allocation2 + $0x188] sm:$0xff] (!%p213_p2), %v5315_v0 }
   0xa   : > { %807 = vst [vmem:[#allocation2 + $0x190] sm:$0x3] (!%p213_p2), %v5315_v0  ;;  %757 = vst [vmem:[#allocation2] sm:$0xff] (!%p213_p2), %v5315_v0 }
   0xb   : > { %758 = vst [vmem:[#allocation2 + $0x8] sm:$0xff] (!%p213_p2), %v5315_v0  ;;  %759 = vst [vmem:[#allocation2 + $0x10] sm:$0x3] (!%p213_p2), %v5315_v0 }
   0xc   : > { %760 = vst [vmem:[#allocation2 + $0x18] sm:$0xff] (!%p213_p2), %v5315_v0  ;;  %761 = vst [vmem:[#allocation2 + $0x20] sm:$0xff] (!%p213_p2), %v5315_v0 }
   0xd   : > { %762 = vst [vmem:[#allocation2 + $0x28] sm:$0x3] %v5315_v0  ;;  %763 = vst [vmem:[#allocation2 + $0x30] sm:$0xff] %v5315_v0  ;;  %s6419_s22 = smov (!%p5361_p3, %s3788_s22), 1 }
   0xe   : > { %764 = vst [vmem:[#allocation2 + $0x38] sm:$0xff] %v5315_v0  ;;  %765 = vst [vmem:[#allocation2 + $0x40] sm:$0x3] %v5315_v0  ;;  %s4033_s24 = sshll.u32 %s6419_s22, 8  ;;  %s4034_s25 = sshll.u32 %s6419_s22, 7 }
   0xf   : > { %766 = vst [vmem:[#allocation2 + $0x48] sm:$0xff] %v5315_v0  ;;  %767 = vst [vmem:[#allocation2 + $0x50] sm:$0xff] %v5315_v0  ;;  %s5375_s27 = scalar_lea.vmem %s6410_s0, %s4033_s24  ;;  %s6360_s29 = scalar_lea.vmem %s6416_s6, %s4034_s25 }
  0x10   : > { %768 = vst [vmem:[#allocation2 + $0x58] sm:$0x3] %v5315_v0  ;;  %769 = vst [vmem:[#allocation2 + $0x60] sm:$0xff] %v5315_v0  ;;  %v5378_v1 = vld [vmem:[%s5375_s27] sm:$0xff]  ;;  %v5381_v2 = vld [vmem:[%s5375_s27 + $0x8] sm:$0xff] }
  0x11   : > { %770 = vst [vmem:[#allocation2 + $0x68] sm:$0xff] %v5315_v0  ;;  %771 = vst [vmem:[#allocation2 + $0x70] sm:$0x3] %v5315_v0  ;;  %v5384_v3 = vld [vmem:[%s5375_s27 + $0x10] sm:$0xff]  ;;  %v290_v4 = vadd.f32 %v5381_v2, %v5378_v1  ;;  %v327_v5 = vmul.f32 %v5378_v1, %v5378_v1  ;;  %v328_v6 = vmul.f32 %v5381_v2, %v5381_v2  ;;  %v5393_v7 = vld [vmem:[%s5375_s27 + $0x18] sm:$0xff] }
  0x12   : > { %772 = vst [vmem:[#allocation2 + $0x78] sm:$0xff] %v5315_v0  ;;  %773 = vst [vmem:[#allocation2 + $0x80] sm:$0xff] %v5315_v0  ;;  %v329_v8 = vmul.f32 %v5384_v3, %v5384_v3  ;;  %v5399_v10 = vld [vmem:[%s5375_s27 + $0x20] sm:$0xff]  ;;  %v330_v11 = vmul.f32 %v5393_v7, %v5393_v7  ;;  %v5405_v14 = vld [vmem:[%s5375_s27 + $0x28] sm:$0xff] }
  0x13   : > { %774 = vst [vmem:[#allocation2 + $0x88] sm:$0x3] %v5315_v0  ;;  %775 = vst [vmem:[#allocation2 + $0x90] sm:$0xff] %v5315_v0  ;;  %v291_v9 = vadd.f32 %v290_v4, %v5384_v3  ;;  %v359_v12 = vadd.f32 %v328_v6, %v327_v5  ;;  %v331_v15 = vmul.f32 %v5399_v10, %v5399_v10  ;;  %v5411_v18 = vld [vmem:[%s5375_s27 + $0x30] sm:$0xff]  ;;  %v5417_v22 = vld [vmem:[%s5375_s27 + $0x38] sm:$0xff] }
  0x14   : > { %776 = vst [vmem:[#allocation2 + $0x98] sm:$0xff] %v5315_v0  ;;  %777 = vst [vmem:[#allocation2 + $0xa0] sm:$0x3] %v5315_v0  ;;  %v332_v19 = vmul.f32 %v5405_v14, %v5405_v14  ;;  %v5420_v23 = vld [vmem:[%s5375_s27 + $0x40] sm:$0xff]  ;;  %v333_v24 = vmul.f32 %v5411_v18, %v5411_v18  ;;  %v5426_v27 = vld [vmem:[%s5375_s27 + $0x48] sm:$0xff]  ;;  %v334_v28 = vmul.f32 %v5417_v22, %v5417_v22 }
  0x15   : > { %778 = vst [vmem:[#allocation2 + $0xa8] sm:$0xff] %v5315_v0  ;;  %779 = vst [vmem:[#allocation2 + $0xb0] sm:$0xff] %v5315_v0  ;;  %v292_v13 = vadd.f32 %v291_v9, %v5393_v7  ;;  %v360_v16 = vadd.f32 %v359_v12, %v329_v8  ;;  %v5432_v31 = vld [vmem:[%s5375_s27 + $0x50] sm:$0xff]  ;;  %v335_v32 = vmul.f32 %v5420_v23, %v5420_v23  ;;  %v5438_v35 = vld [vmem:[%s5375_s27 + $0x58] sm:$0xff] }
  0x16   : > { %780 = vst [vmem:[#allocation2 + $0xb8] sm:$0x3] %v5315_v0  ;;  %781 = vst [vmem:[#allocation2 + $0xc0] sm:$0xff] %v5315_v0  ;;  %v336_v36 = vmul.f32 %v5426_v27, %v5426_v27  ;;  %v5444_v39 = vld [vmem:[%s5375_s27 + $0x60] sm:$0xff]  ;;  %v337_v40 = vmul.f32 %v5432_v31, %v5432_v31  ;;  %v5450_v43 = vld [vmem:[%s5375_s27 + $0x68] sm:$0xff]  ;;  %v338_v44 = vmul.f32 %v5438_v35, %v5438_v35 }
  0x17   : > { %782 = vst [vmem:[#allocation2 + $0xc8] sm:$0xff] %v5315_v0  ;;  %783 = vst [vmem:[#allocation2 + $0xd0] sm:$0x3] %v5315_v0  ;;  %v293_v17 = vadd.f32 %v292_v13, %v5399_v10  ;;  %v361_v20 = vadd.f32 %v360_v16, %v330_v11  ;;  %v267_v47 = vld [vmem:[%s5375_s27 + $0x70] sm:$0xff]  ;;  %v339_v48 = vmul.f32 %v5444_v39, %v5444_v39  ;;  %v5460_v51 = vld [vmem:[%s5375_s27 + $0x78] sm:$0xff] }
  0x18   : > { %784 = vst [vmem:[#allocation2 + $0xd8] sm:$0xff] %v5315_v0  ;;  %785 = vst [vmem:[#allocation2 + $0xe0] sm:$0xff] %v5315_v0  ;;  %v340_v52 = vmul.f32 %v5450_v43, %v5450_v43  ;;  %v269_v55 = vld [vmem:[%s5375_s27 + $0x80] sm:$0xff]  ;;  %v341_v56 = vmul.f32 %v267_v47, %v267_v47  ;;  %v270_v59 = vld [vmem:[%s5375_s27 + $0x88] sm:$0xff]  ;;  %v342_v60 = vmul.f32 %v5460_v51, %v5460_v51 }
  0x19   : > { %786 = vst [vmem:[#allocation2 + $0xe8] sm:$0x3] %v5315_v0  ;;  %787 = vst [vmem:[#allocation2 + $0xf0] sm:$0xff] %v5315_v0  ;;  %v294_v21 = vadd.f32 %v293_v17, %v5405_v14  ;;  %v362_v25 = vadd.f32 %v361_v20, %v331_v15  ;;  %v271_v63 = vld [vmem:[%s5375_s27 + $0x90] sm:$0xff]  ;;  %v5472_v6 = vld [vmem:[%s5375_s27 + $0x98] sm:$0xff]  ;;  %v344_v8 = vmul.f32 %v270_v59, %v270_v59 }
  0x1a   : > { %788 = vst [vmem:[#allocation2 + $0xf8] sm:$0xff] %v5315_v0  ;;  %789 = vst [vmem:[#allocation2 + $0x100] sm:$0x3] %v5315_v0  ;;  %v5475_v12 = vld [vmem:[%s5375_s27 + $0xa0] sm:$0xff]  ;;  %v345_v13 = vmul.f32 %v271_v63, %v271_v63  ;;  %v5478_v17 = vld [vmem:[%s5375_s27 + $0xa8] sm:$0xff] }
  0x1b   : > { %790 = vst [vmem:[#allocation2 + $0x108] sm:$0xff] %v5315_v0  ;;  %791 = vst [vmem:[#allocation2 + $0x110] sm:$0xff] %v5315_v0  ;;  %v295_v26 = vadd.f32 %v294_v21, %v5411_v18  ;;  %v363_v29 = vadd.f32 %v362_v25, %v332_v19  ;;  %v346_v19 = vmul.f32 %v5472_v6, %v5472_v6 }
  0x1c   : > { %792 = vst [vmem:[#allocation2 + $0x118] sm:$0x3] %v5315_v0  ;;  %793 = vst [vmem:[#allocation2 + $0x120] sm:$0xff] %v5315_v0  ;;  %v347_v25 = vmul.f32 %v5475_v12, %v5475_v12 }
  0x1d   : > { %794 = vst [vmem:[#allocation2 + $0x128] sm:$0xff] %v5315_v0  ;;  %795 = vst [vmem:[#allocation2 + $0x130] sm:$0x3] %v5315_v0  ;;  %v296_v30 = vadd.f32 %v295_v26, %v5417_v22  ;;  %v364_v33 = vadd.f32 %v363_v29, %v333_v24  ;;  %v5484_v24 = vld [vmem:[%s5375_s27 + $0xb0] sm:$0xff]  ;;  %v5490_v29 = vld [vmem:[%s5375_s27 + $0xb8] sm:$0xff] }
  0x1e   : > { %796 = vst [vmem:[#allocation2 + $0x138] sm:$0xff] %v5315_v0  ;;  %797 = vst [vmem:[#allocation2 + $0x140] sm:$0xff] %v5315_v0 }
  0x1f   : > { %798 = vst [vmem:[#allocation2 + $0x148] sm:$0x3] %v5315_v0  ;;  %808 = vst [vmem:[#allocation2 + $0x198] sm:$0xff] %v5315_v0  ;;  %v297_v34 = vadd.f32 %v296_v30, %v5420_v23  ;;  %v365_v37 = vadd.f32 %v364_v33, %v334_v28  ;;  %v348_v30 = vmul.f32 %v5478_v17, %v5478_v17 }
  0x20   : > { %809 = vst [vmem:[#allocation2 + $0x1a0] sm:$0xff] %v5315_v0  ;;  %810 = vst [vmem:[#allocation2 + $0x1a8] sm:$0x3] %v5315_v0  ;;  %v343_v0 = vmul.f32 %v269_v55, %v269_v55 }
  0x21   : > { %v298_v38 = vadd.f32 %v297_v34, %v5426_v27  ;;  %v366_v41 = vadd.f32 %v365_v37, %v335_v32  ;;  %v5496_v34 = vld [vmem:[%s5375_s27 + $0xc0] sm:$0xff] }
  0x23   : > { %v299_v42 = vadd.f32 %v298_v38, %v5432_v31  ;;  %v367_v45 = vadd.f32 %v366_v41, %v336_v36  ;;  %v349_v36 = vmul.f32 %v5484_v24, %v5484_v24  ;;  %v350_v41 = vmul.f32 %v5490_v29, %v5490_v29 }
  0x25   : > { %v300_v46 = vadd.f32 %v299_v42, %v5438_v35  ;;  %v368_v49 = vadd.f32 %v367_v45, %v337_v40  ;;  %v5502_v40 = vld [vmem:[%s5375_s27 + $0xc8] sm:$0xff]  ;;  %v5508_v45 = vld [vmem:[%s5375_s27 + $0xd0] sm:$0xff] }
  0x27   : > { %v301_v50 = vadd.f32 %v300_v46, %v5444_v39  ;;  %v369_v53 = vadd.f32 %v368_v49, %v338_v44  ;;  %v351_v46 = vmul.f32 %v5496_v34, %v5496_v34  ;;  %v5514_v49 = vld [vmem:[%s5375_s27 + $0xd8] sm:$0xff] }
  0x29   : > { %v302_v54 = vadd.f32 %v301_v50, %v5450_v43  ;;  %v370_v57 = vadd.f32 %v369_v53, %v339_v48  ;;  %v352_v50 = vmul.f32 %v5502_v40, %v5502_v40 }
  0x2b   : > { %v303_v58 = vadd.f32 %v302_v54, %v267_v47  ;;  %v371_v61 = vadd.f32 %v370_v57, %v340_v52  ;;  %v5520_v54 = vld [vmem:[%s5375_s27 + $0xe0] sm:$0xff] }
  0x2d   : > { %v304_v62 = vadd.f32 %v303_v58, %v5460_v51  ;;  %v372_v4 = vadd.f32 %v371_v61, %v341_v56  ;;  %v5526_v58 = vld [vmem:[%s5375_s27 + $0xe8] sm:$0xff] }
  0x2f   : > { %v305_v5 = vadd.f32 %v304_v62, %v269_v55  ;;  %v373_v9 = vadd.f32 %v372_v4, %v342_v60  ;;  %v353_v55 = vmul.f32 %v5508_v45, %v5508_v45  ;;  %v355_v62 = vmul.f32 %v5520_v54, %v5520_v54  ;;  %v5535_v4 = vld [vmem:[%s5375_s27 + $0xf0] sm:$0xff] }
  0x31   : > { %v306_v11 = vadd.f32 %v305_v5, %v270_v59  ;;  %v374_v15 = vadd.f32 %v373_v9, %v343_v0  ;;  %v354_v59 = vmul.f32 %v5514_v49, %v5514_v49  ;;  %v356_v5 = vmul.f32 %v5526_v58, %v5526_v58 }
  0x33   : > { %v307_v16 = vadd.f32 %v306_v11, %v271_v63  ;;  %v375_v20 = vadd.f32 %v374_v15, %v344_v8  ;;  %v5541_v11 = vld [vmem:[%s5375_s27 + $0xf8] sm:$0xff] }
  0x35   : > { %v308_v21 = vadd.f32 %v307_v16, %v5472_v6  ;;  %v376_v26 = vadd.f32 %v375_v20, %v345_v13  ;;  %v357_v13 = vmul.f32 %v5535_v4, %v5535_v4 }
  0x37   : > { %v309_v28 = vadd.f32 %v308_v21, %v5475_v12  ;;  %v377_v32 = vadd.f32 %v376_v26, %v346_v19  ;;  %v358_v19 = vmul.f32 %v5541_v11, %v5541_v11 }
  0x39   : > { %v310_v33 = vadd.f32 %v309_v28, %v5478_v17  ;;  %v378_v37 = vadd.f32 %v377_v32, %v347_v25 }
  0x3b   : > { %v311_v38 = vadd.f32 %v310_v33, %v5484_v24  ;;  %v379_v42 = vadd.f32 %v378_v37, %v348_v30 }
  0x3d   : > { %v312_v44 = vadd.f32 %v311_v38, %v5490_v29  ;;  %v380_v47 = vadd.f32 %v379_v42, %v349_v36  ;;  %v5552_v42 = vld [vmem:[%s6413_s3] sm:$0xff] }
  0x3f   : > { %v313_v48 = vadd.f32 %v312_v44, %v5496_v34  ;;  %v381_v52 = vadd.f32 %v380_v47, %v350_v41  ;;  %v5557_v44 = vld [vmem:[%s6413_s3 + $0x10] sm:$0xf] }
  0x41   : > { %v314_v53 = vadd.f32 %v313_v48, %v5502_v40  ;;  %v382_v56 = vadd.f32 %v381_v52, %v351_v46  ;;  %v5562_v48 = vld [vmem:[%s6413_s3 + $0x8] sm:$0xff] }
  0x43   : > { %v315_v57 = vadd.f32 %v314_v53, %v5508_v45  ;;  %v383_v60 = vadd.f32 %v382_v56, %v352_v50 }
  0x45   : > { %v316_v61 = vadd.f32 %v315_v57, %v5514_v49  ;;  %v384_v63 = vadd.f32 %v383_v60, %v353_v55 }
  0x47   : > { %v317_v0 = vadd.f32 %v316_v61, %v5520_v54  ;;  %v385_v8 = vadd.f32 %v384_v63, %v354_v59  ;;  %v5091_v63 = vld [vmem:[%s6414_s4 + $0x40] sm:$0xff]  }
  0x48   : > { %4378 = vmatprep.subr.bf16.mxu1 %v5091_v63 }
  0x49   : > { %v318_v9 = vadd.f32 %v317_v0, %v5526_v58  ;;  %v386_v15 = vadd.f32 %v385_v8, %v355_v62  ;;  %v5092_v0 = vld [vmem:[%s6414_s4 + $0x100] sm:$0xff]   ;;  %4379 = vmatpush3.bf16.msra.mxu1 %v5091_v63  ;;  %v5094_v8 = vld [vmem:[%s6414_s4 + $0x108] sm:$0xff]  }
  0x4a   : > { %4570 = vmatprep.subr.bf16.mxu0 %v5092_v0 }
  0x4b   : > { %v319_v16 = vadd.f32 %v318_v9, %v5535_v4  ;;  %v387_v20 = vadd.f32 %v386_v15, %v356_v5  ;;  %4571 = vmatpush3.bf16.msra.mxu0 %v5092_v0  ;;  %v5093_v5 = vld [vmem:[%s6414_s4 + $0x48] sm:$0xff]   ;;  %v5095_v9 = vld [vmem:[%s6414_s4 + $0x50] sm:$0xff]   ;;  %v5097_v15 = vld [vmem:[%s6414_s4 + $0x58] sm:$0xff]  }
  0x4c   : > { %4380 = vmatprep.subr.bf16.mxu1 %v5093_v5  ;;  %4572 = vmatprep.subr.bf16.mxu0 %v5094_v8 }
  0x4d   : > { %v320_v21 = vadd.f32 %v319_v16, %v5541_v11  ;;  %v388_v25 = vadd.f32 %v387_v20, %v357_v13  ;;  %4381 = vmatpush3.bf16.msra.mxu1 %v5093_v5  ;;  %v5096_v13 = vld [vmem:[%s6414_s4 + $0x110] sm:$0xff]   ;;  %v5098_v16 = vld [vmem:[%s6414_s4 + $0x118] sm:$0xff]   ;;  %v5100_v20 = vld [vmem:[%s6414_s4 + $0x120] sm:$0xff]  }
  0x4e   : > { %4382 = vmatprep.subr.bf16.mxu1 %v5095_v9 }
  0x4f   : > { %v321_v26 = vrot.slane %v320_v21, 4  ;;  %v389_v28 = vadd.f32 %v388_v25, %v358_v19  ;;  %4573 = vmatpush3.bf16.msra.mxu0 %v5094_v8  ;;  %v5099_v19 = vld [vmem:[%s6414_s4 + $0x60] sm:$0xff]   ;;  %v5102_v25 = vld [vmem:[%s6414_s4 + $0x128] sm:$0xff]  }
  0x50   : > { %4574 = vmatprep.subr.bf16.mxu0 %v5096_v13 }
  0x51   : > { %v322_v30 = vadd.f32 %v321_v26, %v320_v21  ;;  %v390_v32 = vrot.slane %v389_v28, 4  ;;  %4383 = vmatpush3.bf16.msra.mxu1 %v5095_v9  ;;  %v5101_v21 = vld [vmem:[%s6414_s4 + $0x68] sm:$0xff]   ;;  %v5103_v26 = vld [vmem:[%s6414_s4 + $0x70] sm:$0xff]  }
  0x52   : > { %4384 = vmatprep.subr.bf16.mxu1 %v5097_v15 }
  0x53   : > { %v323_v33 = vrot.slane %v322_v30, 2  ;;  %v391_v36 = vadd.f32 %v390_v32, %v389_v28  ;;  %4575 = vmatpush3.bf16.msra.mxu0 %v5096_v13  ;;  %v5104_v28 = vld [vmem:[%s6414_s4 + $0x130] sm:$0xff]   ;;  %v5106_v32 = vld [vmem:[%s6414_s4 + $0x138] sm:$0xff]  }
  0x54   : > { %4576 = vmatprep.subr.bf16.mxu0 %v5098_v16 }
  0x55   : > { %v324_v37 = vadd.f32 %v323_v33, %v322_v30  ;;  %v392_v38 = vrot.slane %v391_v36, 2  ;;  %4385 = vmatpush3.bf16.msra.mxu1 %v5097_v15  ;;  %v5105_v30 = vld [vmem:[%s6414_s4 + $0x78] sm:$0xff]   ;;  %v908_v33 = vld [vmem:[#allocation2 + $0x1] sm:$0xff] }
  0x56   : > { %4386 = vmatprep.subr.bf16.mxu1 %v5099_v19 }
  0x57   : > { %v325_v41 = vrot.slane %v324_v37, 1  ;;  %v393_v46 = vadd.f32 %v392_v38, %v391_v36  ;;  %4577 = vmatpush3.bf16.msra.mxu0 %v5098_v16  ;;  %v909_v36 = vld [vmem:[#allocation2 + $0x9] sm:$0xff]  ;;  %v5623_v38 = vld [vmem:[%s6414_s4 + $0x140] sm:$0xff]  }
  0x58   : > { %4578 = vmatprep.subr.bf16.mxu0 %v5100_v20 }
  0x59   : > { %v326_v47 = vadd.f32 %v325_v41, %v324_v37  ;;  %v394_v50 = vrot.slane %v393_v46, 1  ;;  %4387 = vmatpush3.bf16.msra.mxu1 %v5099_v19  ;;  %v940_v37 = vpack.c.bf16 %v909_v36, %v908_v33  ;;  %v5628_v41 = vld [vmem:[%s6414_s4] sm:$0xff]  }
  0x5a   : > { %4388 = vmatprep.subr.bf16.mxu1 %v5101_v21 }
  0x5b   : > { %v396_v52 = vmul.f32 %v326_v47, %v5552_v42  ;;  %v398_v53 = vmul.f32 %v326_v47, %v5557_v44  ;;  %v395_v55 = vadd.f32 %v394_v50, %v393_v46  ;;  %v397_v57 = vmul.f32 %v326_v47, %v5562_v48  ;;  %4579 = vmatpush3.bf16.msra.mxu0 %v5100_v20 }
  0x5c   : > { %4580 = vmatprep.subr.bf16.mxu0 %v5102_v25  ;;  %4394 = vmatprep.mubr.bf16.mxu1 %v940_v37 }
  0x5d   : > { %399 = vadd.xlane.f32.xlu0 %v396_v52  ;;  %v404_v56 = vsel %vm403_vm0, %v398_v53, 0.0  ;;  %v410_v59 = vmul.f32 %v395_v55, %v5552_v42  ;;  %v412_v60 = vmul.f32 %v395_v55, %v5557_v44  ;;  %v411_v61 = vmul.f32 %v395_v55, %v5562_v48  ;;  %4389 = vmatpush3.bf16.msra.mxu1 %v5101_v21 }
  0x5e   : > { %405 = vadd.xlane.f32.xlu1 %v404_v56  ;;  %4390 = vmatprep.subr.bf16.mxu1 %v5103_v26 }
  0x5f   : > { %v417_v62 = vsel %vm403_vm0, %v412_v60, 0.0  ;;  %4581 = vmatpush3.bf16.msra.mxu0 %v5102_v25 }
  0x60   : > { %4582 = vmatprep.subr.bf16.mxu0 %v5104_v28 }
  0x61   : > { %401 = vadd.xlane.f32.xlu0 %v397_v57  ;;  %4391 = vmatpush3.bf16.msra.mxu1 %v5103_v26 }
  0x62   : > { %413 = vadd.xlane.f32.xlu1 %v410_v59  ;;  %4392 = vmatprep.subr.bf16.mxu1 %v5105_v30 }
  0x63   : > { %4583 = vmatpush3.bf16.msra.mxu0 %v5104_v28 }
  0x64   : > { %4584 = vmatprep.subr.bf16.mxu0 %v5106_v32 }
  0x65   : > { %415 = vadd.xlane.f32.xlu0 %v411_v61  ;;  %4393 = vmatpush3.bf16.msra.mxu1 %v5105_v30 }
  0x66   : > { %418 = vadd.xlane.f32.xlu1 %v417_v62  ;;  %4426 = vmatprep.subr.bf16.mxu1 %v5628_v41 }
  0x67   : > { %4585 = vmatpush3.bf16.msra.mxu0 %v5106_v32 }
  0x68   : > { %4618 = vmatprep.subr.bf16.mxu0 %v5623_v38 }
  0xea   : > { %v400_v46 = vpop.xlane.xlu0 %399 }
  0xeb   : > { %v406_v47 = vpop.xlane.xlu1 %405  ;;  %v407_v50 = vmul.f32 0.00390625, %v400_v46 }
  0xec   : > { %v409_v57 = vmul.f32 0.00390625, %v406_v47 }
  0xed   : > { %v423_v56 = vmul.f32 %v407_v50, %v407_v50  ;;  %v432_v30 = vmul.f32 %v407_v50, %v5552_v42  ;;  %v491_v50 = vlaneseq }
  0xee   : > { %v402_v52 = vpop.xlane.xlu0 %401  ;;  %v425_v5 = vmul.f32 %v409_v57, %v409_v57  ;;  %v434_v33 = vmul.f32 %v409_v57, %v5557_v44  ;;  %v285_v57 = vld [vmem:[%s6411_s1] sm:$0x1] }
  0xef   : > { %v408_v53 = vmul.f32 0.00390625, %v402_v52  ;;  %v414_v55 = vpop.xlane.xlu1 %413 }
  0xf0   : > { %v420_v59 = vmul.f32 0.00390625, %v414_v55  ;;  %v436_v47 = vsel %vm403_vm0, %v434_v33, 0.0 }
  0xf1   : > { %v424_v62 = vmul.f32 %v408_v53, %v408_v53  ;;  %v433_v25 = vmul.f32 %v408_v53, %v5562_v48 }
  0xf2   : > { %v426_v60 = vsub.f32 %v420_v59, %v423_v56  ;;  %v416_v61 = vpop.xlane.xlu0 %415 }
  0xf3   : > { %v421_v63 = vmul.f32 0.00390625, %v416_v61  ;;  %v419_v0 = vpop.xlane.xlu1 %418  ;;  %v435_v37 = vadd.f32 %v433_v25, %v432_v30 }
  0xf4   : > { %v422_v8 = vmul.f32 0.00390625, %v419_v0  ;;  %v429_v9 = vmax.f32 %v426_v60, 0.0 }
  0xf5   : > { %v427_v13 = vsub.f32 %v421_v63, %v424_v62  ;;  %v437_v52 = vadd.f32 %v436_v47, %v435_v37 }
  0xf6   : > { %v428_v15 = vsub.f32 %v422_v8, %v425_v5  ;;  %v444_v20 = vmul.f32 %v429_v9, %v5552_v42 }
  0xf7   : > { %v430_v16 = vmax.f32 %v427_v13, 0.0  ;;  %v438_v56 = vrot.slane %v437_v52, 4 }
  0xf8   : > { %v431_v19 = vmax.f32 %v428_v15, 0.0 }
  0xf9   : > { %v445_v21 = vmul.f32 %v430_v16, %v5562_v48  ;;  %v439_v48 = vadd.f32 %v438_v56, %v437_v52 }
  0xfa   : > { %v446_v26 = vmul.f32 %v431_v19, %v5557_v44  ;;  %v492_v44 = vshrl.u32 %v491_v50, 7 }
  0xfb   : > { %v447_v28 = vadd.f32 %v445_v21, %v444_v20  ;;  %v440_v62 = vrot.slane %v439_v48, 2 }
  0xfc   : > { %v448_v32 = vsel %vm403_vm0, %v446_v26, 0.0  ;;  %v493_v8 = vsub.s32 0, %v492_v44 }
  0xfd   : > { %v449_v36 = vadd.f32 %v448_v32, %v447_v28  ;;  %v441_v42 = vadd.f32 %v440_v62, %v439_v48 }
  0xff   : > { %v450_v46 = vrot.slane %v449_v36, 4  ;;  %v442_v0 = vrot.slane %v441_v42, 1 }
 0x101   : > { %v451_v55 = vadd.f32 %v450_v46, %v449_v36  ;;  %v5643_v5 = vadd.f32 %v442_v0, %v441_v42 }
 0x103   : > { %v452_v59 = vrot.slane %v451_v55, 2  ;;  %v477_v15 = vsub.f32 %v5472_v6, %v5643_v5  ;;  %v478_v16 = vsub.f32 %v5475_v12, %v5643_v5  ;;  %v479_v19 = vsub.f32 %v5478_v17, %v5643_v5  ;;  %v5664_v12 = vld [vmem:[%s6412_s2] ss:$0 sm:$0xff] }
 0x104   : > { %v480_v21 = vsub.f32 %v5484_v24, %v5643_v5  ;;  %v481_v25 = vsub.f32 %v5490_v29, %v5643_v5  ;;  %v482_v26 = vsub.f32 %v5496_v34, %v5643_v5  ;;  %v483_v6 = vsub.f32 %v5502_v40, %v5643_v5 }
 0x105   : > { %v453_v60 = vadd.f32 %v452_v59, %v451_v55  ;;  %v484_v17 = vsub.f32 %v5508_v45, %v5643_v5  ;;  %v485_v24 = vsub.f32 %v5514_v49, %v5643_v5  ;;  %v486_v33 = vsub.f32 %v5520_v54, %v5643_v5 }
 0x106   : > { %v487_v49 = vsub.f32 %v5526_v58, %v5643_v5  ;;  %v488_v37 = vsub.f32 %v5535_v4, %v5643_v5  ;;  %v473_v58 = vsub.f32 %v5460_v51, %v5643_v5  ;;  %v489_v4 = vsub.f32 %v5541_v11, %v5643_v5 }
 0x107   : > { %v454_v53 = vrot.slane %v453_v60, 1 }
 0x109   : > { %v455_v61 = vadd.f32 %v454_v53, %v453_v60 }
 0x10b   : > { %v456_v63 = vadd.f32 1e-06, %v455_v61 }
 0x10d   : > { %5163 = vrsqrt.f32 %v456_v63 }
 0x117   : > { %v5164_v9 = vpop.eup %5163 }
 0x118   : > { %v490_v13 = vmul.f32 %v5164_v9, %v285_v57 }
 0x11a   : > { %v5651_v20 = vrot.slane %v490_v13, %v493_v8  ;;  %v458_v8 = vsub.f32 %v5378_v1, %v5643_v5 }
 0x11c   : > { %v514_v28 = vmul.f32 %v5651_v20, %v477_v15  ;;  %v515_v29 = vmul.f32 %v5651_v20, %v478_v16  ;;  %v516_v34 = vmul.f32 %v5651_v20, %v479_v19  ;;  %v517_v30 = vmul.f32 %v5651_v20, %v480_v21 }
 0x11d   : > { %v518_v40 = vmul.f32 %v5651_v20, %v481_v25  ;;  %v519_v32 = vmul.f32 %v5651_v20, %v482_v26  ;;  %v520_v45 = vmul.f32 %v5651_v20, %v483_v6  ;;  %v521_v36 = vmul.f32 %v5651_v20, %v484_v17 }
 0x11e   : > { %v522_v46 = vmul.f32 %v5651_v20, %v485_v24  ;;  %v5686_v47 = vadd.f32 %v5664_v12, %v514_v28  ;;  %v5689_v52 = vadd.f32 %v5664_v12, %v515_v29  ;;  %v5692_v54 = vadd.f32 %v5664_v12, %v516_v34 }
 0x11f   : > { %v5695_v55 = vadd.f32 %v5664_v12, %v517_v30  ;;  %v5698_v56 = vadd.f32 %v5664_v12, %v518_v40  ;;  %v523_v59 = vmul.f32 %v5651_v20, %v486_v33  ;;  %v5706_v60 = vadd.f32 %v5664_v12, %v519_v32 }
 0x120   : > { %v524_v48 = vmul.f32 %v5651_v20, %v487_v49  ;;  %v525_v53 = vmul.f32 %v5651_v20, %v488_v37  ;;  %v5711_v61 = vadd.f32 %v5664_v12, %v520_v45  ;;  %v5714_v62 = vadd.f32 %v5664_v12, %v521_v36 }
 0x121   : > { %v584_v63 = vsub.f32 0.0, %v5686_v47  ;;  %v585_v42 = vsub.f32 0.0, %v5689_v52  ;;  %v586_v11 = vsub.f32 0.0, %v5692_v54  ;;  %v587_v50 = vsub.f32 0.0, %v5695_v55 }
 0x122   : > { %v526_v0 = vmul.f32 %v5651_v20, %v489_v4  ;;  %v5722_v44 = vadd.f32 %v5664_v12, %v522_v46  ;;  %v588_v57 = vsub.f32 0.0, %v5698_v56  ;;  %v5728_v9 = vadd.f32 %v5664_v12, %v523_v59 }
 0x123   : > { %v589_v13 = vsub.f32 0.0, %v5706_v60  ;;  %v459_v15 = vsub.f32 %v5381_v2, %v5643_v5  ;;  %v460_v16 = vsub.f32 %v5384_v3, %v5643_v5  ;;  %v5736_v19 = vadd.f32 %v5664_v12, %v524_v48 }
 0x124   : > { %v590_v21 = vsub.f32 0.0, %v5711_v61  ;;  %v635_v25 = vmul.f32 1.442695, %v584_v63  ;;  %v637_v26 = vmul.f32 1.442695, %v585_v42  ;;  %v5740_v1 = vadd.f32 %v5664_v12, %v525_v53 }
 0x125   : > { %v591_v6 = vsub.f32 0.0, %v5714_v62  ;;  %v639_v17 = vmul.f32 1.442695, %v586_v11  ;;  %v641_v24 = vmul.f32 1.442695, %v587_v50  ;;  %v5744_v28 = vadd.f32 %v5664_v12, %v526_v0 }
 0x126   : > { %v592_v2 = vsub.f32 0.0, %v5722_v44  ;;  %5165 = vpow2.f32 %v635_v25  ;;  %v643_v3 = vmul.f32 1.442695, %v588_v57  ;;  %v593_v29 = vsub.f32 0.0, %v5728_v9 }
 0x127   : > { %5167 = vpow2.f32 %v637_v26  ;;  %v645_v34 = vmul.f32 1.442695, %v589_v13  ;;  %v461_v30 = vsub.f32 %v5393_v7, %v5643_v5  ;;  %v594_v40 = vsub.f32 0.0, %v5736_v19 }
 0x128   : > { %5169 = vpow2.f32 %v639_v17  ;;  %v647_v32 = vmul.f32 1.442695, %v590_v21  ;;  %v495_v33 = vmul.f32 %v5651_v20, %v458_v8  ;;  %v595_v45 = vsub.f32 0.0, %v5740_v1 }
 0x129   : > { %5171 = vpow2.f32 %v641_v24  ;;  %v649_v36 = vmul.f32 1.442695, %v591_v6  ;;  %v496_v49 = vmul.f32 %v5651_v20, %v459_v15  ;;  %v596_v37 = vsub.f32 0.0, %v5744_v28 }
 0x12a   : > { %5173 = vpow2.f32 %v643_v3  ;;  %v651_v46 = vmul.f32 1.442695, %v592_v2  ;;  %v462_v4 = vsub.f32 %v5399_v10, %v5643_v5  ;;  %v653_v7 = vmul.f32 1.442695, %v593_v29 }
 0x12b   : > { %5175 = vpow2.f32 %v645_v34  ;;  %v463_v59 = vsub.f32 %v5405_v14, %v5643_v5  ;;  %v464_v48 = vsub.f32 %v5411_v18, %v5643_v5  ;;  %v655_v53 = vmul.f32 1.442695, %v594_v40 }
 0x12c   : > { %5177 = vpow2.f32 %v647_v32  ;;  %v5762_v63 = vadd.f32 %v5664_v12, %v495_v33  ;;  %v465_v42 = vsub.f32 %v5417_v22, %v5643_v5  ;;  %v657_v11 = vmul.f32 1.442695, %v595_v45 }
 0x12d   : > { %5179 = vpow2.f32 %v649_v36  ;;  %v5767_v10 = vadd.f32 %v5664_v12, %v496_v49  ;;  %v497_v50 = vmul.f32 %v5651_v20, %v460_v16  ;;  %v659_v14 = vmul.f32 1.442695, %v596_v37 }
 0x12e   : > { %5181 = vpow2.f32 %v651_v46  ;;  %v498_v0 = vmul.f32 %v5651_v20, %v461_v30  ;;  %v466_v18 = vsub.f32 %v5420_v23, %v5643_v5  ;;  %v499_v57 = vmul.f32 %v5651_v20, %v462_v4 }
 0x12f   : > { %5183 = vpow2.f32 %v653_v7  ;;  %v467_v22 = vsub.f32 %v5426_v27, %v5643_v5  ;;  %v468_v8 = vsub.f32 %v5432_v31, %v5643_v5  ;;  %v565_v15 = vsub.f32 0.0, %v5762_v63 }
 0x130   : > { %v5166_v13 = vpop.eup %5165  ;;  %5185 = vpow2.f32 %v655_v53  ;;  %v500_v16 = vmul.f32 %v5651_v20, %v463_v59  ;;  %v469_v21 = vsub.f32 %v5438_v35, %v5643_v5  ;;  %v566_v26 = vsub.f32 0.0, %v5767_v10 }
 0x131   : > { %v5168_v25 = vpop.eup %5167  ;;  %5187 = vpow2.f32 %v657_v11  ;;  %v680_v23 = vadd.f32 1.0, %v5166_v13  ;;  %v5784_v6 = vadd.f32 %v5664_v12, %v497_v50  ;;  %v5787_v17 = vadd.f32 %v5664_v12, %v498_v0 }
 0x132   : > { %v5170_v27 = vpop.eup %5169  ;;  %5189 = vpow2.f32 %v659_v14  ;;  %v681_v31 = vadd.f32 1.0, %v5168_v25  ;;  %v470_v24 = vsub.f32 %v5444_v39, %v5643_v5  ;;  %v5792_v35 = vadd.f32 %v5664_v12, %v499_v57 }
 0x133   : > { %v5172_v2 = vpop.eup %5171  ;;  %v682_v3 = vadd.f32 1.0, %v5170_v27  ;;  %5191 = vrcp.f32 %v680_v23  ;;  %v471_v29 = vsub.f32 %v5450_v43, %v5643_v5  ;;  %v597_v40 = vmul.f32 1.442695, %v565_v15 }
 0x134   : > { %v5174_v34 = vpop.eup %5173  ;;  %v683_v30 = vadd.f32 1.0, %v5172_v2  ;;  %5193 = vrcp.f32 %v681_v31  ;;  %v5797_v32 = vadd.f32 %v5664_v12, %v500_v16  ;;  %v599_v39 = vmul.f32 1.442695, %v566_v26 }
 0x135   : > { %v5176_v33 = vpop.eup %5175  ;;  %v684_v45 = vadd.f32 1.0, %v5174_v34  ;;  %5195 = vrcp.f32 %v682_v3  ;;  %v567_v36 = vsub.f32 0.0, %v5784_v6  ;;  %v568_v46 = vsub.f32 0.0, %v5787_v17 }
 0x136   : > { %v5178_v49 = vpop.eup %5177  ;;  %v685_v37 = vadd.f32 1.0, %v5176_v33  ;;  %5197 = vrcp.f32 %v683_v30  ;;  %v501_v4 = vmul.f32 %v5651_v20, %v464_v48  ;;  %v569_v53 = vsub.f32 0.0, %v5792_v35 }
 0x137   : > { %v5180_v7 = vpop.eup %5179  ;;  %v686_v59 = vadd.f32 1.0, %v5178_v49  ;;  %5199 = vrcp.f32 %v684_v45  ;;  %v502_v11 = vmul.f32 %v5651_v20, %v465_v42  ;;  %v570_v0 = vsub.f32 0.0, %v5797_v32 }
 0x138   : > { %v5182_v50 = vpop.eup %5181  ;;  %v687_v14 = vadd.f32 1.0, %v5180_v7  ;;  %5201 = vrcp.f32 %v685_v37  ;;  %v503_v57 = vmul.f32 %v5651_v20, %v466_v18  ;;  %v504_v16 = vmul.f32 %v5651_v20, %v467_v22 }
 0x139   : > { %v5184_v13 = vpop.eup %5183  ;;  %v688_v15 = vadd.f32 1.0, %v5182_v50  ;;  %5203 = vrcp.f32 %v686_v59  ;;  %v505_v48 = vmul.f32 %v5651_v20, %v468_v8  ;;  %v5809_v26 = vadd.f32 %v5664_v12, %v501_v4 }
 0x13a   : > { %v5186_v25 = vpop.eup %5185  ;;  %v689_v23 = vadd.f32 1.0, %v5184_v13  ;;  %5205 = vrcp.f32 %v687_v14  ;;  %v506_v42 = vmul.f32 %v5651_v20, %v469_v21  ;;  %v601_v2 = vmul.f32 1.442695, %v567_v36 }
 0x13b   : > { %v5188_v27 = vpop.eup %5187  ;;  %v690_v31 = vadd.f32 1.0, %v5186_v25  ;;  %5207 = vrcp.f32 %v688_v15  ;;  %v5813_v18 = vadd.f32 %v5664_v12, %v502_v11  ;;  %v5816_v22 = vadd.f32 %v5664_v12, %v503_v57 }
 0x13c   : > { %v5190_v3 = vpop.eup %5189  ;;  %v691_v34 = vadd.f32 1.0, %v5188_v27  ;;  %5209 = vrcp.f32 %v689_v23  ;;  %v507_v8 = vmul.f32 %v5651_v20, %v470_v24  ;;  %v5820_v21 = vadd.f32 %v5664_v12, %v504_v16 }
 0x13d   : > { %v5192_v30 = vpop.eup %5191  ;;  %v692_v33 = vadd.f32 1.0, %v5190_v3  ;;  %5211 = vrcp.f32 %v690_v31  ;;  %v5823_v45 = vadd.f32 %v5664_v12, %v505_v48  ;;  %v603_v49 = vmul.f32 1.442695, %v568_v46 }
 0x13e   : > { %v5194_v36 = vpop.eup %5193  ;;  %5213 = vrcp.f32 %v691_v34  ;;  %v571_v37 = vsub.f32 0.0, %v5809_v26  ;;  %v5827_v4 = vadd.f32 %v5664_v12, %v506_v42  ;;  %v605_v24 = vmul.f32 1.442695, %v569_v53 }
 0x13f   : > { %v5196_v7 = vpop.eup %5195  ;;  %5215 = vrcp.f32 %v692_v33  ;;  %v607_v59 = vmul.f32 1.442695, %v570_v0  ;;  %v572_v11 = vsub.f32 0.0, %v5813_v18  ;;  %v573_v57 = vsub.f32 0.0, %v5816_v22 }
 0x140   : > { %v5198_v50 = vpop.eup %5197  ;;  %v5831_v14 = vmul.f32 %v5196_v7, %v5692_v54  ;;  %5217 = vpow2.f32 %v597_v40  ;;  %v5835_v46 = vadd.f32 %v5664_v12, %v507_v8  ;;  %v574_v53 = vsub.f32 0.0, %v5820_v21 }
 0x141   : > { %v5200_v13 = vpop.eup %5199  ;;  %v5838_v15 = vmul.f32 %v5198_v50, %v5695_v55  ;;  %5219 = vpow2.f32 %v599_v39  ;;  %v575_v0 = vsub.f32 0.0, %v5823_v45  ;;  %v609_v40 = vmul.f32 1.442695, %v571_v37  ;;  %v5293_v39 = vld [vmem:[%s5375_s27 + $0x70] sm:$0xff] }
 0x142   : > { %v5202_v16 = vpop.eup %5201  ;;  %v5843_v54 = vmul.f32 %v5200_v13, %v5698_v56  ;;  %833 = vst [vmem:[#allocation2 + $0x111] sm:$0xff] %v5831_v14  ;;  %5221 = vpow2.f32 %v601_v2  ;;  %v576_v48 = vsub.f32 0.0, %v5827_v4  ;;  %v611_v55 = vmul.f32 1.442695, %v572_v11 }
 0x143   : > { %v5204_v25 = vpop.eup %5203  ;;  %v5848_v23 = vmul.f32 %v5202_v16, %v5706_v60  ;;  %834 = vst [vmem:[#allocation2 + $0x121] sm:$0xff] %v5838_v15  ;;  %5223 = vpow2.f32 %v603_v49  ;;  %v472_v42 = vsub.f32 %v5293_v39, %v5643_v5  ;;  %v613_v31 = vmul.f32 1.442695, %v573_v57  ;;  %v5294_v57 = vld [vmem:[%s5375_s27 + $0x80] sm:$0xff] }
 0x144   : > { %v5206_v27 = vpop.eup %5205  ;;  %v5854_v56 = vmul.f32 %v5204_v25, %v5711_v61  ;;  %835 = vst [vmem:[#allocation2 + $0x129] sm:$0xff] %v5843_v54  ;;  %5225 = vpow2.f32 %v605_v24  ;;  %v577_v2 = vsub.f32 0.0, %v5835_v46  ;;  %v615_v34 = vmul.f32 1.442695, %v574_v53  ;;  %v5296_v25 = vld [vmem:[%s5375_s27 + $0x90] sm:$0xff] }
 0x145   : > { %v5208_v3 = vpop.eup %5207  ;;  %v5859_v60 = vmul.f32 %v5206_v27, %v5714_v62  ;;  %836 = vst [vmem:[#allocation2 + $0x139] sm:$0xff] %v5848_v23  ;;  %5227 = vpow2.f32 %v607_v59  ;;  %v617_v8 = vmul.f32 1.442695, %v575_v0  ;;  %v619_v61 = vmul.f32 1.442695, %v576_v48 }
 0x146   : > { %v5210_v33 = vpop.eup %5209  ;;  %v5863_v49 = vmul.f32 %v5208_v3, %v5722_v44  ;;  %837 = vst [vmem:[#allocation2 + $0x141] sm:$0xff] %v5854_v56  ;;  %5229 = vpow2.f32 %v609_v40  ;;  %v5867_v37 = vmul.f32 %v5192_v30, %v5686_v47  ;;  %v5874_v24 = vmul.f32 %v5194_v36, %v5689_v52 }
 0x147   : > { %v5212_v7 = vpop.eup %5211  ;;  %v5870_v62 = vmul.f32 %v5210_v33, %v5728_v9  ;;  %838 = vst [vmem:[#allocation2 + $0x151] sm:$0xff] %v5859_v60  ;;  %5231 = vpow2.f32 %v611_v55  ;;  %v952_v44 = vpack.c.bf16 %v5843_v54, %v5838_v15  ;;  %v621_v47 = vmul.f32 1.442695, %v577_v2 }
 0x148   : > { %v5214_v59 = vpop.eup %5213  ;;  %v5879_v11 = vmul.f32 %v5212_v7, %v5736_v19  ;;  %839 = vst [vmem:[#allocation2 + $0x159] sm:$0xff] %v5863_v49  ;;  %5233 = vpow2.f32 %v613_v31  ;;  %831 = vst [vmem:[#allocation2 + $0xf9] sm:$0xff] %v5867_v37  ;;  %v953_v9 = vpack.c.bf16 %v5854_v56, %v5848_v23  ;;  %v508_v19 = vmul.f32 %v5651_v20, %v471_v29  ;;  %v5295_v29 = vld [vmem:[%s5375_s27 + $0x88] sm:$0xff]  ;;  %v5297_v23 = vld [vmem:[#allocation2] sm:$0xff] }
 0x149   : > { %v5216_v52 = vpop.eup %5215  ;;  %v754_v30 = vmul.f32 %v5214_v59, %v5740_v1  ;;  %840 = vst [vmem:[#allocation2 + $0x169] sm:$0xff] %v5870_v62  ;;  %5235 = vpow2.f32 %v615_v34  ;;  %832 = vst [vmem:[#allocation2 + $0x109] sm:$0xff] %v5874_v24  ;;  %v954_v36 = vpack.c.bf16 %v5863_v49, %v5859_v60  ;;  %v474_v13 = vsub.f32 %v5294_v57, %v5643_v5  ;;  %v5132_v60 = vld [vmem:[%s6414_s4 + $0x1b0] sm:$0xff]  }
 0x14a   : > { %v5218_v50 = vpop.eup %5217  ;;  %v756_v1 = vmul.f32 %v5216_v52, %v5744_v28  ;;  %841 = vst [vmem:[#allocation2 + $0x171] sm:$0xff] %v5879_v11  ;;  %5237 = vpow2.f32 %v617_v8  ;;  %v955_v43 = vpack.c.bf16 %v5879_v11, %v5870_v62  ;;  %v475_v0 = vsub.f32 %v5295_v29, %v5643_v5 }
 0x14b   : > { %v5220_v53 = vpop.eup %5219  ;;  %842 = vst [vmem:[#allocation2 + $0x181] sm:$0xff] %v754_v30  ;;  %v661_v16 = vadd.f32 1.0, %v5218_v50  ;;  %5239 = vpow2.f32 %v619_v61  ;;  %v509_v40 = vmul.f32 %v5651_v20, %v472_v42  ;;  %v476_v55 = vsub.f32 %v5296_v25, %v5643_v5 }
 0x14c   : > { %v5222_v48 = vpop.eup %5221  ;;  %843 = vst [vmem:[#allocation2 + $0x189] sm:$0xff] %v756_v1  ;;  %v662_v28 = vadd.f32 1.0, %v5220_v53  ;;  %5241 = vpow2.f32 %v621_v47  ;;  %v510_v39 = vmul.f32 %v5651_v20, %v473_v58  ;;  %v5910_v2 = vadd.f32 %v5664_v12, %v508_v19 }
 0x14d   : > { %v5224_v27 = vpop.eup %5223  ;;  %5243 = vrcp.f32 %v661_v16  ;;  %v663_v31 = vadd.f32 1.0, %v5222_v48  ;;  %v511_v42 = vmul.f32 %v5651_v20, %v474_v13  ;;  %v512_v34 = vmul.f32 %v5651_v20, %v475_v0 }
 0x14e   : > { %v5226_v3 = vpop.eup %5225  ;;  %5245 = vrcp.f32 %v662_v28  ;;  %v664_v8 = vadd.f32 1.0, %v5224_v27  ;;  %v513_v61 = vmul.f32 %v5651_v20, %v476_v55  ;;  %v5916_v5 = vadd.f32 %v5664_v12, %v509_v40 }
 0x14f   : > { %v5228_v33 = vpop.eup %5227  ;;  %5247 = vrcp.f32 %v663_v31  ;;  %v665_v51 = vadd.f32 1.0, %v5226_v3  ;;  %v5919_v59 = vadd.f32 %v5664_v12, %v510_v39  ;;  %v578_v30 = vsub.f32 0.0, %v5910_v2 }
 0x150   : > { %v5230_v58 = vpop.eup %5229  ;;  %5249 = vrcp.f32 %v664_v8  ;;  %v666_v7 = vadd.f32 1.0, %v5228_v33  ;;  %v5923_v19 = vadd.f32 %v5664_v12, %v511_v42  ;;  %v5926_v57 = vadd.f32 %v5664_v12, %v512_v34 }
 0x151   : > { %v5232_v47 = vpop.eup %5231  ;;  %5251 = vrcp.f32 %v665_v51  ;;  %v667_v52 = vadd.f32 1.0, %v5230_v58  ;;  %v579_v53 = vsub.f32 0.0, %v5916_v5  ;;  %v5930_v29 = vadd.f32 %v5664_v12, %v513_v61 }
 0x152   : > { %v5234_v20 = vpop.eup %5233  ;;  %5253 = vrcp.f32 %v666_v7  ;;  %v668_v50 = vadd.f32 1.0, %v5232_v47  ;;  %v580_v40 = vsub.f32 0.0, %v5919_v59  ;;  %v623_v55 = vmul.f32 1.442695, %v578_v30 }
 0x153   : > { %v5236_v13 = vpop.eup %5235  ;;  %5255 = vrcp.f32 %v667_v52  ;;  %v669_v1 = vadd.f32 1.0, %v5234_v20  ;;  %v581_v28 = vsub.f32 0.0, %v5923_v19  ;;  %v582_v31 = vsub.f32 0.0, %v5926_v57 }
 0x154   : > { %v5238_v0 = vpop.eup %5237  ;;  %5257 = vrcp.f32 %v668_v50  ;;  %v670_v16 = vadd.f32 1.0, %v5236_v13  ;;  %v625_v3 = vmul.f32 1.442695, %v579_v53  ;;  %v583_v34 = vsub.f32 0.0, %v5930_v29 }
 0x155   : > { %v5240_v48 = vpop.eup %5239  ;;  %5259 = vrcp.f32 %v669_v1  ;;  %v671_v25 = vadd.f32 1.0, %v5238_v0  ;;  %v627_v61 = vmul.f32 1.442695, %v580_v40  ;;  %v629_v7 = vmul.f32 1.442695, %v581_v28 }
 0x156   : > { %v5242_v39 = vpop.eup %5241  ;;  %5261 = vrcp.f32 %v670_v16  ;;  %v672_v27 = vadd.f32 1.0, %v5240_v48  ;;  %v631_v30 = vmul.f32 1.442695, %v582_v31  ;;  %v6059_v56 = vpack.c.bf16 %v5297_v23, %v5297_v23 }
 0x157   : > { %v5244_v42 = vpop.eup %5243  ;;  %5263 = vrcp.f32 %v671_v25  ;;  %v673_v12 = vadd.f32 1.0, %v5242_v39  ;;  %v5111_v39 = vld [vmem:[%s6414_s4 + $0x150] sm:$0xff]  }
 0x158   : > { %v5246_v8 = vpop.eup %5245  ;;  %v694_v33 = vmul.f32 %v5244_v42, %v5762_v63  ;;  %5265 = vrcp.f32 %v672_v27  ;;  %v633_v63 = vmul.f32 1.442695, %v583_v34  ;;  %v5116_v42 = vld [vmem:[%s6414_s4 + $0x18] sm:$0xff]  }
 0x159   : > { %v5248_v51 = vpop.eup %5247  ;;  %v696_v58 = vmul.f32 %v5246_v8, %v5767_v10  ;;  %5267 = vpow2.f32 %v623_v55  ;;  %v5110_v10 = vld [vmem:[%s6414_s4 + $0x8] sm:$0xff]  }
 0x15a   : > { %v5250_v47 = vpop.eup %5249  ;;  %812 = vst [vmem:[#allocation2 + $0x19] sm:$0xff] %v694_v33  ;;  %v698_v52 = vmul.f32 %v5248_v51, %v5784_v6  ;;  %5269 = vrcp.f32 %v673_v12 }
 0x15b   : > { %v5252_v20 = vpop.eup %5251  ;;  %813 = vst [vmem:[#allocation2 + $0x21] sm:$0xff] %v696_v58  ;;  %v941_v50 = vpack.c.bf16 %v696_v58, %v694_v33  ;;  %v700_v13 = vmul.f32 %v5250_v47, %v5787_v17  ;;  %5271 = vpow2.f32 %v625_v3  ;;  %v5109_v17 = vld [vmem:[%s6414_s4 + $0x148] sm:$0xff]  }
 0x15c   : > { %v5254_v1 = vpop.eup %5253  ;;  %814 = vst [vmem:[#allocation2 + $0x31] sm:$0xff] %v698_v52  ;;  %v702_v53 = vmul.f32 %v5252_v20, %v5792_v35  ;;  %5273 = vpow2.f32 %v627_v61 }
 0x15d   : > { %v5256_v0 = vpop.eup %5255  ;;  %4395 = vmatmul.mubr.bf16.vlgmr.msra.gmra.mrb[0].mxu1 %v941_v50  ;;  %4586 = vmatprep.mubr.bf16.mxu0 %v941_v50  ;;  %815 = vst [vmem:[#allocation2 + $0x39] sm:$0xff] %v700_v13  ;;  %v942_v6 = vpack.c.bf16 %v700_v13, %v698_v52  ;;  %v704_v16 = vmul.f32 %v5254_v1, %v5797_v32  ;;  %5275 = vpow2.f32 %v629_v7  ;;  %v5113_v32 = vld [vmem:[%s6414_s4 + $0x10] sm:$0xff]   ;;  %v5119_v7 = vld [vmem:[%s6414_s4 + $0x20] sm:$0xff]   ;;  %v5121_v13 = vld [vmem:[%s6414_s4 + $0x28] sm:$0xff]  }
 0x15e   : > { %v5258_v40 = vpop.eup %5257  ;;  %4427 = vmatpush3.bf16.msra.mxu1 %v5628_v41  ;;  %816 = vst [vmem:[#allocation2 + $0x49] sm:$0xff] %v702_v53  ;;  %v706_v35 = vmul.f32 %v5256_v0, %v5809_v26  ;;  %5277 = vpow2.f32 %v631_v30  ;;  %v5114_v30 = vld [vmem:[%s6414_s4 + $0x160] sm:$0xff]   ;;  %v5115_v1 = vld [vmem:[%s6414_s4 + $0x168] sm:$0xff]  }
 0x15f   : > { %v5260_v48 = vpop.eup %5259  ;;  %4398 = vmatprep.mubr.bf16.mxu1 %v942_v6  ;;  %4587 = vmatmul.mubr.bf16.vlgmr.msra.gmra.mrb[0].mxu0 %v942_v6  ;;  %817 = vst [vmem:[#allocation2 + $0x51] sm:$0xff] %v704_v16  ;;  %v2037_v25 = vpack.c.bf16 %v704_v16, %v702_v53  ;;  %v708_v55 = vmul.f32 %v5258_v40, %v5813_v18  ;;  %5279 = vpow2.f32 %v633_v63  ;;  %v5123_v53 = vld [vmem:[%s6414_s4 + $0x30] sm:$0xff]  }
 0x160   : > { %v5262_v28 = vpop.eup %5261  ;;  %4619 = vmatpush3.bf16.msra.mxu0 %v5623_v38  ;;  %4428 = vmatprep.subr.bf16.mxu1 %v5110_v10  ;;  %818 = vst [vmem:[#allocation2 + $0x61] sm:$0xff] %v706_v35  ;;  %v710_v41 = vmul.f32 %v5260_v48, %v5816_v22  ;;  %v5117_v16 = vld [vmem:[%s6414_s4 + $0x170] sm:$0xff]   ;;  %v5125_v48 = vld [vmem:[%s6414_s4 + $0x38] sm:$0xff]  }
 0x161   : > { %v5264_v26 = vpop.eup %5263  ;;  %4590 = vmatprep.mubr.bf16.mxu0 %v2037_v25  ;;  %4620 = vmatprep.subr.bf16.mxu0 %v5109_v17  ;;  %819 = vst [vmem:[#allocation2 + $0x69] sm:$0xff] %v708_v55  ;;  %v712_v18 = vmul.f32 %v5262_v28, %v5820_v21  ;;  %v944_v3 = vpack.c.bf16 %v708_v55, %v706_v35 }
 0x162   : > { %v5266_v27 = vpop.eup %5265  ;;  %4429 = vmatpush3.bf16.msra.mxu1 %v5110_v10  ;;  %820 = vst [vmem:[#allocation2 + $0x79] sm:$0xff] %v710_v41  ;;  %v714_v31 = vmul.f32 %v5264_v26, %v5823_v45  ;;  %v5112_v45 = vld [vmem:[%s6414_s4 + $0x158] sm:$0xff]  }
 0x163   : > { %v5268_v38 = vpop.eup %5267  ;;  %821 = vst [vmem:[#allocation2 + $0x81] sm:$0xff] %v712_v18  ;;  %4430 = vmatprep.subr.bf16.mxu1 %v5113_v32  ;;  %v716_v22 = vmul.f32 %v5266_v27, %v5827_v4  ;;  %v2039_v33 = vpack.c.bf16 %v712_v18, %v710_v41  ;;  %v2309_v55 = vld [vmem:[#allocation2 + $0x1a] sm:$0xff]  ;;  %v848_v62 = vld [vmem:[#allocation2 + $0x30] sm:$0xff] }
 0x164   : > { %v5270_v12 = vpop.eup %5269  ;;  %4621 = vmatpush3.bf16.msra.mxu0 %v5109_v17  ;;  %822 = vst [vmem:[#allocation2 + $0x91] sm:$0xff] %v714_v31  ;;  %v674_v34 = vadd.f32 1.0, %v5268_v38  ;;  %v2312_v38 = vld [vmem:[#allocation2 + $0x3a] sm:$0xff] }
 0x165   : > { %v5272_v21 = vpop.eup %5271  ;;  %4399 = vmatmul.mubr.bf16.gmra.mrb[4].mxu1 %v2037_v25  ;;  %4622 = vmatprep.subr.bf16.mxu0 %v5111_v39  ;;  %823 = vst [vmem:[#allocation2 + $0x99] sm:$0xff] %v716_v22  ;;  %v718_v8 = vmul.f32 %v5270_v12, %v5835_v46  ;;  %v946_v63 = vpack.c.bf16 %v716_v22, %v714_v31  ;;  %v2311_v31 = vld [vmem:[#allocation2 + $0x32] sm:$0xff] }
 0x166   : > { %v5274_v4 = vpop.eup %5273  ;;  %4402 = vmatprep.mubr.bf16.mxu1 %v944_v3  ;;  %4431 = vmatpush3.bf16.msra.mxu1 %v5113_v32  ;;  %5281 = vrcp.f32 %v674_v34  ;;  %v675_v61 = vadd.f32 1.0, %v5272_v21  ;;  %v2310_v32 = vld [vmem:[#allocation2 + $0x22] sm:$0xff]  ;;  %v2314_v12 = vld [vmem:[#allocation2 + $0x52] sm:$0xff] }
 0x167   : > { %v5276_v51 = vpop.eup %5275  ;;  %4591 = vmatmul.mubr.bf16.gmra.mrb[4].mxu0 %v944_v3  ;;  %824 = vst [vmem:[#allocation2 + $0xa9] sm:$0xff] %v718_v8  ;;  %4432 = vmatprep.subr.bf16.mxu1 %v5116_v42  ;;  %v676_v58 = vadd.f32 1.0, %v5274_v4  ;;  %v6015_v3 = vpack.c.bf16 %v2312_v38, %v2311_v31  ;;  %v5122_v34 = vld [vmem:[%s6414_s4 + $0x188] sm:$0xff]   ;;  %v849_v11 = vld [vmem:[#allocation2 + $0x38] sm:$0xff]  ;;  %v5135_v31 = vld [vmem:[%s6414_s4 + $0xa0] sm:$0xff]  }
 0x168   : > { %v5278_v47 = vpop.eup %5277  ;;  %4623 = vmatpush3.bf16.msra.mxu0 %v5111_v39  ;;  %4594 = vmatprep.mubr.bf16.mxu0 %v2039_v33  ;;  %5283 = vrcp.f32 %v675_v61  ;;  %v677_v46 = vadd.f32 1.0, %v5276_v51  ;;  %v5118_v39 = vld [vmem:[%s6414_s4 + $0x178] sm:$0xff]   ;;  %v2316_v4 = vld [vmem:[#allocation2 + $0x6a] sm:$0xff] }
 0x169   : > { %v5280_v52 = vpop.eup %5279  ;;  %4624 = vmatprep.subr.bf16.mxu0 %v5112_v45  ;;  %5285 = vrcp.f32 %v676_v58  ;;  %v678_v20 = vadd.f32 1.0, %v5278_v47  ;;  %v5126_v58 = vld [vmem:[%s6414_s4 + $0x198] sm:$0xff]  }
 0x16a   : > { %4433 = vmatpush3.bf16.msra.mxu1 %v5116_v42  ;;  %5287 = vrcp.f32 %v677_v46  ;;  %v679_v50 = vadd.f32 1.0, %v5280_v52  ;;  %v2313_v42 = vld [vmem:[#allocation2 + $0x4a] sm:$0xff]  ;;  %v2318_v61 = vld [vmem:[#allocation2 + $0x82] sm:$0xff]  ;;  %v854_v38 = vld [vmem:[#allocation2 + $0x78] sm:$0xff] }
 0x16b   : > { %5289 = vrcp.f32 %v678_v20  ;;  %4434 = vmatprep.subr.bf16.mxu1 %v5119_v7  ;;  %v6020_v21 = vpack.c.bf16 %v2314_v12, %v2313_v42  ;;  %v5130_v46 = vld [vmem:[%s6414_s4 + $0x1a8] sm:$0xff]   ;;  %v855_v42 = vld [vmem:[#allocation2 + $0x80] sm:$0xff]  ;;  %v856_v12 = vld [vmem:[#allocation2 + $0x90] sm:$0xff] }
 0x16c   : > { %4625 = vmatpush3.bf16.msra.mxu0 %v5112_v45  ;;  %5291 = vrcp.f32 %v679_v50  ;;  %v951_v45 = vpack.c.bf16 %v5831_v14, %v5874_v24  ;;  %v5128_v14 = vld [vmem:[%s6414_s4 + $0x1a0] sm:$0xff]   ;;  %v2319_v15 = vld [vmem:[#allocation2 + $0x92] sm:$0xff] }
 0x16d   : > { %4403 = vmatmul.mubr.bf16.gmra.mrb[8].mxu1 %v2039_v33  ;;  %4626 = vmatprep.subr.bf16.mxu0 %v5114_v30  ;;  %v2317_v33 = vld [vmem:[#allocation2 + $0x7a] sm:$0xff] }
 0x16e   : > { %4406 = vmatprep.mubr.bf16.mxu1 %v946_v63  ;;  %4435 = vmatpush3.bf16.msra.mxu1 %v5119_v7  ;;  %v6037_v7 = vpack.c.bf16 %v2318_v61, %v2317_v33  ;;  %v2320_v54 = vld [vmem:[#allocation2 + $0x9a] sm:$0xff]  ;;  %v2337_v61 = vld [vmem:[#allocation2 + $0x16a] sm:$0xff] }
 0x16f   : > { %4595 = vmatmul.mubr.bf16.gmra.mrb[8].mxu0 %v946_v63  ;;  %4436 = vmatprep.subr.bf16.mxu1 %v5121_v13  ;;  %v6050_v47 = vpack.c.bf16 %v2320_v54, %v2319_v15  ;;  %v5134_v50 = vld [vmem:[%s6414_s4 + $0x1b8] sm:$0xff]   ;;  %v5139_v54 = vld [vmem:[%s6414_s4 + $0xb0] sm:$0xff]  }
 0x170   : > { %v5282_v10 = vpop.eup %5281  ;;  %4627 = vmatpush3.bf16.msra.mxu0 %v5114_v30  ;;  %v846_v63 = vld [vmem:[#allocation2 + $0x18] sm:$0xff] }
 0x171   : > { %v720_v0 = vmul.f32 %v5282_v10, %v5910_v2  ;;  %4628 = vmatprep.subr.bf16.mxu0 %v5115_v1 }
 0x172   : > { %v5284_v6 = vpop.eup %5283  ;;  %4437 = vmatpush3.bf16.msra.mxu1 %v5121_v13 }
 0x173   : > { %v5286_v17 = vpop.eup %5285  ;;  %825 = vst [vmem:[#allocation2 + $0xb1] sm:$0xff] %v720_v0  ;;  %v2041_v40 = vpack.c.bf16 %v720_v0, %v718_v8  ;;  %v722_v35 = vmul.f32 %v5284_v6, %v5916_v5  ;;  %4438 = vmatprep.subr.bf16.mxu1 %v5123_v53  ;;  %v2315_v8 = vld [vmem:[#allocation2 + $0x62] sm:$0xff]  ;;  %v2328_v0 = vld [vmem:[#allocation2 + $0xfa] sm:$0xff] }
 0x174   : > { %v5288_v25 = vpop.eup %5287  ;;  %4629 = vmatpush3.bf16.msra.mxu0 %v5115_v1  ;;  %v724_v2 = vmul.f32 %v5286_v17, %v5919_v59  ;;  %v5998_v59 = vpack.c.bf16 %v2310_v32, %v2309_v55  ;;  %v6032_v51 = vpack.c.bf16 %v2316_v4, %v2315_v8  ;;  %v847_v1 = vld [vmem:[#allocation2 + $0x20] sm:$0xff]  ;;  %v2329_v17 = vld [vmem:[#allocation2 + $0x10a] sm:$0xff] }
 0x175   : > { %v5290_v28 = vpop.eup %5289  ;;  %4598 = vmatprep.mubr.bf16.mxu0 %v2041_v40  ;;  %4407 = vmatmul.mubr.bf16.gmra.mrb[12].mxu1 %v2041_v40  ;;  %826 = vst [vmem:[#allocation2 + $0xc1] sm:$0xff] %v722_v35  ;;  %v726_v41 = vmul.f32 %v5288_v25, %v5923_v19  ;;  %v6004_v19 = vld [vmem:[%s6414_s4 + $0x80] sm:$0xff]   ;;  %v2330_v40 = vld [vmem:[#allocation2 + $0x112] sm:$0xff]  ;;  %v5137_v4 = vld [vmem:[%s6414_s4 + $0xa8] sm:$0xff]  }
 0x176   : > { %v5292_v26 = vpop.eup %5291  ;;  %4630 = vmatprep.subr.bf16.mxu0 %v5117_v16  ;;  %827 = vst [vmem:[#allocation2 + $0xc9] sm:$0xff] %v724_v2  ;;  %v948_v5 = vpack.c.bf16 %v724_v2, %v722_v35  ;;  %v728_v18 = vmul.f32 %v5290_v28, %v5926_v57  ;;  %4439 = vmatpush3.bf16.msra.mxu1 %v5123_v53  ;;  %v5120_v57 = vld [vmem:[%s6414_s4 + $0x180] sm:$0xff]   ;;  %v5131_v25 = vld [vmem:[%s6414_s4 + $0x90] sm:$0xff]   ;;  %v850_v2 = vld [vmem:[#allocation2 + $0x48] sm:$0xff] }
 0x177   : > { %828 = vst [vmem:[#allocation2 + $0xd9] sm:$0xff] %v726_v41  ;;  %v730_v27 = vmul.f32 %v5292_v26, %v5930_v29  ;;  %4440 = vmatprep.subr.bf16.mxu1 %v5125_v48  ;;  %v6080_v53 = vpack.c.bf16 %v847_v1, %v846_v63  ;;  %v6085_v6 = vld [vmem:[%s6414_s4 + $0x1c0] sm:$0xff]   ;;  %v851_v55 = vld [vmem:[#allocation2 + $0x50] sm:$0xff]  ;;  %v853_v28 = vld [vmem:[#allocation2 + $0x68] sm:$0xff] }
 0x178   : > { %4410 = vmatprep.mubr.bf16.mxu1 %v948_v5  ;;  %4599 = vmatmul.mubr.bf16.gmra.mrb[12].mxu0 %v948_v5  ;;  %829 = vst [vmem:[#allocation2 + $0xe1] sm:$0xff] %v728_v18  ;;  %v949_v29 = vpack.c.bf16 %v728_v18, %v726_v41  ;;  %v852_v32 = vld [vmem:[#allocation2 + $0x60] sm:$0xff]  ;;  %v6102_v41 = vpack.c.bf16 %v851_v55, %v850_v2  ;;  %v2332_v5 = vld [vmem:[#allocation2 + $0x12a] sm:$0xff] }
 0x179   : > { %4631 = vmatpush3.bf16.msra.mxu0 %v5117_v16  ;;  %4634 = vmatprep.mubr.bf16.mxu0 %v5998_v59  ;;  %830 = vst [vmem:[#allocation2 + $0xf1] sm:$0xff] %v730_v27  ;;  %v6012_v22 = vpack.c.bf16 %v5867_v37, %v730_v27  ;;  %v5124_v37 = vld [vmem:[%s6414_s4 + $0x190] sm:$0xff]   ;;  %v6087_v16 = vpack.c.bf16 %v849_v11, %v848_v62  ;;  %v2331_v26 = vld [vmem:[#allocation2 + $0x122] sm:$0xff]  ;;  %v2333_v27 = vld [vmem:[#allocation2 + $0x13a] sm:$0xff] }
 0x17a   : > { %4632 = vmatprep.subr.bf16.mxu0 %v5118_v39  ;;  %4441 = vmatpush3.bf16.msra.mxu1 %v5125_v48  ;;  %v2321_v24 = vld [vmem:[#allocation2 + $0xaa] sm:$0xff]  ;;  %v6094_v48 = vpack.c.bf16 %v2330_v40, %v2329_v17  ;;  %v6107_v18 = vpack.c.bf16 %v853_v28, %v852_v32  ;;  %v2336_v8 = vld [vmem:[#allocation2 + $0x15a] sm:$0xff] }
 0x17b   : > { %4474 = vmatprep.subr.bf16.mxu1 %v6004_v19  ;;  %v6150_v63 = vld [vmem:[%s6414_s4 + $0xc0] sm:$0xff]   ;;  %v5138_v17 = vld [vmem:[%s6414_s4 + $0x1c8] sm:$0xff]   ;;  %v5140_v32 = vld [vmem:[%s6414_s4 + $0x1d0] sm:$0xff]  }
 0x17c   : > { %v866_v40 = vld [vmem:[#allocation2 + $0x108] sm:$0xff]  ;;  %v868_v2 = vld [vmem:[#allocation2 + $0x120] sm:$0xff] }
 0x17d   : > { %4633 = vmatpush3.bf16.msra.mxu0 %v5118_v39  ;;  %4411 = vmatmul.mubr.bf16.gmra.mrb[16].mxu1 %v949_v29  ;;  %v2323_v49 = vld [vmem:[#allocation2 + $0xc2] sm:$0xff]  ;;  %v5133_v39 = vld [vmem:[%s6414_s4 + $0x98] sm:$0xff]  }
 0x17e   : > { %4666 = vmatprep.subr.bf16.mxu0 %v5120_v57  ;;  %4414 = vmatprep.mubr.bf16.mxu1 %v6012_v22  ;;  %v861_v23 = vld [vmem:[#allocation2 + $0xc8] sm:$0xff]  ;;  %v862_v1 = vld [vmem:[#allocation2 + $0xd8] sm:$0xff] }
 0x17f   : > { %v2326_v30 = vld [vmem:[#allocation2 + $0xe2] sm:$0xff] }
 0x180   : > { %4635 = vmatmul.mubr.bf16.vlgmr.msra.gmra.mrb[0].mxu0 %v6015_v3  ;;  %v2327_v10 = vld [vmem:[#allocation2 + $0xf2] sm:$0xff]  ;;  %v863_v62 = vld [vmem:[#allocation2 + $0xe0] sm:$0xff]  ;;  %v869_v55 = vld [vmem:[#allocation2 + $0x128] sm:$0xff] }
 0x181   : > { %4667 = vmatpush3.bf16.msra.mxu0 %v5120_v57  ;;  %4638 = vmatprep.mubr.bf16.mxu0 %v6020_v21  ;;  %v6092_v35 = vpack.c.bf16 %v2328_v0, %v2327_v10  ;;  %v6111_v57 = vpack.c.bf16 %v2332_v5, %v2331_v26  ;;  %v864_v11 = vld [vmem:[#allocation2 + $0xf0] sm:$0xff]  ;;  %v6153_v10 = vpack.c.bf16 %v863_v62, %v862_v1  ;;  %v870_v5 = vld [vmem:[#allocation2 + $0x138] sm:$0xff] }
 0x182   : > { %4668 = vmatprep.subr.bf16.mxu0 %v5122_v34  ;;  %v6171_v26 = vpack.c.bf16 %v869_v55, %v868_v2  ;;  %v2924_v1 = vld [vmem:[#allocation2 + $0x49] sm:$0xff]  ;;  %v2925_v62 = vld [vmem:[#allocation2 + $0x51] sm:$0xff]  ;;  %v2929_v2 = vld [vmem:[#allocation2 + $0x81] sm:$0xff] }
 0x183   : > { %v2930_v55 = vld [vmem:[#allocation2 + $0x91] sm:$0xff] }
 0x185   : > { %4415 = vmatmul.mubr.bf16.gmra.mrb[20].mxu1 %v951_v45  ;;  %4669 = vmatpush3.bf16.msra.mxu0 %v5122_v34  ;;  %v857_v34 = vld [vmem:[#allocation2 + $0x98] sm:$0xff] }
 0x186   : > { %4418 = vmatprep.mubr.bf16.mxu1 %v952_v44  ;;  %4670 = vmatprep.subr.bf16.mxu0 %v5124_v37  ;;  %v2322_v44 = vld [vmem:[#allocation2 + $0xb2] sm:$0xff]  ;;  %v6125_v33 = vpack.c.bf16 %v857_v34, %v856_v12  ;;  %v5146_v12 = vld [vmem:[%s6414_s4 + $0x1e8] sm:$0xff]  }
 0x187   : > { %v6055_v52 = vpack.c.bf16 %v2322_v44, %v2321_v24  ;;  %v2335_v45 = vld [vmem:[#allocation2 + $0x152] sm:$0xff]  ;;  %v858_v24 = vld [vmem:[#allocation2 + $0xa8] sm:$0xff] }
 0x188   : > { %4639 = vmatmul.mubr.bf16.gmra.mrb[4].mxu0 %v6032_v51  ;;  %v859_v44 = vld [vmem:[#allocation2 + $0xb0] sm:$0xff]  ;;  %v1391_v34 = vld [vmem:[#allocation2 + $0x2] sm:$0xff] }
 0x189   : > { %4642 = vmatprep.mubr.bf16.mxu0 %v6037_v7  ;;  %4671 = vmatpush3.bf16.msra.mxu0 %v5124_v37  ;;  %v6120_v37 = vpack.c.bf16 %v855_v42, %v854_v38 }
 0x18a   : > { %4672 = vmatprep.subr.bf16.mxu0 %v5126_v58 }
 0x18d   : > { %4419 = vmatmul.mubr.bf16.gmra.mrb[24].mxu1 %v953_v9  ;;  %4673 = vmatpush3.bf16.msra.mxu0 %v5126_v58  ;;  %v2324_v9 = vld [vmem:[#allocation2 + $0xca] sm:$0xff]  ;;  %v2338_v58 = vld [vmem:[#allocation2 + $0x172] sm:$0xff] }
 0x18e   : > { %4422 = vmatprep.mubr.bf16.mxu1 %v954_v36  ;;  %4674 = vmatprep.subr.bf16.mxu0 %v5128_v14  ;;  %v2325_v36 = vld [vmem:[#allocation2 + $0xda] sm:$0xff]  ;;  %v6067_v20 = vpack.c.bf16 %v2324_v9, %v2323_v49  ;;  %v6131_v15 = vpack.c.bf16 %v2338_v58, %v2337_v61  ;;  %v2339_v49 = vld [vmem:[#allocation2 + $0x182] sm:$0xff]  ;;  %v2340_v9 = vld [vmem:[#allocation2 + $0x18a] sm:$0xff] }
 0x18f   : > { %v6073_v13 = vpack.c.bf16 %v2326_v30, %v2325_v36  ;;  %v5141_v36 = vld [vmem:[%s6414_s4 + $0xb8] sm:$0xff]   ;;  %v5148_v58 = vld [vmem:[%s6414_s4 + $0x1f0] sm:$0xff]  }
 0x190   : > { %4643 = vmatmul.mubr.bf16.gmra.mrb[8].mxu0 %v6050_v47 }
 0x191   : > { %4646 = vmatprep.mubr.bf16.mxu0 %v6055_v52  ;;  %4675 = vmatpush3.bf16.msra.mxu0 %v5128_v14  ;;  %v6129_v14 = vpack.c.bf16 %v2336_v8, %v2335_v45  ;;  %v1392_v45 = vld [vmem:[#allocation2 + $0xa] sm:$0xff] }
 0x192   : > { %4676 = vmatprep.subr.bf16.mxu0 %v5130_v46  ;;  %v874_v8 = vld [vmem:[#allocation2 + $0x168] sm:$0xff]  ;;  %v1423_v61 = vpack.c.bf16 %v1392_v45, %v1391_v34  ;;  %v5161_v34 = vld [vmem:[%s6414_s4 + $0x230] sm:$0xff]   ;;  %v2936_v45 = vld [vmem:[#allocation2 + $0xd9] sm:$0xff] }
 0x195   : > { %4423 = vmatmul.mubr.bf16.gmra.mrb[28].mxu1 %v955_v43  ;;  %4677 = vmatpush3.bf16.msra.mxu0 %v5130_v46  ;;  %v5129_v43 = vld [vmem:[%s6414_s4 + $0x88] sm:$0xff]   ;;  %v860_v46 = vld [vmem:[#allocation2 + $0xc0] sm:$0xff] }
 0x196   : > { %4442 = vmatprep.mubr.bf16.mxu1 %v6059_v56  ;;  %4678 = vmatprep.subr.bf16.mxu0 %v5132_v60  ;;  %v6143_v30 = vpack.c.bf16 %v861_v23, %v860_v46  ;;  %v5152_v46 = vld [vmem:[%s6414_s4 + $0x200] sm:$0xff]   ;;  %v5147_v23 = vld [vmem:[%s6414_s4 + $0xd0] sm:$0xff]  }
 0x198   : > { %4647 = vmatmul.mubr.bf16.gmra.mrb[12].mxu0 %v6067_v20 }
 0x199   : > { %4650 = vmatprep.mubr.bf16.mxu0 %v6073_v13  ;;  %4679 = vmatpush3.bf16.msra.mxu0 %v5132_v60  ;;  %v6138_v60 = vpack.c.bf16 %v859_v44, %v858_v24  ;;  %v5150_v24 = vld [vmem:[%s6414_s4 + $0x1f8] sm:$0xff]   ;;  %v5145_v44 = vld [vmem:[%s6414_s4 + $0xc8] sm:$0xff]  }
 0x19a   : > { %4680 = vmatprep.subr.bf16.mxu0 %v5134_v50 }
 0x19d   : > { %4443 = vmatmul.mubr.bf16.vlgmr.msra.gmra.mrb[0].mxu1 %v6080_v53  ;;  %4681 = vmatpush3.bf16.msra.mxu0 %v5134_v50  ;;  %v2356_v50 = vpack.c.bf16 %v2340_v9, %v2339_v49  ;;  %v5153_v49 = vld [vmem:[%s6414_s4 + $0xe8] sm:$0xff]   ;;  %v2644_v9 = vld [vmem:[#allocation2 + $0x180] sm:$0xff] }
 0x19e   : > { %4446 = vmatprep.mubr.bf16.mxu1 %v6087_v16  ;;  %4475 = vmatpush3.bf16.msra.mxu1 %v6004_v19  ;;  %v2334_v19 = vld [vmem:[#allocation2 + $0x142] sm:$0xff] }
 0x19f   : > { %4476 = vmatprep.subr.bf16.mxu1 %v5129_v43  ;;  %4714 = vmatprep.subr.bf16.mxu0 %v6085_v6  ;;  %v6113_v29 = vpack.c.bf16 %v2334_v19, %v2333_v27  ;;  %v872_v27 = vld [vmem:[#allocation2 + $0x150] sm:$0xff]  ;;  %v873_v19 = vld [vmem:[#allocation2 + $0x158] sm:$0xff] }
 0x1a0   : > { %4651 = vmatmul.mubr.bf16.gmra.mrb[16].mxu0 %v6092_v35  ;;  %v6185_v42 = vpack.c.bf16 %v873_v19, %v872_v27  ;;  %v2934_v27 = vld [vmem:[#allocation2 + $0xc1] sm:$0xff]  ;;  %v2935_v19 = vld [vmem:[#allocation2 + $0xc9] sm:$0xff] }
 0x1a1   : > { %4654 = vmatprep.mubr.bf16.mxu0 %v6094_v48 }
 0x1a2   : > { %4477 = vmatpush3.bf16.msra.mxu1 %v5129_v43  ;;  %v865_v43 = vld [vmem:[#allocation2 + $0xf8] sm:$0xff] }
 0x1a3   : > { %4478 = vmatprep.subr.bf16.mxu1 %v5131_v25  ;;  %v6156_v0 = vpack.c.bf16 %v865_v43, %v864_v11  ;;  %v6250_v11 = vld [vmem:[%s6414_s4 + $0x100] sm:$0xff]  }
 0x1a4   : > { %v2926_v43 = vld [vmem:[#allocation2 + $0x61] sm:$0xff] }
 0x1a5   : > { %4447 = vmatmul.mubr.bf16.gmra.mrb[4].mxu1 %v6102_v41 }
 0x1a6   : > { %4450 = vmatprep.mubr.bf16.mxu1 %v6107_v18  ;;  %4479 = vmatpush3.bf16.msra.mxu1 %v5131_v25  ;;  %v867_v25 = vld [vmem:[#allocation2 + $0x110] sm:$0xff] }
 0x1a7   : > { %4480 = vmatprep.subr.bf16.mxu1 %v5133_v39  ;;  %v6169_v28 = vpack.c.bf16 %v867_v25, %v866_v40  ;;  %v5156_v40 = vld [vmem:[%s6414_s4 + $0x210] sm:$0xff]   ;;  %v2928_v25 = vld [vmem:[#allocation2 + $0x79] sm:$0xff] }
 0x1a8   : > { %4655 = vmatmul.mubr.bf16.gmra.mrb[20].mxu0 %v6111_v57 }
 0x1a9   : > { %4658 = vmatprep.mubr.bf16.mxu0 %v6113_v29 }
 0x1aa   : > { %4481 = vmatpush3.bf16.msra.mxu1 %v5133_v39  ;;  %v871_v39 = vld [vmem:[#allocation2 + $0x140] sm:$0xff] }
 0x1ab   : > { %4482 = vmatprep.subr.bf16.mxu1 %v5135_v31  ;;  %v6183_v38 = vpack.c.bf16 %v871_v39, %v870_v5  ;;  %v5159_v5 = vld [vmem:[%s6414_s4 + $0x220] sm:$0xff]   ;;  %v2932_v39 = vld [vmem:[#allocation2 + $0xa9] sm:$0xff] }
 0x1ad   : > { %4451 = vmatmul.mubr.bf16.gmra.mrb[8].mxu1 %v6120_v37 }
 0x1ae   : > { %4454 = vmatprep.mubr.bf16.mxu1 %v6125_v33  ;;  %4483 = vmatpush3.bf16.msra.mxu1 %v5135_v31  ;;  %v5144_v31 = vld [vmem:[%s6414_s4 + $0x1e0] sm:$0xff]  }
 0x1af   : > { %4484 = vmatprep.subr.bf16.mxu1 %v5137_v4 }
 0x1b0   : > { %4659 = vmatmul.mubr.bf16.gmra.mrb[24].mxu0 %v6129_v14 }
 0x1b1   : > { %4662 = vmatprep.mubr.bf16.mxu0 %v6131_v15 }
 0x1b2   : > { %4485 = vmatpush3.bf16.msra.mxu1 %v5137_v4  ;;  %v875_v4 = vld [vmem:[#allocation2 + $0x170] sm:$0xff] }
 0x1b3   : > { %4486 = vmatprep.subr.bf16.mxu1 %v5139_v54 }
 0x1b5   : > { %4455 = vmatmul.mubr.bf16.gmra.mrb[12].mxu1 %v6138_v60 }
 0x1b6   : > { %4458 = vmatprep.mubr.bf16.mxu1 %v6143_v30  ;;  %4487 = vmatpush3.bf16.msra.mxu1 %v5139_v54  ;;  %v6197_v54 = vpack.c.bf16 %v875_v4, %v874_v8  ;;  %v5162_v8 = vld [vmem:[%s6414_s4 + $0x238] sm:$0xff]  }
 0x1b7   : > { %4488 = vmatprep.subr.bf16.mxu1 %v5141_v36  ;;  %v6286_v4 = vld [vmem:[#allocation2 + $0x111] sm:$0xff] }
 0x1b8   : > { %4663 = vmatmul.mubr.bf16.gmra.mrb[28].mxu0 %v2356_v50  ;;  %v2922_v50 = vld [vmem:[#allocation2 + $0x31] sm:$0xff] }
 0x1b9   : > { %4682 = vmatprep.mubr.bf16.mxu0 %v6087_v16 }
 0x1ba   : > { %4489 = vmatpush3.bf16.msra.mxu1 %v5141_v36  ;;  %v5155_v36 = vld [vmem:[%s6414_s4 + $0xf0] sm:$0xff]  }
 0x1bb   : > { %4522 = vmatprep.subr.bf16.mxu1 %v6150_v63 }
 0x1bd   : > { %4459 = vmatmul.mubr.bf16.gmra.mrb[16].mxu1 %v6153_v10 }
 0x1be   : > { %4462 = vmatprep.mubr.bf16.mxu1 %v6156_v0 }
 0x1c0   : > { %4683 = vmatmul.mubr.bf16.vlgmr.msra.gmra.mrb[0].mxu0 %v6102_v41 }
 0x1c1   : > { %4715 = vmatpush3.bf16.msra.mxu0 %v6085_v6  ;;  %4686 = vmatprep.mubr.bf16.mxu0 %v6107_v18  ;;  %v5142_v6 = vld [vmem:[%s6414_s4 + $0x1d8] sm:$0xff]  }
 0x1c2   : > { %4716 = vmatprep.subr.bf16.mxu0 %v5138_v17 }
 0x1c5   : > { %4463 = vmatmul.mubr.bf16.gmra.mrb[20].mxu1 %v6169_v28  ;;  %4717 = vmatpush3.bf16.msra.mxu0 %v5138_v17 }
 0x1c6   : > { %4466 = vmatprep.mubr.bf16.mxu1 %v6171_v26  ;;  %4718 = vmatprep.subr.bf16.mxu0 %v5140_v32 }
 0x1c8   : > { %4687 = vmatmul.mubr.bf16.gmra.mrb[4].mxu0 %v6120_v37 }
 0x1c9   : > { %4690 = vmatprep.mubr.bf16.mxu0 %v6125_v33  ;;  %4719 = vmatpush3.bf16.msra.mxu0 %v5140_v32  ;;  %v5158_v32 = vld [vmem:[%s6414_s4 + $0x218] sm:$0xff]  }
 0x1ca   : > { %4720 = vmatprep.subr.bf16.mxu0 %v5142_v6 }
 0x1cd   : > { %4467 = vmatmul.mubr.bf16.gmra.mrb[24].mxu1 %v6183_v38  ;;  %4721 = vmatpush3.bf16.msra.mxu0 %v5142_v6 }
 0x1ce   : > { %4470 = vmatprep.mubr.bf16.mxu1 %v6185_v42  ;;  %4722 = vmatprep.subr.bf16.mxu0 %v5144_v31 }
 0x1d0   : > { %4691 = vmatmul.mubr.bf16.gmra.mrb[8].mxu0 %v6138_v60 }
 0x1d1   : > { %4694 = vmatprep.mubr.bf16.mxu0 %v6143_v30  ;;  %4723 = vmatpush3.bf16.msra.mxu0 %v5144_v31  ;;  %v5160_v31 = vld [vmem:[%s6414_s4 + $0x228] sm:$0xff]  }
 0x1d2   : > { %4724 = vmatprep.subr.bf16.mxu0 %v5146_v12 }
 0x1d5   : > { %4471 = vmatmul.mubr.bf16.gmra.mrb[28].mxu1 %v6197_v54  ;;  %4725 = vmatpush3.bf16.msra.mxu0 %v5146_v12  ;;  %v2960_v12 = vpack.c.bf16 %v2935_v19, %v2934_v27  ;;  %v3242_v27 = vld [vmem:[#allocation2 + $0xda] sm:$0xff]  ;;  %v3244_v19 = vld [vmem:[#allocation2 + $0xf2] sm:$0xff] }
 0x1d6   : > { %4490 = vmatprep.mubr.bf16.mxu1 %v1423_v61  ;;  %4726 = vmatprep.subr.bf16.mxu0 %v5148_v58  ;;  %v2942_v61 = vld [vmem:[#allocation2 + $0x121] sm:$0xff] }
 0x1d8   : > { %4695 = vmatmul.mubr.bf16.gmra.mrb[12].mxu0 %v6153_v10 }
 0x1d9   : > { %4698 = vmatprep.mubr.bf16.mxu0 %v6156_v0  ;;  %4727 = vmatpush3.bf16.msra.mxu0 %v5148_v58 }
 0x1da   : > { %4728 = vmatprep.subr.bf16.mxu0 %v5150_v24 }
 0x1dd   : > { %4491 = vmatmul.mubr.bf16.vlgmr.msra.gmra.mrb[0].mxu1 %v5998_v59  ;;  %4729 = vmatpush3.bf16.msra.mxu0 %v5150_v24  ;;  %v5149_v59 = vld [vmem:[%s6414_s4 + $0xd8] sm:$0xff]  }
 0x1de   : > { %4494 = vmatprep.mubr.bf16.mxu1 %v6015_v3  ;;  %4523 = vmatpush3.bf16.msra.mxu1 %v6150_v63  ;;  %v5151_v3 = vld [vmem:[%s6414_s4 + $0xe0] sm:$0xff]  }
 0x1df   : > { %4524 = vmatprep.subr.bf16.mxu1 %v5145_v44  ;;  %4762 = vmatprep.subr.bf16.mxu0 %v5152_v46 }
 0x1e0   : > { %4699 = vmatmul.mubr.bf16.gmra.mrb[16].mxu0 %v6169_v28 }
 0x1e1   : > { %4702 = vmatprep.mubr.bf16.mxu0 %v6171_v26 }
 0x1e2   : > { %4525 = vmatpush3.bf16.msra.mxu1 %v5145_v44  ;;  %v2945_v44 = vld [vmem:[#allocation2 + $0x141] sm:$0xff] }
 0x1e3   : > { %4526 = vmatprep.subr.bf16.mxu1 %v5147_v23 }
 0x1e5   : > { %4495 = vmatmul.mubr.bf16.gmra.mrb[4].mxu1 %v6020_v21  ;;  %v2645_v21 = vld [vmem:[#allocation2 + $0x188] sm:$0xff] }
 0x1e6   : > { %4498 = vmatprep.mubr.bf16.mxu1 %v6032_v51  ;;  %4527 = vmatpush3.bf16.msra.mxu1 %v5147_v23  ;;  %v6234_v51 = vpack.c.bf16 %v2645_v21, %v2644_v9  ;;  %v2947_v23 = vld [vmem:[#allocation2 + $0x159] sm:$0xff]  ;;  %v2948_v9 = vld [vmem:[#allocation2 + $0x169] sm:$0xff]  ;;  %v2949_v21 = vld [vmem:[#allocation2 + $0x171] sm:$0xff] }
 0x1e7   : > { %4528 = vmatprep.subr.bf16.mxu1 %v5149_v59 }
 0x1e8   : > { %4703 = vmatmul.mubr.bf16.gmra.mrb[20].mxu0 %v6183_v38 }
 0x1e9   : > { %4706 = vmatprep.mubr.bf16.mxu0 %v6185_v42 }
 0x1ea   : > { %4529 = vmatpush3.bf16.msra.mxu1 %v5149_v59 }
 0x1eb   : > { %4530 = vmatprep.subr.bf16.mxu1 %v5151_v3 }
 0x1ed   : > { %4499 = vmatmul.mubr.bf16.gmra.mrb[8].mxu1 %v6037_v7  ;;  %v5157_v7 = vld [vmem:[%s6414_s4 + $0xf8] sm:$0xff]  }
 0x1ee   : > { %4502 = vmatprep.mubr.bf16.mxu1 %v6050_v47  ;;  %4531 = vmatpush3.bf16.msra.mxu1 %v5151_v3  ;;  %v2923_v47 = vld [vmem:[#allocation2 + $0x39] sm:$0xff] }
 0x1ef   : > { %4532 = vmatprep.subr.bf16.mxu1 %v5153_v49  ;;  %v2954_v63 = vpack.c.bf16 %v2923_v47, %v2922_v50  ;;  %v5304_v47 = vld [vmem:[%s6414_s4 + $0x128] sm:$0xff]  }
 0x1f0   : > { %4707 = vmatmul.mubr.bf16.gmra.mrb[24].mxu0 %v6197_v54 }
 0x1f1   : > { %4710 = vmatprep.mubr.bf16.mxu0 %v6234_v51 }
 0x1f2   : > { %4533 = vmatpush3.bf16.msra.mxu1 %v5153_v49  ;;  %v5302_v49 = vld [vmem:[%s6414_s4 + $0x118] sm:$0xff]  }
 0x1f3   : > { %4534 = vmatprep.subr.bf16.mxu1 %v5155_v36 }
 0x1f5   : > { %4503 = vmatmul.mubr.bf16.gmra.mrb[12].mxu1 %v6055_v52  ;;  %v2927_v52 = vld [vmem:[#allocation2 + $0x69] sm:$0xff] }
 0x1f6   : > { %4506 = vmatprep.mubr.bf16.mxu1 %v6067_v20  ;;  %4535 = vmatpush3.bf16.msra.mxu1 %v5155_v36  ;;  %v2955_v20 = vpack.c.bf16 %v2925_v62, %v2924_v1  ;;  %v2956_v17 = vpack.c.bf16 %v2927_v52, %v2926_v43  ;;  %v2951_v36 = vld [vmem:[#allocation2 + $0x189] sm:$0xff]  ;;  %v2953_v1 = vld [vmem:[#allocation2 + $0x1a1] sm:$0xff]  ;;  %v3228_v62 = vld [vmem:[#allocation2 + $0x32] sm:$0xff] }
 0x1f7   : > { %4536 = vmatprep.subr.bf16.mxu1 %v5157_v7  ;;  %v5306_v52 = vld [vmem:[%s6414_s4 + $0x138] sm:$0xff]  }
 0x1f8   : > { %4711 = vmatmul.mubr.bf16.gmra.mrb[28].mxu0 %v6059_v56  ;;  %v5154_v56 = vld [vmem:[%s6414_s4 + $0x208] sm:$0xff]  }
 0x1f9   : > { %4730 = vmatprep.mubr.bf16.mxu0 %v2954_v63  ;;  %v2952_v63 = vld [vmem:[#allocation2 + $0x199] sm:$0xff] }
 0x1fa   : > { %4537 = vmatpush3.bf16.msra.mxu1 %v5157_v7  ;;  %v6317_v7 = vpack.c.bf16 %v2949_v21, %v2948_v9 }
 0x1fb   : > { %4810 = vmatprep.subr.bf16.mxu1 %v6250_v11 }
 0x1fd   : > { %4507 = vmatmul.mubr.bf16.gmra.mrb[16].mxu1 %v6073_v13  ;;  %v2931_v13 = vld [vmem:[#allocation2 + $0x99] sm:$0xff] }
 0x1fe   : > { %4510 = vmatprep.mubr.bf16.mxu1 %v6092_v35  ;;  %v2957_v35 = vpack.c.bf16 %v2929_v2, %v2928_v25  ;;  %v2958_v6 = vpack.c.bf16 %v2931_v13, %v2930_v55  ;;  %v3234_v25 = vld [vmem:[#allocation2 + $0x7a] sm:$0xff]  ;;  %v3235_v2 = vld [vmem:[#allocation2 + $0x82] sm:$0xff]  ;;  %v3236_v55 = vld [vmem:[#allocation2 + $0x92] sm:$0xff] }
 0x1ff   : > { %v3237_v13 = vld [vmem:[#allocation2 + $0x9a] sm:$0xff] }
 0x200   : > { %4731 = vmatmul.mubr.bf16.vlgmr.msra.gmra.mrb[0].mxu0 %v2955_v20  ;;  %v3230_v20 = vld [vmem:[#allocation2 + $0x4a] sm:$0xff] }
 0x201   : > { %4763 = vmatpush3.bf16.msra.mxu0 %v5152_v46  ;;  %4734 = vmatprep.mubr.bf16.mxu0 %v2956_v17  ;;  %v2946_v46 = vld [vmem:[#allocation2 + $0x151] sm:$0xff]  ;;  %v3232_v17 = vld [vmem:[#allocation2 + $0x62] sm:$0xff] }
 0x202   : > { %4764 = vmatprep.subr.bf16.mxu0 %v5154_v56  ;;  %v6305_v3 = vpack.c.bf16 %v2947_v23, %v2946_v46  ;;  %v3255_v46 = vld [vmem:[#allocation2 + $0x172] sm:$0xff]  ;;  %v3256_v23 = vld [vmem:[#allocation2 + $0x182] sm:$0xff] }
 0x205   : > { %4511 = vmatmul.mubr.bf16.gmra.mrb[20].mxu1 %v6094_v48  ;;  %4765 = vmatpush3.bf16.msra.mxu0 %v5154_v56  ;;  %v2933_v48 = vld [vmem:[#allocation2 + $0xb1] sm:$0xff] }
 0x206   : > { %4514 = vmatprep.mubr.bf16.mxu1 %v6111_v57  ;;  %4766 = vmatprep.subr.bf16.mxu0 %v5156_v40  ;;  %v2959_v57 = vpack.c.bf16 %v2933_v48, %v2932_v39  ;;  %v3231_v56 = vld [vmem:[#allocation2 + $0x52] sm:$0xff] }
 0x208   : > { %4735 = vmatmul.mubr.bf16.gmra.mrb[4].mxu0 %v2957_v35  ;;  %v3263_v35 = vpack.c.bf16 %v3235_v2, %v3234_v25 }
 0x209   : > { %4738 = vmatprep.mubr.bf16.mxu0 %v2958_v6  ;;  %4767 = vmatpush3.bf16.msra.mxu0 %v5156_v40  ;;  %v3233_v40 = vld [vmem:[#allocation2 + $0x6a] sm:$0xff] }
 0x20a   : > { %4768 = vmatprep.subr.bf16.mxu0 %v5158_v32  ;;  %v3238_v6 = vld [vmem:[#allocation2 + $0xaa] sm:$0xff] }
 0x20d   : > { %4515 = vmatmul.mubr.bf16.gmra.mrb[24].mxu1 %v6113_v29  ;;  %4769 = vmatpush3.bf16.msra.mxu0 %v5158_v32  ;;  %v2937_v29 = vld [vmem:[#allocation2 + $0xe1] sm:$0xff]  ;;  %v3264_v32 = vpack.c.bf16 %v3237_v13, %v3236_v55 }
 0x20e   : > { %4518 = vmatprep.mubr.bf16.mxu1 %v6129_v14  ;;  %4770 = vmatprep.subr.bf16.mxu0 %v5159_v5  ;;  %v6279_v14 = vpack.c.bf16 %v2937_v29, %v2936_v45  ;;  %v3246_v45 = vld [vmem:[#allocation2 + $0x10a] sm:$0xff]  ;;  %v3247_v29 = vld [vmem:[#allocation2 + $0x112] sm:$0xff] }
 0x210   : > { %4739 = vmatmul.mubr.bf16.gmra.mrb[8].mxu0 %v2959_v57 }
 0x211   : > { %4742 = vmatprep.mubr.bf16.mxu0 %v2960_v12  ;;  %4771 = vmatpush3.bf16.msra.mxu0 %v5159_v5  ;;  %v3240_v5 = vld [vmem:[#allocation2 + $0xc2] sm:$0xff]  ;;  %v2021_v12 = vld [vmem:[#allocation2 + $0xf1] sm:$0xff] }
 0x212   : > { %4772 = vmatprep.subr.bf16.mxu0 %v5160_v31 }
 0x215   : > { %4519 = vmatmul.mubr.bf16.gmra.mrb[28].mxu1 %v6131_v15  ;;  %4773 = vmatpush3.bf16.msra.mxu0 %v5160_v31  ;;  %v2943_v15 = vld [vmem:[#allocation2 + $0x129] sm:$0xff] }
 0x216   : > { %4538 = vmatprep.mubr.bf16.mxu1 %v6080_v53  ;;  %4774 = vmatprep.subr.bf16.mxu0 %v5161_v34  ;;  %v5299_v53 = vld [vmem:[#allocation2 + $0x109] sm:$0xff]  ;;  %v6292_v24 = vpack.c.bf16 %v2943_v15, %v2942_v61 }
 0x217   : > { %v2963_v58 = vpack.c.bf16 %v6286_v4, %v5299_v53  ;;  %v3248_v61 = vld [vmem:[#allocation2 + $0x122] sm:$0xff]  ;;  %v3249_v15 = vld [vmem:[#allocation2 + $0x12a] sm:$0xff]  ;;  %v3269_v53 = vpack.c.bf16 %v3247_v29, %v3246_v45 }
 0x218   : > { %4743 = vmatmul.mubr.bf16.gmra.mrb[12].mxu0 %v6279_v14 }
 0x219   : > { %4746 = vmatprep.mubr.bf16.mxu0 %v6012_v22  ;;  %4775 = vmatpush3.bf16.msra.mxu0 %v5161_v34  ;;  %v5300_v22 = vld [vmem:[%s6414_s4 + $0x108] sm:$0xff]   ;;  %v2022_v34 = vld [vmem:[#allocation2 + $0xf9] sm:$0xff] }
 0x21a   : > { %4776 = vmatprep.subr.bf16.mxu0 %v5162_v8 }
 0x21d   : > { %4539 = vmatmul.mubr.bf16.vlgmr.msra.gmra.mrb[0].mxu1 %v6087_v16  ;;  %4777 = vmatpush3.bf16.msra.mxu0 %v5162_v8  ;;  %v2944_v16 = vld [vmem:[#allocation2 + $0x139] sm:$0xff] }
 0x21e   : > { %4542 = vmatprep.mubr.bf16.mxu1 %v6102_v41  ;;  %4818 = vmatpush3.bf16.msra.mxu1 %v6250_v11  ;;  %v5301_v41 = vld [vmem:[%s6414_s4 + $0x110] sm:$0xff]   ;;  %v6303_v59 = vpack.c.bf16 %v2945_v44, %v2944_v16  ;;  %v3229_v11 = vld [vmem:[#allocation2 + $0x3a] sm:$0xff] }
 0x21f   : > { %4811 = vmatprep.subr.bf16.mxu1 %v5300_v22  ;;  %v3260_v43 = vpack.c.bf16 %v3229_v11, %v3228_v62  ;;  %v3253_v16 = vld [vmem:[#allocation2 + $0x15a] sm:$0xff] }
 0x220   : > { %4747 = vmatmul.mubr.bf16.gmra.mrb[16].mxu0 %v2963_v58  ;;  %v3251_v58 = vld [vmem:[#allocation2 + $0x142] sm:$0xff] }
 0x221   : > { %4750 = vmatprep.mubr.bf16.mxu0 %v6292_v24 }
 0x222   : > { %4819 = vmatpush3.bf16.msra.mxu1 %v5300_v22  ;;  %v3252_v22 = vld [vmem:[#allocation2 + $0x152] sm:$0xff] }
 0x223   : > { %4812 = vmatprep.subr.bf16.mxu1 %v5301_v41 }
 0x225   : > { %4543 = vmatmul.mubr.bf16.gmra.mrb[4].mxu1 %v6107_v18  ;;  %v5303_v18 = vld [vmem:[%s6414_s4 + $0x120] sm:$0xff]  }
 0x226   : > { %4546 = vmatprep.mubr.bf16.mxu1 %v6120_v37  ;;  %4820 = vmatpush3.bf16.msra.mxu1 %v5301_v41  ;;  %v2950_v37 = vld [vmem:[#allocation2 + $0x181] sm:$0xff]  ;;  %v3272_v41 = vpack.c.bf16 %v3253_v16, %v3252_v22 }
 0x227   : > { %4813 = vmatprep.subr.bf16.mxu1 %v5302_v49  ;;  %v6319_v50 = vpack.c.bf16 %v2951_v36, %v2950_v37 }
 0x228   : > { %4751 = vmatmul.mubr.bf16.gmra.mrb[20].mxu0 %v6303_v59 }
 0x229   : > { %4754 = vmatprep.mubr.bf16.mxu0 %v6305_v3 }
 0x22a   : > { %4821 = vmatpush3.bf16.msra.mxu1 %v5302_v49  ;;  %v3257_v49 = vld [vmem:[#allocation2 + $0x18a] sm:$0xff] }
 0x22b   : > { %4814 = vmatprep.subr.bf16.mxu1 %v5303_v18  ;;  %v3274_v21 = vpack.c.bf16 %v3257_v49, %v3256_v23 }
 0x22d   : > { %4547 = vmatmul.mubr.bf16.gmra.mrb[8].mxu1 %v6125_v33  ;;  %v5305_v33 = vld [vmem:[%s6414_s4 + $0x130] sm:$0xff]  }
 0x22e   : > { %4550 = vmatprep.mubr.bf16.mxu1 %v6138_v60  ;;  %4822 = vmatpush3.bf16.msra.mxu1 %v5303_v18  ;;  %v2969_v60 = vpack.c.bf16 %v2953_v1, %v2952_v63  ;;  %v3258_v18 = vld [vmem:[#allocation2 + $0x19a] sm:$0xff] }
 0x22f   : > { %4815 = vmatprep.subr.bf16.mxu1 %v5304_v47 }
 0x230   : > { %4755 = vmatmul.mubr.bf16.gmra.mrb[24].mxu0 %v6317_v7 }
 0x231   : > { %4758 = vmatprep.mubr.bf16.mxu0 %v6319_v50 }
 0x232   : > { %4823 = vmatpush3.bf16.msra.mxu1 %v5304_v47 }
 0x233   : > { %4816 = vmatprep.subr.bf16.mxu1 %v5305_v33 }
 0x235   : > { %4551 = vmatmul.mubr.bf16.gmra.mrb[12].mxu1 %v6143_v30  ;;  %v3261_v30 = vpack.c.bf16 %v3231_v56, %v3230_v20 }
 0x236   : > { %4554 = vmatprep.mubr.bf16.mxu1 %v6153_v10  ;;  %4824 = vmatpush3.bf16.msra.mxu1 %v5305_v33  ;;  %v3262_v10 = vpack.c.bf16 %v3233_v40, %v3232_v17 }
 0x237   : > { %4817 = vmatprep.subr.bf16.mxu1 %v5306_v52 }
 0x238   : > { %4759 = vmatmul.mubr.bf16.gmra.mrb[28].mxu0 %v2969_v60 }
 0x239   : > { %4778 = vmatprep.mubr.bf16.mxu0 %v3260_v43 }
 0x23a   : > { %4825 = vmatpush3.bf16.msra.mxu1 %v5306_v52 }
 0x23d   : > { %4555 = vmatmul.mubr.bf16.gmra.mrb[16].mxu1 %v6156_v0  ;;  %v3239_v0 = vld [vmem:[#allocation2 + $0xb2] sm:$0xff] }
 0x23e   : > { %4558 = vmatprep.mubr.bf16.mxu1 %v6169_v28  ;;  %v3241_v28 = vld [vmem:[#allocation2 + $0xca] sm:$0xff]  ;;  %v3265_v39 = vpack.c.bf16 %v3239_v0, %v3238_v6 }
 0x23f   : > { %v3266_v48 = vpack.c.bf16 %v3241_v28, %v3240_v5 }
 0x240   : > { %4779 = vmatmul.mubr.bf16.vlgmr.msra.gmra.mrb[0].mxu0 %v3261_v30 }
 0x241   : > { %4782 = vmatprep.mubr.bf16.mxu0 %v3262_v10  ;;  %v6351_v10 = vld [vmem:[%s6415_s5] ss:$0 sm:$0xff] }
 0x245   : > { %4559 = vmatmul.mubr.bf16.gmra.mrb[20].mxu1 %v6171_v26  ;;  %v3243_v26 = vld [vmem:[#allocation2 + $0xe2] sm:$0xff] }
 0x246   : > { %4562 = vmatprep.mubr.bf16.mxu1 %v6183_v38  ;;  %v3245_v38 = vld [vmem:[#allocation2 + $0xfa] sm:$0xff]  ;;  %v3267_v57 = vpack.c.bf16 %v3243_v26, %v3242_v27 }
 0x247   : > { %v3268_v31 = vpack.c.bf16 %v3245_v38, %v3244_v19 }
 0x248   : > { %4783 = vmatmul.mubr.bf16.gmra.mrb[4].mxu0 %v3263_v35 }
 0x249   : > { %4786 = vmatprep.mubr.bf16.mxu0 %v3264_v32 }
 0x24d   : > { %4563 = vmatmul.mubr.bf16.gmra.mrb[24].mxu1 %v6185_v42  ;;  %v2023_v42 = vld [vmem:[#allocation2 + $0x109] sm:$0xff] }
 0x24e   : > { %4566 = vmatprep.mubr.bf16.mxu1 %v6197_v54  ;;  %v2044_v54 = vpack.c.bf16 %v2022_v34, %v2021_v12  ;;  %v2045_v8 = vpack.c.bf16 %v6286_v4, %v2023_v42  ;;  %v3254_v4 = vld [vmem:[#allocation2 + $0x16a] sm:$0xff] }
 0x24f   : > { %v3273_v9 = vpack.c.bf16 %v3255_v46, %v3254_v4 }
 0x250   : > { %4787 = vmatmul.mubr.bf16.gmra.mrb[8].mxu0 %v3265_v39 }
 0x251   : > { %4790 = vmatprep.mubr.bf16.mxu0 %v3266_v48 }
 0x255   : > { %4567 = vmatmul.mubr.bf16.gmra.mrb[28].mxu1 %v6234_v51  ;;  %v3270_v51 = vpack.c.bf16 %v3249_v15, %v3248_v61 }
 0x256   : > { %4602 = vmatprep.mubr.bf16.mxu1 %v6279_v14  ;;  %v3250_v14 = vld [vmem:[#allocation2 + $0x13a] sm:$0xff] }
 0x257   : > { %v3271_v44 = vpack.c.bf16 %v3251_v58, %v3250_v14 }
 0x258   : > { %4791 = vmatmul.mubr.bf16.gmra.mrb[12].mxu0 %v3267_v57 }
 0x259   : > { %4794 = vmatprep.mubr.bf16.mxu0 %v3268_v31 }
 0x25d   : > { %4603 = vmatmul.mubr.bf16.vlgmr.msra.gmra.mrb[16].mxu1 %v2044_v54 }
 0x25e   : > { %4606 = vmatprep.mubr.bf16.mxu1 %v2045_v8 }
 0x260   : > { %4795 = vmatmul.mubr.bf16.gmra.mrb[16].mxu0 %v3269_v53 }
 0x261   : > { %4798 = vmatprep.mubr.bf16.mxu0 %v3270_v51 }
 0x265   : > { %4607 = vmatmul.mubr.bf16.gmra.mrb[20].mxu1 %v6292_v24  ;;  %v3259_v24 = vld [vmem:[#allocation2 + $0x1a2] sm:$0xff] }
 0x266   : > { %4610 = vmatprep.mubr.bf16.mxu1 %v6303_v59  ;;  %v3275_v37 = vpack.c.bf16 %v3259_v24, %v3258_v18 }
 0x268   : > { %4799 = vmatmul.mubr.bf16.gmra.mrb[20].mxu0 %v3271_v44 }
 0x269   : > { %4802 = vmatprep.mubr.bf16.mxu0 %v3272_v41 }
 0x26d   : > { %4611 = vmatmul.mubr.bf16.gmra.mrb[24].mxu1 %v6305_v3 }
 0x26e   : > { %4614 = vmatprep.mubr.bf16.mxu1 %v6317_v7 }
 0x270   : > { %4803 = vmatmul.mubr.bf16.gmra.mrb[24].mxu0 %v3273_v9 }
 0x271   : > { %4806 = vmatprep.mubr.bf16.mxu0 %v3274_v21 }
 0x275   : > { %4615 = vmatmul.mubr.bf16.gmra.mrb[28].mxu1 %v6319_v50 }
 0x278   : > { %4807 = vmatmul.mubr.bf16.gmra.mrb[28].mxu0 %v3275_v37 }
 0x2f0   : > { %v4540_v59 = vpop.f32.mrb[0].mxu1 }
 0x2f1   : > { %v1844_v36 = vpop.f32.mrb[1].mxu1 }
 0x2f2   : > { %v4541_v47 = vpop.f32.mrb[2].mxu1 }
 0x2f3   : > { %v1847_v63 = vpop.f32.mrb[3].mxu1 }
 0x2f8   : > { %v4544_v1 = vpop.f32.mrb[4].mxu1 }
 0x2f9   : > { %v1860_v33 = vpop.f32.mrb[5].mxu1 }
 0x2fa   : > { %v4545_v60 = vpop.f32.mrb[6].mxu1 }
 0x2fb   : > { %v1863_v3 = vpop.f32.mrb[7].mxu1 }
 0x300   : > { %v4548_v7 = vpop.f32.mrb[8].mxu1 }
 0x301   : > { %v1876_v62 = vpop.f32.mrb[9].mxu1 }
 0x302   : > { %v4549_v11 = vpop.f32.mrb[10].mxu1 }
 0x303   : > { %v1879_v43 = vpop.f32.mrb[11].mxu1 }
 0x308   : > { %v4552_v52 = vpop.f32.mrb[12].mxu1 }
 0x309   : > { %v1892_v20 = vpop.f32.mrb[13].mxu1 }
 0x30a   : > { %v4553_v56 = vpop.f32.mrb[14].mxu1 }
 0x30b   : > { %v1895_v17 = vpop.f32.mrb[15].mxu1 }
 0x313   : > { %v4780_v40 = vpop.f32.mrb[0].mxu0 }
 0x314   : > { %v4826_v50 = vadd.f32 %v4780_v40, %v4540_v59  ;;  %v3375_v30 = vpop.f32.mrb[1].mxu0 }
 0x315   : > { %v4827_v25 = vadd.f32 %v3375_v30, %v1844_v36  ;;  %v4781_v2 = vpop.f32.mrb[2].mxu0 }
 0x316   : > { %v4828_v55 = vadd.f32 %v4781_v2, %v4541_v47  ;;  %v3378_v13 = vpop.f32.mrb[3].mxu0  ;;  %v3543_v32 = vadd.f32 %v4826_v50, %v6351_v10 }
 0x317   : > { %v4829_v35 = vadd.f32 %v3378_v13, %v1847_v63  ;;  %v3541_v0 = vadd.f32 %v4827_v25, %v6351_v10 }
 0x318   : > { %v3544_v6 = vadd.f32 %v4828_v55, %v6351_v10 }
 0x319   : > { %v3542_v5 = vadd.f32 %v4829_v35, %v6351_v10 }
 0x31a   : > { %v4075_v28 = vpack.c.bf16 %v3544_v6, %v3543_v32 }
 0x31b   : > { %v4070_v39 = vpack.c.bf16 %v3542_v5, %v3541_v0  ;;  %v4784_v48 = vpop.f32.mrb[4].mxu0 }
 0x31c   : > { %4147 = vst [vmem:[%s6360_s29 + $0x8] sm:$0xff] %v4075_v28   ;;  %v4830_v27 = vadd.f32 %v4784_v48, %v4544_v1  ;;  %v3391_v26 = vpop.f32.mrb[5].mxu0 }
 0x31d   : > { %4071 = vst [vmem:[%s6360_s29] sm:$0xff] %v4070_v39   ;;  %v4831_v19 = vadd.f32 %v3391_v26, %v1860_v33  ;;  %v4785_v38 = vpop.f32.mrb[6].mxu0 }
 0x31e   : > { %v4832_v57 = vadd.f32 %v4785_v38, %v4545_v60  ;;  %v3394_v31 = vpop.f32.mrb[7].mxu0  ;;  %v3547_v34 = vadd.f32 %v4830_v27, %v6351_v10 }
 0x31f   : > { %v4833_v12 = vadd.f32 %v3394_v31, %v1863_v3  ;;  %v3545_v54 = vadd.f32 %v4831_v19, %v6351_v10 }
 0x320   : > { %v3548_v42 = vadd.f32 %v4832_v57, %v6351_v10 }
 0x321   : > { %v3546_v45 = vadd.f32 %v4833_v12, %v6351_v10 }
 0x322   : > { %v4085_v29 = vpack.c.bf16 %v3548_v42, %v3547_v34 }
 0x323   : > { %v4080_v8 = vpack.c.bf16 %v3546_v45, %v3545_v54  ;;  %v4788_v61 = vpop.f32.mrb[8].mxu0 }
 0x324   : > { %4149 = vst [vmem:[%s6360_s29 + $0x18] sm:$0xff] %v4085_v29   ;;  %v4834_v15 = vadd.f32 %v4788_v61, %v4548_v7  ;;  %v3407_v53 = vpop.f32.mrb[9].mxu0 }
 0x325   : > { %4148 = vst [vmem:[%s6360_s29 + $0x10] sm:$0xff] %v4080_v8   ;;  %v4835_v51 = vadd.f32 %v3407_v53, %v1876_v62  ;;  %v4789_v14 = vpop.f32.mrb[10].mxu0 }
 0x326   : > { %v4836_v58 = vadd.f32 %v4789_v14, %v4549_v11  ;;  %v3410_v22 = vpop.f32.mrb[11].mxu0  ;;  %v3551_v44 = vadd.f32 %v4834_v15, %v6351_v10 }
 0x327   : > { %v4837_v16 = vadd.f32 %v3410_v22, %v1879_v43  ;;  %v3549_v4 = vadd.f32 %v4835_v51, %v6351_v10 }
 0x328   : > { %v3552_v41 = vadd.f32 %v4836_v58, %v6351_v10 }
 0x329   : > { %v3550_v46 = vadd.f32 %v4837_v16, %v6351_v10 }
 0x32a   : > { %v4095_v23 = vpack.c.bf16 %v3552_v41, %v3551_v44 }
 0x32b   : > { %v4090_v49 = vpack.c.bf16 %v3550_v46, %v3549_v4  ;;  %v4792_v9 = vpop.f32.mrb[12].mxu0 }
 0x32c   : > { %4151 = vst [vmem:[%s6360_s29 + $0x28] sm:$0xff] %v4095_v23   ;;  %v4838_v21 = vadd.f32 %v4792_v9, %v4552_v52  ;;  %v3423_v18 = vpop.f32.mrb[13].mxu0 }
 0x32d   : > { %4150 = vst [vmem:[%s6360_s29 + $0x20] sm:$0xff] %v4090_v49   ;;  %v4839_v24 = vadd.f32 %v3423_v18, %v1892_v20  ;;  %v4793_v37 = vpop.f32.mrb[14].mxu0 }
 0x32e   : > { %v4840_v59 = vadd.f32 %v4793_v37, %v4553_v56  ;;  %v3426_v36 = vpop.f32.mrb[15].mxu0  ;;  %v3555_v63 = vadd.f32 %v4838_v21, %v6351_v10 }
 0x32f   : > { %v4841_v47 = vadd.f32 %v3426_v36, %v1895_v17  ;;  %v3553_v60 = vadd.f32 %v4839_v24, %v6351_v10 }
 0x330   : > { %v3556_v1 = vadd.f32 %v4840_v59, %v6351_v10  ;;  %v4604_v33 = vpop.f32.mrb[16].mxu1 }
 0x331   : > { %v3554_v3 = vadd.f32 %v4841_v47, %v6351_v10  ;;  %v2214_v7 = vpop.f32.mrb[17].mxu1 }
 0x332   : > { %v4105_v62 = vpack.c.bf16 %v3556_v1, %v3555_v63  ;;  %v4605_v11 = vpop.f32.mrb[18].mxu1 }
 0x333   : > { %v4100_v43 = vpack.c.bf16 %v3554_v3, %v3553_v60  ;;  %v4796_v52 = vpop.f32.mrb[16].mxu0  ;;  %v2217_v20 = vpop.f32.mrb[19].mxu1 }
 0x334   : > { %4153 = vst [vmem:[%s6360_s29 + $0x38] sm:$0xff] %v4105_v62   ;;  %v4842_v56 = vadd.f32 %v4796_v52, %v4604_v33  ;;  %v3439_v40 = vpop.f32.mrb[17].mxu0 }
 0x335   : > { %4152 = vst [vmem:[%s6360_s29 + $0x30] sm:$0xff] %v4100_v43   ;;  %v4843_v17 = vadd.f32 %v3439_v40, %v2214_v7  ;;  %v4797_v50 = vpop.f32.mrb[18].mxu0 }
 0x336   : > { %v4844_v30 = vadd.f32 %v4797_v50, %v4605_v11  ;;  %v3442_v25 = vpop.f32.mrb[19].mxu0  ;;  %v3559_v55 = vadd.f32 %v4842_v56, %v6351_v10 }
 0x337   : > { %v4845_v2 = vadd.f32 %v3442_v25, %v2217_v20  ;;  %v3557_v32 = vadd.f32 %v4843_v17, %v6351_v10 }
 0x338   : > { %v3560_v13 = vadd.f32 %v4844_v30, %v6351_v10  ;;  %v4608_v35 = vpop.f32.mrb[20].mxu1 }
 0x339   : > { %v3558_v6 = vadd.f32 %v4845_v2, %v6351_v10  ;;  %v2230_v0 = vpop.f32.mrb[21].mxu1 }
 0x33a   : > { %v4115_v5 = vpack.c.bf16 %v3560_v13, %v3559_v55  ;;  %v4609_v28 = vpop.f32.mrb[22].mxu1 }
 0x33b   : > { %v4110_v39 = vpack.c.bf16 %v3558_v6, %v3557_v32  ;;  %v4800_v48 = vpop.f32.mrb[20].mxu0  ;;  %v2233_v27 = vpop.f32.mrb[23].mxu1 }
 0x33c   : > { %4155 = vst [vmem:[%s6360_s29 + $0x48] sm:$0xff] %v4115_v5   ;;  %v4846_v26 = vadd.f32 %v4800_v48, %v4608_v35  ;;  %v3455_v19 = vpop.f32.mrb[21].mxu0 }
 0x33d   : > { %4154 = vst [vmem:[%s6360_s29 + $0x40] sm:$0xff] %v4110_v39   ;;  %v4847_v38 = vadd.f32 %v3455_v19, %v2230_v0  ;;  %v4801_v57 = vpop.f32.mrb[22].mxu0 }
 0x33e   : > { %v4848_v31 = vadd.f32 %v4801_v57, %v4609_v28  ;;  %v3458_v12 = vpop.f32.mrb[23].mxu0  ;;  %v3563_v42 = vadd.f32 %v4846_v26, %v6351_v10 }
 0x33f   : > { %v4849_v34 = vadd.f32 %v3458_v12, %v2233_v27  ;;  %v3561_v29 = vadd.f32 %v4847_v38, %v6351_v10 }
 0x340   : > { %v3564_v54 = vadd.f32 %v4848_v31, %v6351_v10  ;;  %v4612_v45 = vpop.f32.mrb[24].mxu1 }
 0x341   : > { %v3562_v8 = vadd.f32 %v4849_v34, %v6351_v10  ;;  %v2246_v61 = vpop.f32.mrb[25].mxu1 }
 0x342   : > { %v4125_v15 = vpack.c.bf16 %v3564_v54, %v3563_v42  ;;  %v4613_v53 = vpop.f32.mrb[26].mxu1 }
 0x343   : > { %v4120_v51 = vpack.c.bf16 %v3562_v8, %v3561_v29  ;;  %v4804_v14 = vpop.f32.mrb[24].mxu0  ;;  %v2249_v58 = vpop.f32.mrb[27].mxu1 }
 0x344   : > { %4157 = vst [vmem:[%s6360_s29 + $0x58] sm:$0xff] %v4125_v15   ;;  %v4850_v22 = vadd.f32 %v4804_v14, %v4612_v45  ;;  %v3471_v16 = vpop.f32.mrb[25].mxu0 }
 0x345   : > { %4156 = vst [vmem:[%s6360_s29 + $0x50] sm:$0xff] %v4120_v51   ;;  %v4851_v44 = vadd.f32 %v3471_v16, %v2246_v61  ;;  %v4805_v41 = vpop.f32.mrb[26].mxu0 }
 0x346   : > { %v4852_v4 = vadd.f32 %v4805_v41, %v4613_v53  ;;  %v3474_v46 = vpop.f32.mrb[27].mxu0  ;;  %v3567_v49 = vadd.f32 %v4850_v22, %v6351_v10 }
 0x347   : > { %v4853_v23 = vadd.f32 %v3474_v46, %v2249_v58  ;;  %v3565_v18 = vadd.f32 %v4851_v44, %v6351_v10 }
 0x348   : > { %v3568_v9 = vadd.f32 %v4852_v4, %v6351_v10  ;;  %v4616_v21 = vpop.f32.mrb[28].mxu1 }
 0x349   : > { %v3566_v24 = vadd.f32 %v4853_v23, %v6351_v10  ;;  %v2262_v37 = vpop.f32.mrb[29].mxu1 }
 0x34a   : > { %v4135_v59 = vpack.c.bf16 %v3568_v9, %v3567_v49  ;;  %v4617_v36 = vpop.f32.mrb[30].mxu1 }
 0x34b   : > { %v4130_v47 = vpack.c.bf16 %v3566_v24, %v3565_v18  ;;  %v4808_v63 = vpop.f32.mrb[28].mxu0  ;;  %v2265_v1 = vpop.f32.mrb[31].mxu1 }
 0x34c   : > { %4159 = vst [vmem:[%s6360_s29 + $0x68] sm:$0xff] %v4135_v59   ;;  %v4854_v33 = vadd.f32 %v4808_v63, %v4616_v21  ;;  %v3487_v60 = vpop.f32.mrb[29].mxu0 }
 0x34d   : > { %4158 = vst [vmem:[%s6360_s29 + $0x60] sm:$0xff] %v4130_v47   ;;  %v4855_v3 = vadd.f32 %v3487_v60, %v2262_v37  ;;  %v4809_v7 = vpop.f32.mrb[30].mxu0 }
 0x34e   : > { %v4856_v62 = vadd.f32 %v4809_v7, %v4617_v36  ;;  %v3490_v11 = vpop.f32.mrb[31].mxu0  ;;  %v3571_v52 = vadd.f32 %v4854_v33, %v6351_v10 }
 0x34f   : > { %v4857_v43 = vadd.f32 %v3490_v11, %v2265_v1  ;;  %v3569_v56 = vadd.f32 %v4855_v3, %v6351_v10 }
 0x350   : > { %v3572_v20 = vadd.f32 %v4856_v62, %v6351_v10 }
 0x351   : > { %v3570_v40 = vadd.f32 %v4857_v43, %v6351_v10 }
 0x352   : > { %v4145_v17 = vpack.c.bf16 %v3572_v20, %v3571_v52 }
 0x353   : > { %v4140_v50 = vpack.c.bf16 %v3570_v40, %v3569_v56 }
 0x354   : > { %4161 = vst [vmem:[%s6360_s29 + $0x78] sm:$0xff] %v4145_v17  }
 0x355   : > { %4160 = vst [vmem:[%s6360_s29 + $0x70] sm:$0xff] %v4140_v50  }
 0x356 PF: > { %s16_s21 = sadd.s32 1, %s5313_s21  }
 0x357   : > { %p13_p4 = scmp.ge.s32.totalorder %s16_s21, 4  }
 0x359   :  { %15 = sbr.rel (!%p13_p4) target bundleno = 1 (0x1), region = 84 }

// kernel: resnet_block.3
= control target key start
LH: loop header
LB: loop body
LE: loop exit
PB: predicated region body
PF: predicated region fallthrough
CT: control target
= control target key end

     0   :  { %s5301_s24 = smov 0   ;;  %s6422_s0 = inlined_call_operand.vmem [shape: bf16[2,16,16,128], index: 0, kind: input, shape index: {}]   ;;  %s6423_s1 = inlined_call_operand.vmem [shape: f32[1,128], index: 1, kind: input, shape index: {}]   ;;  %s6424_s2 = inlined_call_operand.vmem [shape: f32[1,128], index: 2, kind: input, shape index: {}]   ;;  %s6425_s3 = inlined_call_operand.vmem [shape: f32[20,128], index: 3, kind: input, shape index: {}]   ;;  %s6426_s4 = inlined_call_operand.vmem [shape: bf16[9,128,128], index: 4, kind: input, shape index: {}]   ;;  %s6427_s5 = inlined_call_operand.vmem [shape: f32[1,128], index: 5, kind: input, shape index: {}]   ;;  %s6428_s6 = inlined_call_operand.vmem [shape: f32[2,16,16,128], index: 6, kind: input, shape index: {}]   ;;  %s6429_s7 = inlined_call_operand.vmem [shape: f32[2,16,16,128], index: 7, kind: output, shape index: {}]  }
   0x1 LB: > { %s3815_s25 = sadd.s32 4294967295, %s5258_s24   ;;  %p3819_p0 = scmp.ge.s32.totalorder %s5258_s24, 1  ;;  %s5258_s24 = sphi %s5301_s24, %s17_s24  }
   0x2   : > { %p247_p1 = scmp.lt.s32.totalorder %s5258_s24, 3 }
   0x4   : > { %p248_p2 = pnand %p3819_p0, %p247_p1 }
   0x5   : > { %p5311_p3 = scmp.lt.s32.totalorder (!%p248_p2), %s3815_s25, 1  ;;  %v5260_v0 = vmov (!%p248_p2), 0.0   ;;  %vm482_vm0 = vcmask (!%p248_p2), 1043456  }
   0x6   : > { %251 = sbr.rel (%p248_p2) target bundleno = 851 (0x353), region = 48  ;;  %881 = vst [vmem:[#allocation2 + $0x168] sm:$0xff] (!%p248_p2), %v5260_v0  ;;  %882 = vst [vmem:[#allocation2 + $0x170] sm:$0xff] (!%p248_p2), %v5260_v0 }
   0x7   : > { %883 = vst [vmem:[#allocation2 + $0x178] sm:$0x3] (!%p248_p2), %v5260_v0  ;;  %884 = vst [vmem:[#allocation2 + $0x180] sm:$0xff] (!%p248_p2), %v5260_v0 }
   0x8   : > { %885 = vst [vmem:[#allocation2 + $0x188] sm:$0xff] (!%p248_p2), %v5260_v0  ;;  %886 = vst [vmem:[#allocation2 + $0x190] sm:$0x3] (!%p248_p2), %v5260_v0 }
   0x9   : > { %836 = vst [vmem:[#allocation2] sm:$0xff] (!%p248_p2), %v5260_v0  ;;  %837 = vst [vmem:[#allocation2 + $0x8] sm:$0xff] (!%p248_p2), %v5260_v0 }
   0xa   : > { %838 = vst [vmem:[#allocation2 + $0x10] sm:$0x3] (!%p248_p2), %v5260_v0  ;;  %839 = vst [vmem:[#allocation2 + $0x18] sm:$0xff] (!%p248_p2), %v5260_v0 }
   0xb   : > { %840 = vst [vmem:[#allocation2 + $0x20] sm:$0xff] (!%p248_p2), %v5260_v0  ;;  %841 = vst [vmem:[#allocation2 + $0x28] sm:$0x3] (!%p248_p2), %v5260_v0 }
   0xc   : > { %842 = vst [vmem:[#allocation2 + $0x30] sm:$0xff] (!%p248_p2), %v5260_v0  ;;  %843 = vst [vmem:[#allocation2 + $0x38] sm:$0xff] (!%p248_p2), %v5260_v0 }
   0xd   : > { %844 = vst [vmem:[#allocation2 + $0x40] sm:$0x3] %v5260_v0  ;;  %845 = vst [vmem:[#allocation2 + $0x48] sm:$0xff] %v5260_v0  ;;  %s6432_s25 = smov (!%p5311_p3, %s3815_s25), 1 }
   0xe   : > { %846 = vst [vmem:[#allocation2 + $0x50] sm:$0xff] %v5260_v0  ;;  %847 = vst [vmem:[#allocation2 + $0x58] sm:$0x3] %v5260_v0  ;;  %s4030_s27 = sshll.u32 %s6432_s25, 7  ;;  %s4031_s10 = sshll.u32 %s6432_s25, 8 }
   0xf   : > { %848 = vst [vmem:[#allocation2 + $0x60] sm:$0xff] %v5260_v0  ;;  %849 = vst [vmem:[#allocation2 + $0x68] sm:$0xff] %v5260_v0  ;;  %s5325_s30 = scalar_lea.vmem %s6422_s0, %s4030_s27  ;;  %s6304_s13 = scalar_lea.vmem %s6428_s6, %s4031_s10 }
  0x10   : > { %850 = vst [vmem:[#allocation2 + $0x70] sm:$0x3] %v5260_v0  ;;  %851 = vst [vmem:[#allocation2 + $0x78] sm:$0xff] %v5260_v0  ;;  %v4034_v1 = vld [vmem:[%s5325_s30] sm:$0xff]   ;;  %v4097_v2 = vld [vmem:[%s5325_s30 + $0x8] sm:$0xff]   ;;  %s6317_s17 = scalar_lea.vmem %s6429_s7, %s4031_s10 }
  0x11   : > { %852 = vst [vmem:[#allocation2 + $0x80] sm:$0xff] %v5260_v0  ;;  %853 = vst [vmem:[#allocation2 + $0x88] sm:$0x3] %v5260_v0  ;;  %v5329_v3 = vunpack.c.l.bf16 %v4034_v1  ;;  %v5331_v4 = vunpack.c.h.bf16 %v4034_v1  ;;  %v4098_v5 = vld [vmem:[%s5325_s30 + $0x10] sm:$0xff]   ;;  %v5334_v6 = vunpack.c.l.bf16 %v4097_v2  ;;  %v5336_v7 = vunpack.c.h.bf16 %v4097_v2  ;;  %v4099_v9 = vld [vmem:[%s5325_s30 + $0x18] sm:$0xff]  }
  0x12   : > { %854 = vst [vmem:[#allocation2 + $0x90] sm:$0xff] %v5260_v0  ;;  %855 = vst [vmem:[#allocation2 + $0x98] sm:$0xff] %v5260_v0  ;;  %v5341_v10 = vunpack.c.l.bf16 %v4098_v5  ;;  %v5344_v12 = vunpack.c.h.bf16 %v4098_v5  ;;  %v4100_v14 = vld [vmem:[%s5325_s30 + $0x20] sm:$0xff]   ;;  %v5352_v17 = vunpack.c.l.bf16 %v4099_v9  ;;  %v5357_v20 = vunpack.c.h.bf16 %v4099_v9  ;;  %v4101_v22 = vld [vmem:[%s5325_s30 + $0x28] sm:$0xff]  }
  0x13   : > { %856 = vst [vmem:[#allocation2 + $0xa0] sm:$0x3] %v5260_v0  ;;  %857 = vst [vmem:[#allocation2 + $0xa8] sm:$0xff] %v5260_v0  ;;  %v369_v8 = vadd.f32 %v5331_v4, %v5329_v3  ;;  %v406_v15 = vmul.f32 %v5329_v3, %v5329_v3  ;;  %v407_v16 = vmul.f32 %v5331_v4, %v5331_v4  ;;  %v5363_v25 = vunpack.c.l.bf16 %v4100_v14  ;;  %v4102_v31 = vld [vmem:[%s5325_s30 + $0x30] sm:$0xff]   ;;  %v4103_v40 = vld [vmem:[%s5325_s30 + $0x38] sm:$0xff]  }
  0x14   : > { %858 = vst [vmem:[#allocation2 + $0xb0] sm:$0xff] %v5260_v0  ;;  %859 = vst [vmem:[#allocation2 + $0xb8] sm:$0x3] %v5260_v0  ;;  %v408_v19 = vmul.f32 %v5334_v6, %v5334_v6  ;;  %v409_v23 = vmul.f32 %v5336_v7, %v5336_v7  ;;  %v410_v27 = vmul.f32 %v5341_v10, %v5341_v10  ;;  %v5368_v29 = vunpack.c.h.bf16 %v4100_v14  ;;  %v4104_v49 = vld [vmem:[%s5325_s30 + $0x40] sm:$0xff]   ;;  %v4105_v58 = vld [vmem:[%s5325_s30 + $0x48] sm:$0xff]  }
  0x15   : > { %860 = vst [vmem:[#allocation2 + $0xc0] sm:$0xff] %v5260_v0  ;;  %861 = vst [vmem:[#allocation2 + $0xc8] sm:$0xff] %v5260_v0  ;;  %v370_v11 = vadd.f32 %v5334_v6, %v369_v8  ;;  %v438_v24 = vadd.f32 %v407_v16, %v406_v15  ;;  %v411_v32 = vmul.f32 %v5344_v12, %v5344_v12  ;;  %v5374_v34 = vunpack.c.l.bf16 %v4101_v22  ;;  %v4106_v5 = vld [vmem:[%s5325_s30 + $0x50] sm:$0xff]  }
  0x16   : > { %862 = vst [vmem:[#allocation2 + $0xd0] sm:$0x3] %v5260_v0  ;;  %863 = vst [vmem:[#allocation2 + $0xd8] sm:$0xff] %v5260_v0  ;;  %v412_v36 = vmul.f32 %v5352_v17, %v5352_v17  ;;  %v5379_v38 = vunpack.c.h.bf16 %v4101_v22  ;;  %v413_v41 = vmul.f32 %v5357_v20, %v5357_v20  ;;  %v5385_v43 = vunpack.c.l.bf16 %v4102_v31 }
  0x17   : > { %864 = vst [vmem:[#allocation2 + $0xe0] sm:$0xff] %v5260_v0  ;;  %865 = vst [vmem:[#allocation2 + $0xe8] sm:$0x3] %v5260_v0  ;;  %v371_v13 = vadd.f32 %v5336_v7, %v370_v11  ;;  %v439_v28 = vadd.f32 %v438_v24, %v408_v19  ;;  %v414_v45 = vmul.f32 %v5363_v25, %v5363_v25  ;;  %v5390_v47 = vunpack.c.h.bf16 %v4102_v31  ;;  %v4107_v19 = vld [vmem:[%s5325_s30 + $0x58] sm:$0xff]   ;;  %v4108_v31 = vld [vmem:[%s5325_s30 + $0x60] sm:$0xff]  }
  0x18   : > { %866 = vst [vmem:[#allocation2 + $0xf0] sm:$0xff] %v5260_v0  ;;  %867 = vst [vmem:[#allocation2 + $0xf8] sm:$0xff] %v5260_v0  ;;  %v415_v50 = vmul.f32 %v5368_v29, %v5368_v29  ;;  %v5396_v52 = vunpack.c.l.bf16 %v4103_v40  ;;  %v416_v54 = vmul.f32 %v5374_v34, %v5374_v34  ;;  %v5401_v56 = vunpack.c.h.bf16 %v4103_v40 }
  0x19   : > { %868 = vst [vmem:[#allocation2 + $0x100] sm:$0x3] %v5260_v0  ;;  %869 = vst [vmem:[#allocation2 + $0x108] sm:$0xff] %v5260_v0  ;;  %v372_v18 = vadd.f32 %v5341_v10, %v371_v13  ;;  %v440_v33 = vadd.f32 %v439_v28, %v409_v23  ;;  %v417_v59 = vmul.f32 %v5379_v38, %v5379_v38  ;;  %v5407_v61 = vunpack.c.l.bf16 %v4104_v49 }
  0x1a   : > { %870 = vst [vmem:[#allocation2 + $0x110] sm:$0xff] %v5260_v0  ;;  %871 = vst [vmem:[#allocation2 + $0x118] sm:$0x3] %v5260_v0  ;;  %v418_v63 = vmul.f32 %v5385_v43, %v5385_v43  ;;  %v5412_v1 = vunpack.c.h.bf16 %v4104_v49  ;;  %v419_v8 = vmul.f32 %v5390_v47, %v5390_v47  ;;  %v5418_v11 = vunpack.c.l.bf16 %v4105_v58 }
  0x1b   : > { %872 = vst [vmem:[#allocation2 + $0x120] sm:$0xff] %v5260_v0  ;;  %873 = vst [vmem:[#allocation2 + $0x128] sm:$0xff] %v5260_v0  ;;  %v373_v21 = vadd.f32 %v5344_v12, %v372_v18  ;;  %v441_v37 = vadd.f32 %v440_v33, %v410_v27  ;;  %v420_v14 = vmul.f32 %v5396_v52, %v5396_v52  ;;  %v5423_v16 = vunpack.c.h.bf16 %v4105_v58 }
  0x1c   : > { %874 = vst [vmem:[#allocation2 + $0x130] sm:$0x3] %v5260_v0  ;;  %875 = vst [vmem:[#allocation2 + $0x138] sm:$0xff] %v5260_v0  ;;  %v5429_v23 = vunpack.c.l.bf16 %v4106_v5  ;;  %v5434_v28 = vunpack.c.h.bf16 %v4106_v5  ;;  %v5445_v40 = vunpack.c.h.bf16 %v4107_v19 }
  0x1d   : > { %876 = vst [vmem:[#allocation2 + $0x140] sm:$0xff] %v5260_v0  ;;  %877 = vst [vmem:[#allocation2 + $0x148] sm:$0x3] %v5260_v0  ;;  %v374_v26 = vadd.f32 %v5352_v17, %v373_v21  ;;  %v442_v42 = vadd.f32 %v441_v37, %v411_v32  ;;  %v421_v21 = vmul.f32 %v5401_v56, %v5401_v56 }
  0x1e   : > { %878 = vst [vmem:[#allocation2 + $0x150] sm:$0xff] %v5260_v0  ;;  %879 = vst [vmem:[#allocation2 + $0x158] sm:$0xff] %v5260_v0  ;;  %v423_v32 = vmul.f32 %v5412_v1, %v5412_v1  ;;  %v424_v37 = vmul.f32 %v5418_v11, %v5418_v11  ;;  %v426_v49 = vmul.f32 %v5429_v23, %v5429_v23 }
  0x1f   : > { %880 = vst [vmem:[#allocation2 + $0x160] sm:$0x3] %v5260_v0  ;;  %887 = vst [vmem:[#allocation2 + $0x198] sm:$0xff] %v5260_v0  ;;  %v375_v30 = vadd.f32 %v5357_v20, %v374_v26  ;;  %v443_v46 = vadd.f32 %v442_v42, %v412_v36  ;;  %v422_v26 = vmul.f32 %v5407_v61, %v5407_v61 }
  0x20   : > { %888 = vst [vmem:[#allocation2 + $0x1a0] sm:$0xff] %v5260_v0  ;;  %889 = vst [vmem:[#allocation2 + $0x1a8] sm:$0x3] %v5260_v0  ;;  %v425_v42 = vmul.f32 %v5423_v16, %v5423_v16 }
  0x21   : > { %v376_v35 = vadd.f32 %v5363_v25, %v375_v30  ;;  %v444_v51 = vadd.f32 %v443_v46, %v413_v41 }
  0x23   : > { %v377_v39 = vadd.f32 %v5368_v29, %v376_v35  ;;  %v445_v55 = vadd.f32 %v444_v51, %v414_v45  ;;  %v5440_v35 = vunpack.c.l.bf16 %v4107_v19  ;;  %v5450_v45 = vunpack.c.l.bf16 %v4108_v31 }
  0x24   : > { %v5456_v51 = vunpack.c.h.bf16 %v4108_v31 }
  0x25   : > { %v378_v44 = vadd.f32 %v5374_v34, %v377_v39  ;;  %v446_v60 = vadd.f32 %v445_v55, %v415_v50 }
  0x27   : > { %v379_v48 = vadd.f32 %v5379_v38, %v378_v44  ;;  %v447_v0 = vadd.f32 %v446_v60, %v416_v54  ;;  %v427_v54 = vmul.f32 %v5434_v28, %v5434_v28  ;;  %v428_v60 = vmul.f32 %v5440_v35, %v5440_v35 }
  0x29   : > { %v380_v53 = vadd.f32 %v5385_v43, %v379_v48  ;;  %v448_v9 = vadd.f32 %v447_v0, %v417_v59  ;;  %v4109_v48 = vld [vmem:[%s5325_s30 + $0x68] sm:$0xff]   ;;  %v4110_v59 = vld [vmem:[%s5325_s30 + $0x70] sm:$0xff]  }
  0x2b   : > { %v381_v57 = vadd.f32 %v5390_v47, %v380_v53  ;;  %v449_v15 = vadd.f32 %v448_v9, %v418_v63  ;;  %v5467_v63 = vunpack.c.h.bf16 %v4109_v48 }
  0x2d   : > { %v382_v62 = vadd.f32 %v5396_v52, %v381_v57  ;;  %v450_v22 = vadd.f32 %v449_v15, %v419_v8  ;;  %v5461_v57 = vunpack.c.l.bf16 %v4109_v48  ;;  %v5472_v8 = vunpack.c.l.bf16 %v4110_v59 }
  0x2f   : > { %v383_v2 = vadd.f32 %v5401_v56, %v382_v62  ;;  %v451_v27 = vadd.f32 %v450_v22, %v420_v14  ;;  %v430_v14 = vmul.f32 %v5450_v45, %v5450_v45 }
  0x31   : > { %v384_v13 = vadd.f32 %v5407_v61, %v383_v2  ;;  %v452_v33 = vadd.f32 %v451_v27, %v421_v21  ;;  %v429_v2 = vmul.f32 %v5445_v40, %v5445_v40  ;;  %v431_v21 = vmul.f32 %v5456_v51, %v5456_v51 }
  0x32   : > { %v432_v27 = vmul.f32 %v5461_v57, %v5461_v57 }
  0x33   : > { %v385_v18 = vadd.f32 %v5412_v1, %v384_v13  ;;  %v453_v39 = vadd.f32 %v452_v33, %v422_v26  ;;  %v4111_v13 = vld [vmem:[%s5325_s30 + $0x78] sm:$0xff]   ;;  %v433_v33 = vmul.f32 %v5467_v63, %v5467_v63 }
  0x34   : > { %v5488_v31 = vunpack.c.h.bf16 %v4111_v13 }
  0x35   : > { %v386_v24 = vadd.f32 %v5418_v11, %v385_v18  ;;  %v454_v44 = vadd.f32 %v453_v39, %v423_v32  ;;  %v5478_v18 = vunpack.c.h.bf16 %v4110_v59  ;;  %v434_v39 = vmul.f32 %v5472_v8, %v5472_v8 }
  0x37   : > { %v387_v30 = vadd.f32 %v5423_v16, %v386_v24  ;;  %v455_v50 = vadd.f32 %v454_v44, %v424_v37  ;;  %v5483_v24 = vunpack.c.l.bf16 %v4111_v13  ;;  %v435_v44 = vmul.f32 %v5478_v18, %v5478_v18 }
  0x39   : > { %v388_v36 = vadd.f32 %v5429_v23, %v387_v30  ;;  %v456_v55 = vadd.f32 %v455_v50, %v425_v42 }
  0x3b   : > { %v389_v41 = vadd.f32 %v5434_v28, %v388_v36  ;;  %v457_v62 = vadd.f32 %v456_v55, %v426_v49  ;;  %v436_v49 = vmul.f32 %v5483_v24, %v5483_v24 }
  0x3d   : > { %v390_v46 = vadd.f32 %v5440_v35, %v389_v41  ;;  %v458_v5 = vadd.f32 %v457_v62, %v427_v54  ;;  %v437_v54 = vmul.f32 %v5488_v31, %v5488_v31 }
  0x3f   : > { %v391_v53 = vadd.f32 %v5445_v40, %v390_v46  ;;  %v459_v15 = vadd.f32 %v458_v5, %v428_v60  ;;  %v5511_v5 = vld [vmem:[%s6425_s3 + $0x10] sm:$0xf] }
  0x41   : > { %v392_v58 = vadd.f32 %v5450_v45, %v391_v53  ;;  %v460_v22 = vadd.f32 %v459_v15, %v429_v2  ;;  %v5506_v2 = vld [vmem:[%s6425_s3] sm:$0xff] }
  0x43   : > { %v393_v0 = vadd.f32 %v5456_v51, %v392_v58  ;;  %v461_v30 = vadd.f32 %v460_v22, %v430_v14  ;;  %v5516_v14 = vld [vmem:[%s6425_s3 + $0x8] sm:$0xff] }
  0x45   : > { %v394_v9 = vadd.f32 %v5461_v57, %v393_v0  ;;  %v462_v36 = vadd.f32 %v461_v30, %v431_v21 }
  0x47   : > { %v395_v19 = vadd.f32 %v5467_v63, %v394_v9  ;;  %v463_v41 = vadd.f32 %v462_v36, %v432_v27 }
  0x49   : > { %v396_v26 = vadd.f32 %v5472_v8, %v395_v19  ;;  %v464_v46 = vadd.f32 %v463_v41, %v433_v33 }
  0x4b   : > { %v397_v32 = vadd.f32 %v5478_v18, %v396_v26  ;;  %v465_v50 = vadd.f32 %v464_v46, %v434_v39  ;;  %v5043_v46 = vld [vmem:[%s6426_s4 + $0x48] sm:$0xff]  }
  0x4d   : > { %v398_v37 = vadd.f32 %v5483_v24, %v397_v32  ;;  %v466_v55 = vadd.f32 %v465_v50, %v435_v44  ;;  %v5042_v44 = vld [vmem:[%s6426_s4 + $0x100] sm:$0xff]   ;;  %v5046_v50 = vld [vmem:[%s6426_s4 + $0x110] sm:$0xff]  }
  0x4e   : > { %4520 = vmatprep.subr.bf16.mxu0 %v5042_v44 }
  0x4f   : > { %v399_v42 = vadd.f32 %v5488_v31, %v398_v37  ;;  %v467_v59 = vadd.f32 %v466_v55, %v436_v49  ;;  %4521 = vmatpush3.bf16.msra.mxu0 %v5042_v44  ;;  %v5045_v49 = vld [vmem:[%s6426_s4 + $0x50] sm:$0xff]   ;;  %v5049_v55 = vld [vmem:[%s6426_s4 + $0x60] sm:$0xff]  }
  0x51   : > { %v400_v48 = vrot.slane %v399_v42, 4  ;;  %v468_v62 = vadd.f32 %v467_v59, %v437_v54  ;;  %v5048_v54 = vld [vmem:[%s6426_s4 + $0x118] sm:$0xff]   ;;  %v5051_v59 = vld [vmem:[%s6426_s4 + $0x68] sm:$0xff]  }
  0x53   : > { %v401_v53 = vadd.f32 %v400_v48, %v399_v42  ;;  %v469_v9 = vrot.slane %v468_v62, 4  ;;  %v5041_v42 = vld [vmem:[%s6426_s4 + $0x40] sm:$0xff]   ;;  %v5044_v48 = vld [vmem:[%s6426_s4 + $0x108] sm:$0xff]  }
  0x54   : > { %4328 = vmatprep.subr.bf16.mxu1 %v5041_v42  ;;  %4522 = vmatprep.subr.bf16.mxu0 %v5044_v48 }
  0x55   : > { %v402_v58 = vrot.slane %v401_v53, 2  ;;  %v470_v15 = vadd.f32 %v469_v9, %v468_v62  ;;  %4329 = vmatpush3.bf16.msra.mxu1 %v5041_v42  ;;  %4523 = vmatpush3.bf16.msra.mxu0 %v5044_v48  ;;  %v5053_v62 = vld [vmem:[%s6426_s4 + $0x70] sm:$0xff]   ;;  %v5055_v9 = vld [vmem:[%s6426_s4 + $0x78] sm:$0xff]  }
  0x56   : > { %4330 = vmatprep.subr.bf16.mxu1 %v5043_v46  ;;  %4524 = vmatprep.subr.bf16.mxu0 %v5046_v50 }
  0x57   : > { %v403_v60 = vadd.f32 %v402_v58, %v401_v53  ;;  %v471_v22 = vrot.slane %v470_v15, 2  ;;  %v5047_v53 = vld [vmem:[%s6426_s4 + $0x58] sm:$0xff]   ;;  %v5050_v58 = vld [vmem:[%s6426_s4 + $0x120] sm:$0xff]  }
  0x59   : > { %v404_v0 = vrot.slane %v403_v60, 1  ;;  %v472_v30 = vadd.f32 %v471_v22, %v470_v15  ;;  %4331 = vmatpush3.bf16.msra.mxu1 %v5043_v46  ;;  %4525 = vmatpush3.bf16.msra.mxu0 %v5046_v50  ;;  %v987_v15 = vld [vmem:[#allocation2 + $0x1] sm:$0xff] }
  0x5a   : > { %4332 = vmatprep.subr.bf16.mxu1 %v5045_v49  ;;  %4526 = vmatprep.subr.bf16.mxu0 %v5048_v54  ;;  %v5577_v22 = vld [vmem:[%s6426_s4 + $0x140] sm:$0xff]  }
  0x5b   : > { %v405_v13 = vadd.f32 %v404_v0, %v403_v60  ;;  %v473_v32 = vrot.slane %v472_v30, 1  ;;  %v5052_v60 = vld [vmem:[%s6426_s4 + $0x128] sm:$0xff]   ;;  %v5054_v0 = vld [vmem:[%s6426_s4 + $0x130] sm:$0xff]  }
  0x5d   : > { %v475_v19 = vmul.f32 %v405_v13, %v5506_v2  ;;  %v477_v21 = vmul.f32 %v405_v13, %v5511_v5  ;;  %v476_v27 = vmul.f32 %v405_v13, %v5516_v14  ;;  %v474_v33 = vadd.f32 %v473_v32, %v472_v30  ;;  %4333 = vmatpush3.bf16.msra.mxu1 %v5045_v49  ;;  %v5056_v13 = vld [vmem:[%s6426_s4 + $0x138] sm:$0xff]  }
  0x5e   : > { %4334 = vmatprep.subr.bf16.mxu1 %v5047_v53  ;;  %4527 = vmatpush3.bf16.msra.mxu0 %v5048_v54 }
  0x5f   : > { %478 = vadd.xlane.f32.xlu0 %v475_v19  ;;  %v483_v26 = vsel %vm482_vm0, %v477_v21, 0.0  ;;  %v489_v36 = vmul.f32 %v474_v33, %v5506_v2  ;;  %v490_v37 = vmul.f32 %v474_v33, %v5516_v14  ;;  %v491_v39 = vmul.f32 %v474_v33, %v5511_v5  ;;  %4528 = vmatprep.subr.bf16.mxu0 %v5050_v58  ;;  %v988_v19 = vld [vmem:[#allocation2 + $0x9] sm:$0xff] }
  0x60   : > { %484 = vadd.xlane.f32.xlu1 %v483_v26  ;;  %v1019_v21 = vpack.c.bf16 %v988_v19, %v987_v15  ;;  %v5582_v26 = vld [vmem:[%s6426_s4] sm:$0xff]  }
  0x61   : > { %v496_v41 = vsel %vm482_vm0, %v491_v39, 0.0  ;;  %4335 = vmatpush3.bf16.msra.mxu1 %v5047_v53 }
  0x62   : > { %4336 = vmatprep.subr.bf16.mxu1 %v5049_v55  ;;  %4529 = vmatpush3.bf16.msra.mxu0 %v5050_v58 }
  0x63   : > { %480 = vadd.xlane.f32.xlu0 %v476_v27  ;;  %4530 = vmatprep.subr.bf16.mxu0 %v5052_v60 }
  0x64   : > { %492 = vadd.xlane.f32.xlu1 %v489_v36  ;;  %4344 = vmatprep.mubr.bf16.mxu1 %v1019_v21 }
  0x65   : > { %4337 = vmatpush3.bf16.msra.mxu1 %v5049_v55 }
  0x66   : > { %4338 = vmatprep.subr.bf16.mxu1 %v5051_v59  ;;  %4531 = vmatpush3.bf16.msra.mxu0 %v5052_v60 }
  0x67   : > { %494 = vadd.xlane.f32.xlu0 %v490_v37  ;;  %4532 = vmatprep.subr.bf16.mxu0 %v5054_v0 }
  0x68   : > { %497 = vadd.xlane.f32.xlu1 %v496_v41 }
  0x69   : > { %4339 = vmatpush3.bf16.msra.mxu1 %v5051_v59 }
  0x6a   : > { %4340 = vmatprep.subr.bf16.mxu1 %v5053_v62  ;;  %4533 = vmatpush3.bf16.msra.mxu0 %v5054_v0 }
  0x6b   : > { %4534 = vmatprep.subr.bf16.mxu0 %v5056_v13 }
  0x6d   : > { %4341 = vmatpush3.bf16.msra.mxu1 %v5053_v62 }
  0x6e   : > { %4342 = vmatprep.subr.bf16.mxu1 %v5055_v9  ;;  %4535 = vmatpush3.bf16.msra.mxu0 %v5056_v13 }
  0x6f   : > { %4568 = vmatprep.subr.bf16.mxu0 %v5577_v22 }
  0x71   : > { %4343 = vmatpush3.bf16.msra.mxu1 %v5055_v9 }
  0x72   : > { %4376 = vmatprep.subr.bf16.mxu1 %v5582_v26 }
  0xec   : > { %v479_v27 = vpop.xlane.xlu0 %478 }
  0xed   : > { %v485_v30 = vpop.xlane.xlu1 %484  ;;  %v486_v33 = vmul.f32 0.00390625, %v479_v27 }
  0xee   : > { %v488_v37 = vmul.f32 0.00390625, %v485_v30 }
  0xef   : > { %v502_v42 = vmul.f32 %v486_v33, %v486_v33  ;;  %v511_v15 = vmul.f32 %v486_v33, %v5506_v2 }
  0xf0   : > { %v481_v32 = vpop.xlane.xlu0 %480  ;;  %v504_v54 = vmul.f32 %v488_v37, %v488_v37  ;;  %v513_v19 = vmul.f32 %v488_v37, %v5511_v5 }
  0xf1   : > { %v487_v36 = vmul.f32 0.00390625, %v481_v32  ;;  %v493_v39 = vpop.xlane.xlu1 %492 }
  0xf2   : > { %v499_v46 = vmul.f32 0.00390625, %v493_v39  ;;  %v515_v39 = vsel %vm482_vm0, %v513_v19, 0.0 }
  0xf3   : > { %v503_v44 = vmul.f32 %v487_v36, %v487_v36  ;;  %v512_v0 = vmul.f32 %v487_v36, %v5516_v14 }
  0xf4   : > { %v495_v41 = vpop.xlane.xlu0 %494  ;;  %v505_v49 = vsub.f32 %v499_v46, %v502_v42 }
  0xf5   : > { %v500_v48 = vmul.f32 0.00390625, %v495_v41  ;;  %v498_v53 = vpop.xlane.xlu1 %497  ;;  %v514_v30 = vadd.f32 %v512_v0, %v511_v15 }
  0xf6   : > { %v508_v55 = vmax.f32 %v505_v49, 0.0  ;;  %v501_v59 = vmul.f32 0.00390625, %v498_v53 }
  0xf7   : > { %v506_v50 = vsub.f32 %v500_v48, %v503_v44  ;;  %v516_v42 = vadd.f32 %v515_v39, %v514_v30 }
  0xf8   : > { %v507_v62 = vsub.f32 %v501_v59, %v504_v54  ;;  %v523_v9 = vmul.f32 %v508_v55, %v5506_v2  ;;  %v332_v59 = vld [vmem:[%s6423_s1] sm:$0x1] }
  0xf9   : > { %v509_v58 = vmax.f32 %v506_v50, 0.0  ;;  %v517_v46 = vrot.slane %v516_v42, 4 }
  0xfa   : > { %v510_v13 = vmax.f32 %v507_v62, 0.0 }
  0xfb   : > { %v524_v60 = vmul.f32 %v509_v58, %v5516_v14  ;;  %v518_v48 = vadd.f32 %v517_v46, %v516_v42 }
  0xfc   : > { %v525_v27 = vmul.f32 %v510_v13, %v5511_v5  ;;  %v570_v5 = vlaneseq }
  0xfd   : > { %v526_v21 = vadd.f32 %v524_v60, %v523_v9  ;;  %v519_v2 = vrot.slane %v518_v48, 2 }
  0xfe   : > { %v527_v32 = vsel %vm482_vm0, %v525_v27, 0.0  ;;  %v571_v55 = vshrl.u32 %v570_v5, 7 }
  0xff   : > { %v528_v41 = vadd.f32 %v527_v32, %v526_v21  ;;  %v520_v53 = vadd.f32 %v519_v2, %v518_v48 }
 0x100   : > { %v572_v60 = vsub.s32 0, %v571_v55 }
 0x101   : > { %v529_v44 = vrot.slane %v528_v41, 4  ;;  %v521_v54 = vrot.slane %v520_v53, 1 }
 0x103   : > { %v530_v14 = vadd.f32 %v529_v44, %v528_v41  ;;  %v5594_v58 = vadd.f32 %v521_v54, %v520_v53 }
 0x105   : > { %v531_v36 = vrot.slane %v530_v14, 2  ;;  %v555_v0 = vsub.f32 %v5418_v11, %v5594_v58  ;;  %v556_v9 = vsub.f32 %v5423_v16, %v5594_v58  ;;  %v559_v15 = vsub.f32 %v5440_v35, %v5594_v58 }
 0x106   : > { %v560_v19 = vsub.f32 %v5445_v40, %v5594_v58  ;;  %v561_v21 = vsub.f32 %v5450_v45, %v5594_v58  ;;  %v562_v27 = vsub.f32 %v5456_v51, %v5594_v58  ;;  %v563_v30 = vsub.f32 %v5461_v57, %v5594_v58  ;;  %v5630_v57 = vld [vmem:[%s6424_s2] ss:$0 sm:$0xff] }
 0x107   : > { %v532_v49 = vadd.f32 %v531_v36, %v530_v14  ;;  %v564_v32 = vsub.f32 %v5467_v63, %v5594_v58  ;;  %v565_v39 = vsub.f32 %v5472_v8, %v5594_v58  ;;  %v566_v35 = vsub.f32 %v5478_v18, %v5594_v58 }
 0x108   : > { %v567_v40 = vsub.f32 %v5483_v24, %v5594_v58  ;;  %v568_v45 = vsub.f32 %v5488_v31, %v5594_v58  ;;  %v537_v51 = vsub.f32 %v5329_v3, %v5594_v58  ;;  %v538_v18 = vsub.f32 %v5331_v4, %v5594_v58 }
 0x109   : > { %v533_v50 = vrot.slane %v532_v49, 1  ;;  %v539_v24 = vsub.f32 %v5334_v6, %v5594_v58 }
 0x10b   : > { %v534_v33 = vadd.f32 %v533_v50, %v532_v49 }
 0x10d   : > { %v535_v37 = vadd.f32 1e-06, %v534_v33 }
 0x10f   : > { %5113 = vrsqrt.f32 %v535_v37 }
 0x119   : > { %v5114_v62 = vpop.eup %5113 }
 0x11a   : > { %v569_v13 = vmul.f32 %v5114_v62, %v332_v59 }
 0x11c   : > { %v5617_v41 = vrot.slane %v569_v13, %v572_v60 }
 0x11e   : > { %v596_v63 = vmul.f32 %v5617_v41, %v559_v15  ;;  %v597_v8 = vmul.f32 %v5617_v41, %v560_v19  ;;  %v598_v31 = vmul.f32 %v5617_v41, %v561_v21  ;;  %v599_v42 = vmul.f32 %v5617_v41, %v562_v27 }
 0x11f   : > { %v600_v3 = vmul.f32 %v5617_v41, %v563_v30  ;;  %v601_v44 = vmul.f32 %v5617_v41, %v564_v32  ;;  %v602_v46 = vmul.f32 %v5617_v41, %v565_v39  ;;  %v603_v14 = vmul.f32 %v5617_v41, %v566_v35 }
 0x120   : > { %v604_v36 = vmul.f32 %v5617_v41, %v567_v40  ;;  %v605_v48 = vmul.f32 %v5617_v41, %v568_v45  ;;  %v5647_v4 = vadd.f32 %v5630_v57, %v596_v63  ;;  %v5650_v6 = vadd.f32 %v5630_v57, %v597_v8 }
 0x121   : > { %v5653_v49 = vadd.f32 %v5630_v57, %v598_v31  ;;  %v5656_v50 = vadd.f32 %v5630_v57, %v599_v42  ;;  %v5659_v2 = vadd.f32 %v5630_v57, %v600_v3  ;;  %v5662_v33 = vadd.f32 %v5630_v57, %v601_v44 }
 0x122   : > { %v5665_v37 = vadd.f32 %v5630_v57, %v602_v46  ;;  %v5668_v53 = vadd.f32 %v5630_v57, %v603_v14  ;;  %v5671_v5 = vadd.f32 %v5630_v57, %v604_v36  ;;  %v5674_v54 = vadd.f32 %v5630_v57, %v605_v48 }
 0x123   : > { %v666_v55 = vsub.f32 0.0, %v5647_v4  ;;  %v667_v59 = vsub.f32 0.0, %v5650_v6  ;;  %v668_v60 = vsub.f32 0.0, %v5653_v49  ;;  %v669_v62 = vsub.f32 0.0, %v5656_v50 }
 0x124   : > { %v670_v13 = vsub.f32 0.0, %v5659_v2  ;;  %v671_v15 = vsub.f32 0.0, %v5662_v33  ;;  %v672_v19 = vsub.f32 0.0, %v5665_v37  ;;  %v673_v21 = vsub.f32 0.0, %v5668_v53 }
 0x125   : > { %v540_v27 = vsub.f32 %v5336_v7, %v5594_v58  ;;  %v541_v30 = vsub.f32 %v5341_v10, %v5594_v58  ;;  %v720_v32 = vmul.f32 1.442695, %v666_v55  ;;  %v722_v39 = vmul.f32 1.442695, %v667_v59 }
 0x126   : > { %v724_v35 = vmul.f32 1.442695, %v668_v60  ;;  %v574_v40 = vmul.f32 %v5617_v41, %v537_v51  ;;  %v674_v45 = vsub.f32 0.0, %v5671_v5  ;;  %v726_v63 = vmul.f32 1.442695, %v669_v62 }
 0x127   : > { %v575_v8 = vmul.f32 %v5617_v41, %v538_v18  ;;  %v542_v31 = vsub.f32 %v5344_v12, %v5594_v58  ;;  %v675_v42 = vsub.f32 0.0, %v5674_v54  ;;  %5115 = vpow2.f32 %v720_v32 }
 0x128   : > { %v728_v7 = vmul.f32 1.442695, %v670_v13  ;;  %v730_v3 = vmul.f32 1.442695, %v671_v15  ;;  %5117 = vpow2.f32 %v722_v39  ;;  %v732_v10 = vmul.f32 1.442695, %v672_v19 }
 0x129   : > { %v5695_v44 = vadd.f32 %v5630_v57, %v574_v40  ;;  %v5698_v51 = vadd.f32 %v5630_v57, %v575_v8  ;;  %5119 = vpow2.f32 %v724_v35  ;;  %v734_v46 = vmul.f32 1.442695, %v673_v21 }
 0x12a   : > { %v576_v18 = vmul.f32 %v5617_v41, %v539_v24  ;;  %v577_v14 = vmul.f32 %v5617_v41, %v540_v27  ;;  %5121 = vpow2.f32 %v726_v63  ;;  %v578_v48 = vmul.f32 %v5617_v41, %v541_v30 }
 0x12b   : > { %v644_v12 = vsub.f32 0.0, %v5695_v44  ;;  %v645_v36 = vsub.f32 0.0, %v5698_v51  ;;  %5123 = vpow2.f32 %v728_v7  ;;  %v736_v55 = vmul.f32 1.442695, %v674_v45 }
 0x12c   : > { %v5706_v59 = vadd.f32 %v5630_v57, %v576_v18  ;;  %v579_v60 = vmul.f32 %v5617_v41, %v542_v31  ;;  %5125 = vpow2.f32 %v730_v3  ;;  %v738_v62 = vmul.f32 1.442695, %v675_v42 }
 0x12d   : > { %v543_v24 = vsub.f32 %v5352_v17, %v5594_v58  ;;  %v544_v13 = vsub.f32 %v5357_v20, %v5594_v58  ;;  %5127 = vpow2.f32 %v732_v10  ;;  %v676_v15 = vmul.f32 1.442695, %v644_v12 }
 0x12e   : > { %v5714_v19 = vadd.f32 %v5630_v57, %v577_v14  ;;  %v646_v21 = vsub.f32 0.0, %v5706_v59  ;;  %5129 = vpow2.f32 %v734_v46  ;;  %v678_v27 = vmul.f32 1.442695, %v645_v36 }
 0x12f   : > { %v5718_v30 = vadd.f32 %v5630_v57, %v578_v48  ;;  %v545_v32 = vsub.f32 %v5363_v25, %v5594_v58  ;;  %5131 = vpow2.f32 %v736_v55  ;;  %v5723_v39 = vadd.f32 %v5630_v57, %v579_v60 }
 0x130   : > { %v680_v17 = vmul.f32 1.442695, %v646_v21  ;;  %v546_v20 = vsub.f32 %v5368_v29, %v5594_v58  ;;  %5133 = vpow2.f32 %v738_v62  ;;  %v580_v35 = vmul.f32 %v5617_v41, %v543_v24 }
 0x131   : > { %v547_v40 = vsub.f32 %v5374_v34, %v5594_v58  ;;  %v548_v45 = vsub.f32 %v5379_v38, %v5594_v58  ;;  %v5116_v63 = vpop.eup %5115  ;;  %5135 = vpow2.f32 %v676_v15  ;;  %v647_v25 = vsub.f32 0.0, %v5714_v19 }
 0x132   : > { %v549_v8 = vsub.f32 %v5385_v43, %v5594_v58  ;;  %v550_v31 = vsub.f32 %v5390_v47, %v5594_v58  ;;  %v5118_v29 = vpop.eup %5117  ;;  %v762_v42 = vadd.f32 1.0, %v5116_v63  ;;  %5137 = vpow2.f32 %v678_v27 }
 0x133   : > { %v648_v7 = vsub.f32 0.0, %v5718_v30  ;;  %v581_v34 = vmul.f32 %v5617_v41, %v544_v13  ;;  %v5120_v3 = vpop.eup %5119  ;;  %v763_v10 = vadd.f32 1.0, %v5118_v29  ;;  %5139 = vpow2.f32 %v680_v17 }
 0x134   : > { %v649_v38 = vsub.f32 0.0, %v5723_v39  ;;  %v551_v46 = vsub.f32 %v5396_v52, %v5594_v58  ;;  %v5122_v18 = vpop.eup %5121  ;;  %v764_v43 = vadd.f32 1.0, %v5120_v3  ;;  %5141 = vrcp.f32 %v762_v42 }
 0x135   : > { %v5743_v47 = vadd.f32 %v5630_v57, %v580_v35  ;;  %v552_v14 = vsub.f32 %v5401_v56, %v5594_v58  ;;  %v5124_v12 = vpop.eup %5123  ;;  %v765_v36 = vadd.f32 1.0, %v5122_v18  ;;  %5143 = vrcp.f32 %v763_v10 }
 0x136   : > { %v682_v48 = vmul.f32 1.442695, %v647_v25  ;;  %v582_v55 = vmul.f32 %v5617_v41, %v545_v32  ;;  %v5126_v60 = vpop.eup %5125  ;;  %v766_v62 = vadd.f32 1.0, %v5124_v12  ;;  %5145 = vrcp.f32 %v764_v43 }
 0x137   : > { %v684_v24 = vmul.f32 1.442695, %v648_v7  ;;  %v5749_v52 = vadd.f32 %v5630_v57, %v581_v34  ;;  %v5128_v13 = vpop.eup %5127  ;;  %v767_v15 = vadd.f32 1.0, %v5126_v60  ;;  %5147 = vrcp.f32 %v765_v36 }
 0x138   : > { %v686_v21 = vmul.f32 1.442695, %v649_v38  ;;  %v583_v27 = vmul.f32 %v5617_v41, %v546_v20  ;;  %v5130_v56 = vpop.eup %5129  ;;  %v768_v17 = vadd.f32 1.0, %v5128_v13  ;;  %5149 = vrcp.f32 %v766_v62 }
 0x139   : > { %v650_v35 = vsub.f32 0.0, %v5743_v47  ;;  %v584_v32 = vmul.f32 %v5617_v41, %v547_v40  ;;  %v5132_v63 = vpop.eup %5131  ;;  %v769_v25 = vadd.f32 1.0, %v5130_v56  ;;  %5151 = vrcp.f32 %v767_v15 }
 0x13a   : > { %v5755_v29 = vadd.f32 %v5630_v57, %v582_v55  ;;  %v585_v42 = vmul.f32 %v5617_v41, %v548_v45  ;;  %v5134_v7 = vpop.eup %5133  ;;  %v770_v34 = vadd.f32 1.0, %v5132_v63  ;;  %5153 = vrcp.f32 %v768_v17 }
 0x13b   : > { %v651_v20 = vsub.f32 0.0, %v5749_v52  ;;  %v586_v3 = vmul.f32 %v5617_v41, %v549_v8  ;;  %v5136_v10 = vpop.eup %5135  ;;  %v771_v38 = vadd.f32 1.0, %v5134_v7  ;;  %5155 = vrcp.f32 %v769_v25 }
 0x13c   : > { %v5761_v40 = vadd.f32 %v5630_v57, %v583_v27  ;;  %v587_v18 = vmul.f32 %v5617_v41, %v550_v31  ;;  %v5138_v43 = vpop.eup %5137  ;;  %5157 = vrcp.f32 %v770_v34  ;;  %v740_v12 = vadd.f32 1.0, %v5136_v10 }
 0x13d   : > { %v5765_v45 = vadd.f32 %v5630_v57, %v584_v32  ;;  %v588_v36 = vmul.f32 %v5617_v41, %v551_v46  ;;  %v5140_v55 = vpop.eup %5139  ;;  %5159 = vrcp.f32 %v771_v38  ;;  %v741_v60 = vadd.f32 1.0, %v5138_v43 }
 0x13e   : > { %v652_v8 = vsub.f32 0.0, %v5755_v29  ;;  %v5770_v62 = vadd.f32 %v5630_v57, %v585_v42  ;;  %v5772_v13 = vpop.eup %5141  ;;  %5161 = vrcp.f32 %v740_v12  ;;  %v742_v31 = vadd.f32 1.0, %v5140_v55 }
 0x13f   : > { %v5775_v15 = vadd.f32 %v5630_v57, %v586_v3  ;;  %v589_v27 = vmul.f32 %v5617_v41, %v552_v14  ;;  %v5778_v56 = vpop.eup %5143  ;;  %5163 = vrcp.f32 %v741_v60  ;;  %v688_v46 = vmul.f32 1.442695, %v650_v35 }
 0x140   : > { %v653_v17 = vsub.f32 0.0, %v5761_v40  ;;  %v5782_v32 = vadd.f32 %v5630_v57, %v587_v18  ;;  %v5146_v63 = vpop.eup %5145  ;;  %5165 = vpow2.f32 %v682_v48  ;;  %v690_v25 = vmul.f32 1.442695, %v651_v20 }
 0x141   : > { %v654_v42 = vsub.f32 0.0, %v5765_v45  ;;  %v5786_v7 = vadd.f32 %v5630_v57, %v588_v36  ;;  %v5148_v34 = vpop.eup %5147  ;;  %v5789_v14 = vmul.f32 %v5146_v63, %v5653_v49  ;;  %5167 = vrcp.f32 %v742_v31 }
 0x142   : > { %v692_v3 = vmul.f32 1.442695, %v652_v8  ;;  %v655_v35 = vsub.f32 0.0, %v5770_v62  ;;  %v5150_v10 = vpop.eup %5149  ;;  %v5793_v38 = vmul.f32 %v5148_v34, %v5656_v50  ;;  %5169 = vpow2.f32 %v684_v24 }
 0x143   : > { %v656_v48 = vsub.f32 0.0, %v5775_v15  ;;  %v5797_v20 = vadd.f32 %v5630_v57, %v589_v27  ;;  %v5152_v18 = vpop.eup %5151  ;;  %v5800_v43 = vmul.f32 %v5150_v10, %v5659_v2  ;;  %915 = vst [vmem:[#allocation2 + $0x139] sm:$0xff] %v5789_v14  ;;  %5171 = vpow2.f32 %v686_v21 }
 0x144   : > { %v694_v49 = vmul.f32 1.442695, %v653_v17  ;;  %v657_v12 = vsub.f32 0.0, %v5782_v32  ;;  %v5154_v36 = vpop.eup %5153  ;;  %v5805_v50 = vmul.f32 %v5152_v18, %v5662_v33  ;;  %916 = vst [vmem:[#allocation2 + $0x141] sm:$0xff] %v5793_v38  ;;  %5173 = vpow2.f32 %v688_v46 }
 0x145   : > { %v696_v24 = vmul.f32 1.442695, %v654_v42  ;;  %v658_v55 = vsub.f32 0.0, %v5786_v7  ;;  %v5156_v60 = vpop.eup %5155  ;;  %v829_v2 = vmul.f32 %v5154_v36, %v5665_v37  ;;  %917 = vst [vmem:[#allocation2 + $0x151] sm:$0xff] %v5800_v43  ;;  %5175 = vpow2.f32 %v690_v25 }
 0x146   : > { %v698_v21 = vmul.f32 1.442695, %v655_v35  ;;  %v553_v8 = vsub.f32 %v5407_v61, %v5594_v58  ;;  %v5158_v31 = vpop.eup %5157  ;;  %v831_v33 = vmul.f32 %v5156_v60, %v5668_v53  ;;  %918 = vst [vmem:[#allocation2 + $0x159] sm:$0xff] %v5805_v50  ;;  %5177 = vpow2.f32 %v692_v3 }
 0x147   : > { %v700_v27 = vmul.f32 1.442695, %v656_v48  ;;  %v659_v46 = vsub.f32 0.0, %v5797_v20  ;;  %v5160_v17 = vpop.eup %5159  ;;  %v833_v63 = vmul.f32 %v5158_v31, %v5671_v5  ;;  %919 = vst [vmem:[#allocation2 + $0x169] sm:$0xff] %v829_v2  ;;  %5179 = vpow2.f32 %v694_v49  ;;  %v5063_v31 = vld [vmem:[%s6426_s4 + $0x10] sm:$0xff]  }
 0x148   : > { %v702_v37 = vmul.f32 1.442695, %v657_v12  ;;  %v590_v25 = vmul.f32 %v5617_v41, %v553_v8  ;;  %v5162_v42 = vpop.eup %5161  ;;  %v835_v61 = vmul.f32 %v5160_v17, %v5674_v54  ;;  %920 = vst [vmem:[#allocation2 + $0x171] sm:$0xff] %v831_v33  ;;  %5181 = vpow2.f32 %v696_v24  ;;  %v5060_v24 = vld [vmem:[%s6426_s4 + $0x8] sm:$0xff]  }
 0x149   : > { %v704_v53 = vmul.f32 1.442695, %v658_v55  ;;  %v554_v34 = vsub.f32 %v5412_v1, %v5594_v58  ;;  %v5164_v3 = vpop.eup %5163  ;;  %v557_v35 = vsub.f32 %v5429_v23, %v5594_v58  ;;  %v558_v5 = vsub.f32 %v5434_v28, %v5594_v58  ;;  %921 = vst [vmem:[#allocation2 + $0x181] sm:$0xff] %v833_v63 }
 0x14a   : > { %v773_v10 = vmul.f32 %v5162_v42, %v5695_v44  ;;  %5183 = vpow2.f32 %v698_v21  ;;  %v5166_v48 = vpop.eup %5165  ;;  %922 = vst [vmem:[#allocation2 + $0x189] sm:$0xff] %v835_v61  ;;  %v775_v54 = vmul.f32 %v5164_v3, %v5698_v51  ;;  %v706_v18 = vmul.f32 1.442695, %v659_v46  ;;  %v5066_v3 = vld [vmem:[%s6426_s4 + $0x18] sm:$0xff]  }
 0x14b   : > { %5185 = vpow2.f32 %v700_v27  ;;  %v591_v49 = vmul.f32 %v5617_v41, %v554_v34  ;;  %v5168_v1 = vpop.eup %5167  ;;  %v743_v12 = vadd.f32 1.0, %v5166_v48  ;;  %v5829_v23 = vadd.f32 %v5630_v57, %v590_v25 }
 0x14c   : > { %891 = vst [vmem:[#allocation2 + $0x19] sm:$0xff] %v773_v10  ;;  %5187 = vpow2.f32 %v702_v37  ;;  %v592_v28 = vmul.f32 %v5617_v41, %v555_v0  ;;  %v5170_v44 = vpop.eup %5169  ;;  %892 = vst [vmem:[#allocation2 + $0x21] sm:$0xff] %v775_v54  ;;  %v1020_v36 = vpack.c.bf16 %v775_v54, %v773_v10  ;;  %v5836_v51 = vmul.f32 %v5168_v1, %v5706_v59 }
 0x14d   : > { %5189 = vpow2.f32 %v704_v53  ;;  %v5843_v55 = vmul.f32 %v5772_v13, %v5647_v4  ;;  %v5172_v60 = vpop.eup %5171  ;;  %v744_v11 = vadd.f32 1.0, %v5170_v44  ;;  %v593_v0 = vmul.f32 %v5617_v41, %v556_v9 }
 0x14e   : > { %5191 = vrcp.f32 %v743_v12  ;;  %v5851_v59 = vmul.f32 %v5778_v56, %v5650_v6  ;;  %v5174_v2 = vpop.eup %5173  ;;  %4345 = vmatmul.mubr.bf16.vlgmr.msra.gmra.mrb[0].mxu1 %v1020_v36  ;;  %4536 = vmatprep.mubr.bf16.mxu0 %v1020_v36  ;;  %893 = vst [vmem:[#allocation2 + $0x31] sm:$0xff] %v5836_v51  ;;  %v745_v21 = vadd.f32 1.0, %v5172_v60  ;;  %v1032_v4 = vpack.c.bf16 %v5793_v38, %v5789_v14  ;;  %v5243_v14 = vld [vmem:[#allocation2] sm:$0xff] }
 0x14f   : > { %5193 = vpow2.f32 %v706_v18  ;;  %913 = vst [vmem:[#allocation2 + $0x121] sm:$0xff] %v5843_v55  ;;  %v1033_v16 = vpack.c.bf16 %v5805_v50, %v5800_v43  ;;  %v5176_v58 = vpop.eup %5175  ;;  %v594_v9 = vmul.f32 %v5617_v41, %v557_v35  ;;  %4377 = vmatpush3.bf16.msra.mxu1 %v5582_v26  ;;  %v746_v6 = vadd.f32 1.0, %v5174_v2  ;;  %v5082_v50 = vld [vmem:[%s6426_s4 + $0x1b0] sm:$0xff]  }
 0x150   : > { %5195 = vrcp.f32 %v744_v11  ;;  %914 = vst [vmem:[#allocation2 + $0x129] sm:$0xff] %v5851_v59  ;;  %v5178_v13 = vpop.eup %5177  ;;  %v595_v56 = vmul.f32 %v5617_v41, %v558_v5  ;;  %4378 = vmatprep.subr.bf16.mxu1 %v5060_v24  ;;  %v747_v8 = vadd.f32 1.0, %v5176_v58  ;;  %v5867_v33 = vadd.f32 %v5630_v57, %v591_v49 }
 0x151   : > { %5197 = vrcp.f32 %v745_v21  ;;  %v5180_v27 = vpop.eup %5179  ;;  %v748_v26 = vadd.f32 1.0, %v5178_v13  ;;  %v5870_v46 = vadd.f32 %v5630_v57, %v592_v28  ;;  %v660_v41 = vsub.f32 0.0, %v5829_v23  ;;  %v5069_v21 = vld [vmem:[%s6426_s4 + $0x20] sm:$0xff]  }
 0x152   : > { %5199 = vrcp.f32 %v746_v6  ;;  %v5182_v17 = vpop.eup %5181  ;;  %v749_v63 = vadd.f32 1.0, %v5180_v27  ;;  %v5874_v37 = vadd.f32 %v5630_v57, %v593_v0  ;;  %v5877_v61 = vadd.f32 %v5630_v57, %v594_v9 }
 0x153   : > { %5201 = vrcp.f32 %v747_v8  ;;  %4379 = vmatpush3.bf16.msra.mxu1 %v5060_v24  ;;  %v750_v42 = vadd.f32 1.0, %v5182_v17  ;;  %v661_v35 = vsub.f32 0.0, %v5867_v33  ;;  %v5884_v5 = vadd.f32 %v5630_v57, %v595_v56 }
 0x154   : > { %v5184_v25 = vpop.eup %5183  ;;  %5203 = vrcp.f32 %v748_v26  ;;  %4380 = vmatprep.subr.bf16.mxu1 %v5063_v31  ;;  %v662_v54 = vsub.f32 0.0, %v5870_v46  ;;  %v708_v1 = vmul.f32 1.442695, %v660_v41  ;;  %v663_v12 = vsub.f32 0.0, %v5874_v37 }
 0x155   : > { %v5186_v53 = vpop.eup %5185  ;;  %5205 = vrcp.f32 %v749_v63  ;;  %v751_v34 = vadd.f32 1.0, %v5184_v25  ;;  %v664_v36 = vsub.f32 0.0, %v5877_v61  ;;  %v710_v60 = vmul.f32 1.442695, %v661_v35  ;;  %v5061_v25 = vld [vmem:[%s6426_s4 + $0x150] sm:$0xff]  }
 0x156   : > { %v5188_v10 = vpop.eup %5187  ;;  %5207 = vrcp.f32 %v750_v42  ;;  %v752_v48 = vadd.f32 1.0, %v5186_v53  ;;  %v665_v11 = vsub.f32 0.0, %v5884_v5  ;;  %v712_v58 = vmul.f32 1.442695, %v662_v54 }
 0x157   : > { %v5190_v18 = vpop.eup %5189  ;;  %5209 = vrcp.f32 %v751_v34  ;;  %v753_v49 = vadd.f32 1.0, %v5188_v10  ;;  %4381 = vmatpush3.bf16.msra.mxu1 %v5063_v31  ;;  %v714_v56 = vmul.f32 1.442695, %v663_v12  ;;  %v716_v27 = vmul.f32 1.442695, %v664_v36 }
 0x158   : > { %v5192_v28 = vpop.eup %5191  ;;  %5211 = vrcp.f32 %v752_v48  ;;  %v754_v44 = vadd.f32 1.0, %v5190_v18  ;;  %4382 = vmatprep.subr.bf16.mxu1 %v5066_v3  ;;  %v5062_v48 = vld [vmem:[%s6426_s4 + $0x158] sm:$0xff]   ;;  %v6000_v38 = vpack.c.bf16 %v5243_v14, %v5243_v14 }
 0x159   : > { %v5194_v24 = vpop.eup %5193  ;;  %v779_v57 = vmul.f32 %v5192_v28, %v5714_v19  ;;  %5213 = vrcp.f32 %v753_v49  ;;  %v5059_v19 = vld [vmem:[%s6426_s4 + $0x148] sm:$0xff]   ;;  %v5075_v28 = vld [vmem:[%s6426_s4 + $0x38] sm:$0xff]  }
 0x15a   : > { %v5196_v0 = vpop.eup %5195  ;;  %v755_v2 = vadd.f32 1.0, %v5194_v24  ;;  %5215 = vrcp.f32 %v754_v44 }
 0x15b   : > { %v5198_v9 = vpop.eup %5197  ;;  %894 = vst [vmem:[#allocation2 + $0x39] sm:$0xff] %v779_v57  ;;  %v1021_v6 = vpack.c.bf16 %v779_v57, %v5836_v51  ;;  %v781_v13 = vmul.f32 %v5196_v0, %v5718_v30  ;;  %5217 = vpow2.f32 %v708_v1  ;;  %4383 = vmatpush3.bf16.msra.mxu1 %v5066_v3  ;;  %v718_v30 = vmul.f32 1.442695, %v665_v11 }
 0x15c   : > { %v5200_v8 = vpop.eup %5199  ;;  %v783_v31 = vmul.f32 %v5198_v9, %v5723_v39  ;;  %5219 = vrcp.f32 %v755_v2  ;;  %4384 = vmatprep.subr.bf16.mxu1 %v5069_v21  ;;  %v5935_v9 = vld [vmem:[%s6426_s4 + $0x80] sm:$0xff]  }
 0x15d   : > { %v5202_v26 = vpop.eup %5201  ;;  %4348 = vmatprep.mubr.bf16.mxu1 %v1021_v6  ;;  %4537 = vmatmul.mubr.bf16.vlgmr.msra.gmra.mrb[0].mxu0 %v1021_v6  ;;  %895 = vst [vmem:[#allocation2 + $0x49] sm:$0xff] %v781_v13  ;;  %v785_v51 = vmul.f32 %v5200_v8, %v5743_v47  ;;  %5221 = vpow2.f32 %v710_v60  ;;  %v2388_v8 = vld [vmem:[#allocation2 + $0x1a] sm:$0xff] }
 0x15e   : > { %v5204_v17 = vpop.eup %5203  ;;  %4569 = vmatpush3.bf16.msra.mxu0 %v5577_v22  ;;  %896 = vst [vmem:[#allocation2 + $0x51] sm:$0xff] %v783_v31  ;;  %v2116_v63 = vpack.c.bf16 %v783_v31, %v781_v13  ;;  %v787_v41 = vmul.f32 %v5202_v26, %v5749_v52  ;;  %5223 = vpow2.f32 %v712_v58  ;;  %v5071_v22 = vld [vmem:[%s6426_s4 + $0x28] sm:$0xff]   ;;  %v5068_v26 = vld [vmem:[%s6426_s4 + $0x178] sm:$0xff]  }
 0x15f   : > { %v5206_v39 = vpop.eup %5205  ;;  %4570 = vmatprep.subr.bf16.mxu0 %v5059_v19  ;;  %897 = vst [vmem:[#allocation2 + $0x61] sm:$0xff] %v785_v51  ;;  %v789_v47 = vmul.f32 %v5204_v17, %v5755_v29  ;;  %5225 = vpow2.f32 %v714_v56  ;;  %4385 = vmatpush3.bf16.msra.mxu1 %v5069_v21  ;;  %v2389_v31 = vld [vmem:[#allocation2 + $0x22] sm:$0xff] }
 0x160   : > { %v5208_v42 = vpop.eup %5207  ;;  %4540 = vmatprep.mubr.bf16.mxu0 %v2116_v63  ;;  %4349 = vmatmul.mubr.bf16.gmra.mrb[4].mxu1 %v2116_v63  ;;  %898 = vst [vmem:[#allocation2 + $0x69] sm:$0xff] %v787_v41  ;;  %v1023_v52 = vpack.c.bf16 %v787_v41, %v785_v51  ;;  %v791_v53 = vmul.f32 %v5206_v39, %v5761_v40  ;;  %5227 = vpow2.f32 %v716_v27 }
 0x161   : > { %v5210_v34 = vpop.eup %5209  ;;  %899 = vst [vmem:[#allocation2 + $0x79] sm:$0xff] %v789_v47  ;;  %v793_v3 = vmul.f32 %v5208_v42, %v5765_v45  ;;  %5229 = vpow2.f32 %v718_v30  ;;  %4386 = vmatprep.subr.bf16.mxu1 %v5071_v22  ;;  %v5073_v45 = vld [vmem:[%s6426_s4 + $0x30] sm:$0xff]   ;;  %v5945_v17 = vpack.c.bf16 %v2389_v31, %v2388_v8 }
 0x162   : > { %v5212_v29 = vpop.eup %5211  ;;  %4571 = vmatpush3.bf16.msra.mxu0 %v5059_v19  ;;  %4352 = vmatprep.mubr.bf16.mxu1 %v1023_v52  ;;  %900 = vst [vmem:[#allocation2 + $0x81] sm:$0xff] %v791_v53  ;;  %v795_v35 = vmul.f32 %v5210_v34, %v5770_v62  ;;  %v2118_v18 = vpack.c.bf16 %v791_v53, %v789_v47  ;;  %v5067_v19 = vld [vmem:[%s6426_s4 + $0x170] sm:$0xff]   ;;  %v2391_v53 = vld [vmem:[#allocation2 + $0x3a] sm:$0xff] }
 0x163   : > { %v5214_v10 = vpop.eup %5213  ;;  %4572 = vmatprep.subr.bf16.mxu0 %v5061_v25  ;;  %901 = vst [vmem:[#allocation2 + $0x91] sm:$0xff] %v793_v3  ;;  %v797_v40 = vmul.f32 %v5212_v29, %v5775_v15  ;;  %4387 = vmatpush3.bf16.msra.mxu1 %v5071_v22 }
 0x164   : > { %v5216_v54 = vpop.eup %5215  ;;  %902 = vst [vmem:[#allocation2 + $0x99] sm:$0xff] %v795_v35  ;;  %v799_v49 = vmul.f32 %v5214_v10, %v5782_v32  ;;  %v5064_v32 = vld [vmem:[%s6426_s4 + $0x160] sm:$0xff]   ;;  %v1025_v36 = vpack.c.bf16 %v795_v35, %v793_v3  ;;  %4388 = vmatprep.subr.bf16.mxu1 %v5073_v45 }
 0x165   : > { %v5218_v62 = vpop.eup %5217  ;;  %4541 = vmatmul.mubr.bf16.gmra.mrb[4].mxu0 %v1023_v52  ;;  %903 = vst [vmem:[#allocation2 + $0xa9] sm:$0xff] %v797_v40  ;;  %v801_v1 = vmul.f32 %v5216_v54, %v5786_v7  ;;  %v2393_v29 = vld [vmem:[#allocation2 + $0x52] sm:$0xff] }
 0x166   : > { %v5220_v12 = vpop.eup %5219  ;;  %4573 = vmatpush3.bf16.msra.mxu0 %v5061_v25  ;;  %4544 = vmatprep.mubr.bf16.mxu0 %v2118_v18  ;;  %904 = vst [vmem:[#allocation2 + $0xb1] sm:$0xff] %v799_v49  ;;  %v756_v15 = vadd.f32 1.0, %v5218_v62  ;;  %v2120_v6 = vpack.c.bf16 %v799_v49, %v797_v40  ;;  %v5970_v40 = vpack.c.bf16 %v5851_v59, %v5843_v55  ;;  %v5078_v55 = vld [vmem:[%s6426_s4 + $0x1a0] sm:$0xff]  }
 0x167   : > { %v5222_v44 = vpop.eup %5221  ;;  %4574 = vmatprep.subr.bf16.mxu0 %v5062_v48  ;;  %v803_v24 = vmul.f32 %v5220_v12, %v5797_v20  ;;  %905 = vst [vmem:[#allocation2 + $0xc1] sm:$0xff] %v801_v1  ;;  %4389 = vmatpush3.bf16.msra.mxu1 %v5073_v45  ;;  %v5065_v20 = vld [vmem:[%s6426_s4 + $0x168] sm:$0xff]  }
 0x168   : > { %v5224_v7 = vpop.eup %5223  ;;  %4353 = vmatmul.mubr.bf16.gmra.mrb[8].mxu1 %v2118_v18  ;;  %v757_v57 = vadd.f32 1.0, %v5222_v44  ;;  %5231 = vrcp.f32 %v756_v15  ;;  %4390 = vmatprep.subr.bf16.mxu1 %v5075_v28  ;;  %v2394_v45 = vld [vmem:[#allocation2 + $0x62] sm:$0xff]  ;;  %v2395_v54 = vld [vmem:[#allocation2 + $0x6a] sm:$0xff] }
 0x169   : > { %v5226_v60 = vpop.eup %5225  ;;  %4356 = vmatprep.mubr.bf16.mxu1 %v1025_v36  ;;  %906 = vst [vmem:[#allocation2 + $0xc9] sm:$0xff] %v803_v24  ;;  %v758_v11 = vadd.f32 1.0, %v5224_v7  ;;  %v1027_v56 = vpack.c.bf16 %v803_v24, %v801_v1  ;;  %v2396_v18 = vld [vmem:[#allocation2 + $0x7a] sm:$0xff]  ;;  %v2397_v49 = vld [vmem:[#allocation2 + $0x82] sm:$0xff]  ;;  %v5973_v62 = vpack.c.bf16 %v2395_v54, %v2394_v45 }
 0x16a   : > { %v5228_v0 = vpop.eup %5227  ;;  %4575 = vmatpush3.bf16.msra.mxu0 %v5062_v48  ;;  %5233 = vrcp.f32 %v757_v57  ;;  %v759_v2 = vadd.f32 1.0, %v5226_v60  ;;  %v5076_v1 = vld [vmem:[%s6426_s4 + $0x198] sm:$0xff]   ;;  %v5978_v12 = vpack.c.bf16 %v2397_v49, %v2396_v18  ;;  %v1017_v7 = vld [vmem:[#allocation2 + $0x169] sm:$0xff] }
 0x16b   : > { %v5230_v21 = vpop.eup %5229  ;;  %4576 = vmatprep.subr.bf16.mxu0 %v5064_v32  ;;  %5235 = vrcp.f32 %v758_v11  ;;  %v760_v58 = vadd.f32 1.0, %v5228_v0  ;;  %4391 = vmatpush3.bf16.msra.mxu1 %v5075_v28  ;;  %v2398_v59 = vld [vmem:[#allocation2 + $0x92] sm:$0xff]  ;;  %v2399_v15 = vld [vmem:[#allocation2 + $0x9a] sm:$0xff]  ;;  %v5087_v18 = vld [vmem:[%s6426_s4 + $0xa8] sm:$0xff]  }
 0x16c   : > { %5237 = vrcp.f32 %v759_v2  ;;  %v761_v13 = vadd.f32 1.0, %v5230_v21  ;;  %4424 = vmatprep.subr.bf16.mxu1 %v5935_v9  ;;  %v1018_v57 = vld [vmem:[#allocation2 + $0x171] sm:$0xff] }
 0x16d   : > { %4545 = vmatmul.mubr.bf16.gmra.mrb[8].mxu0 %v1025_v36  ;;  %5239 = vrcp.f32 %v760_v58  ;;  %v2400_v28 = vld [vmem:[#allocation2 + $0xaa] sm:$0xff]  ;;  %v2401_v44 = vld [vmem:[#allocation2 + $0xb2] sm:$0xff]  ;;  %v6002_v43 = vpack.c.bf16 %v1018_v57, %v1017_v7  ;;  %v926_v58 = vld [vmem:[#allocation2 + $0x20] sm:$0xff] }
 0x16e   : > { %4577 = vmatpush3.bf16.msra.mxu0 %v5064_v32  ;;  %4548 = vmatprep.mubr.bf16.mxu0 %v2120_v6  ;;  %5241 = vrcp.f32 %v761_v13  ;;  %v5991_v32 = vpack.c.bf16 %v2399_v15, %v2398_v59  ;;  %v5080_v36 = vld [vmem:[%s6426_s4 + $0x1a8] sm:$0xff]   ;;  %v5996_v24 = vpack.c.bf16 %v2401_v44, %v2400_v28  ;;  %v5084_v2 = vld [vmem:[%s6426_s4 + $0x1b8] sm:$0xff]   ;;  %v5089_v44 = vld [vmem:[%s6426_s4 + $0xb0] sm:$0xff]  }
 0x16f   : > { %4578 = vmatprep.subr.bf16.mxu0 %v5065_v20  ;;  %v928_v13 = vld [vmem:[#allocation2 + $0x38] sm:$0xff]  ;;  %v2416_v59 = vld [vmem:[#allocation2 + $0x16a] sm:$0xff]  ;;  %v939_v14 = vld [vmem:[#allocation2 + $0xc0] sm:$0xff] }
 0x170   : > { %4357 = vmatmul.mubr.bf16.gmra.mrb[12].mxu1 %v2120_v6  ;;  %v927_v6 = vld [vmem:[#allocation2 + $0x30] sm:$0xff]  ;;  %v936_v45 = vld [vmem:[#allocation2 + $0x98] sm:$0xff]  ;;  %v937_v7 = vld [vmem:[#allocation2 + $0xa8] sm:$0xff] }
 0x171   : > { %4360 = vmatprep.mubr.bf16.mxu1 %v1027_v56  ;;  %v6023_v8 = vpack.c.bf16 %v928_v13, %v927_v6  ;;  %v2417_v15 = vld [vmem:[#allocation2 + $0x172] sm:$0xff] }
 0x172   : > { %v5232_v27 = vpop.eup %5231  ;;  %4579 = vmatpush3.bf16.msra.mxu0 %v5065_v20  ;;  %v925_v20 = vld [vmem:[#allocation2 + $0x18] sm:$0xff]  ;;  %v938_v57 = vld [vmem:[#allocation2 + $0xb0] sm:$0xff] }
 0x173   : > { %4580 = vmatprep.subr.bf16.mxu0 %v5067_v19  ;;  %v805_v51 = vmul.f32 %v5232_v27, %v5829_v23  ;;  %v5070_v23 = vld [vmem:[%s6426_s4 + $0x180] sm:$0xff]  }
 0x174   : > { %v5234_v30 = vpop.eup %5233 }
 0x175   : > { %v5236_v63 = vpop.eup %5235  ;;  %4549 = vmatmul.mubr.bf16.gmra.mrb[12].mxu0 %v1027_v56  ;;  %v807_v41 = vmul.f32 %v5234_v30, %v5867_v33  ;;  %907 = vst [vmem:[#allocation2 + $0xd9] sm:$0xff] %v805_v51  ;;  %v2390_v33 = vld [vmem:[#allocation2 + $0x32] sm:$0xff]  ;;  %v5079_v56 = vld [vmem:[%s6426_s4 + $0x88] sm:$0xff]  }
 0x176   : > { %v5238_v39 = vpop.eup %5237  ;;  %4581 = vmatpush3.bf16.msra.mxu0 %v5067_v19  ;;  %4584 = vmatprep.mubr.bf16.mxu0 %v5945_v17  ;;  %v809_v25 = vmul.f32 %v5236_v63, %v5870_v46  ;;  %v2392_v46 = vld [vmem:[#allocation2 + $0x4a] sm:$0xff]  ;;  %v5956_v10 = vpack.c.bf16 %v2391_v53, %v2390_v33  ;;  %v6018_v19 = vpack.c.bf16 %v926_v58, %v925_v20  ;;  %v2410_v33 = vld [vmem:[#allocation2 + $0x122] sm:$0xff] }
 0x177   : > { %v5240_v47 = vpop.eup %5239  ;;  %4582 = vmatprep.subr.bf16.mxu0 %v5068_v26  ;;  %908 = vst [vmem:[#allocation2 + $0xe1] sm:$0xff] %v807_v41  ;;  %v1028_v22 = vpack.c.bf16 %v807_v41, %v805_v51  ;;  %v811_v42 = vmul.f32 %v5238_v39, %v5874_v37  ;;  %v5072_v37 = vld [vmem:[%s6426_s4 + $0x188] sm:$0xff]   ;;  %v5961_v48 = vpack.c.bf16 %v2393_v29, %v2392_v46  ;;  %v5081_v41 = vld [vmem:[%s6426_s4 + $0x90] sm:$0xff]   ;;  %v5085_v29 = vld [vmem:[%s6426_s4 + $0xa0] sm:$0xff]  }
 0x178   : > { %v5242_v52 = vpop.eup %5241  ;;  %909 = vst [vmem:[#allocation2 + $0xf1] sm:$0xff] %v809_v25  ;;  %v813_v34 = vmul.f32 %v5240_v47, %v5877_v61  ;;  %v930_v47 = vld [vmem:[#allocation2 + $0x50] sm:$0xff]  ;;  %v6091_v58 = vld [vmem:[%s6426_s4 + $0xc0] sm:$0xff]  }
 0x179   : > { %4361 = vmatmul.mubr.bf16.gmra.mrb[16].mxu1 %v1028_v22  ;;  %910 = vst [vmem:[#allocation2 + $0xf9] sm:$0xff] %v811_v42  ;;  %v1029_v3 = vpack.c.bf16 %v811_v42, %v809_v25  ;;  %v815_v35 = vmul.f32 %v5242_v52, %v5884_v5  ;;  %v5074_v5 = vld [vmem:[%s6426_s4 + $0x190] sm:$0xff]   ;;  %v929_v25 = vld [vmem:[#allocation2 + $0x48] sm:$0xff]  ;;  %v931_v22 = vld [vmem:[#allocation2 + $0x60] sm:$0xff] }
 0x17a   : > { %4583 = vmatpush3.bf16.msra.mxu0 %v5068_v26  ;;  %911 = vst [vmem:[#allocation2 + $0x109] sm:$0xff] %v813_v34  ;;  %v6028_v26 = vld [vmem:[%s6426_s4 + $0x1c0] sm:$0xff]   ;;  %v5083_v42 = vld [vmem:[%s6426_s4 + $0x98] sm:$0xff]   ;;  %v2411_v53 = vld [vmem:[#allocation2 + $0x12a] sm:$0xff] }
 0x17b   : > { %4616 = vmatprep.subr.bf16.mxu0 %v5070_v23  ;;  %4364 = vmatprep.mubr.bf16.mxu1 %v1029_v3  ;;  %912 = vst [vmem:[#allocation2 + $0x111] sm:$0xff] %v815_v35  ;;  %v1030_v61 = vpack.c.bf16 %v815_v35, %v813_v34  ;;  %v2412_v34 = vld [vmem:[#allocation2 + $0x13a] sm:$0xff]  ;;  %v2413_v3 = vld [vmem:[#allocation2 + $0x142] sm:$0xff]  ;;  %v6052_v46 = vpack.c.bf16 %v2411_v53, %v2410_v33 }
 0x17c   : > { %v6057_v35 = vpack.c.bf16 %v2413_v3, %v2412_v34  ;;  %v941_v6 = vld [vmem:[#allocation2 + $0xd8] sm:$0xff]  ;;  %v950_v34 = vld [vmem:[#allocation2 + $0x140] sm:$0xff]  ;;  %v951_v3 = vld [vmem:[#allocation2 + $0x150] sm:$0xff] }
 0x17d   : > { %4585 = vmatmul.mubr.bf16.vlgmr.msra.gmra.mrb[0].mxu0 %v5956_v10  ;;  %v949_v53 = vld [vmem:[#allocation2 + $0x138] sm:$0xff] }
 0x17e   : > { %4617 = vmatpush3.bf16.msra.mxu0 %v5070_v23  ;;  %4588 = vmatprep.mubr.bf16.mxu0 %v5961_v48  ;;  %v2404_v60 = vld [vmem:[#allocation2 + $0xda] sm:$0xff]  ;;  %v2405_v11 = vld [vmem:[#allocation2 + $0xe2] sm:$0xff] }
 0x17f   : > { %4618 = vmatprep.subr.bf16.mxu0 %v5072_v37  ;;  %v6014_v21 = vpack.c.bf16 %v2405_v11, %v2404_v60  ;;  %v932_v23 = vld [vmem:[#allocation2 + $0x68] sm:$0xff]  ;;  %v942_v13 = vld [vmem:[#allocation2 + $0xe0] sm:$0xff] }
 0x180   : > { %v2406_v31 = vld [vmem:[#allocation2 + $0xf2] sm:$0xff]  ;;  %v2407_v27 = vld [vmem:[#allocation2 + $0xfa] sm:$0xff]  ;;  %v6048_v52 = vpack.c.bf16 %v932_v23, %v931_v22  ;;  %v2418_v11 = vld [vmem:[#allocation2 + $0x182] sm:$0xff] }
 0x181   : > { %4365 = vmatmul.mubr.bf16.gmra.mrb[20].mxu1 %v1030_v61  ;;  %v6033_v63 = vpack.c.bf16 %v2407_v27, %v2406_v31  ;;  %v934_v61 = vld [vmem:[#allocation2 + $0x80] sm:$0xff]  ;;  %v944_v31 = vld [vmem:[#allocation2 + $0xf8] sm:$0xff]  ;;  %v6094_v27 = vpack.c.bf16 %v942_v13, %v941_v6  ;;  %v948_v22 = vld [vmem:[#allocation2 + $0x128] sm:$0xff] }
 0x182   : > { %4368 = vmatprep.mubr.bf16.mxu1 %v5970_v40  ;;  %4619 = vmatpush3.bf16.msra.mxu0 %v5072_v37  ;;  %v2408_v51 = vld [vmem:[#allocation2 + $0x10a] sm:$0xff]  ;;  %v2409_v30 = vld [vmem:[#allocation2 + $0x112] sm:$0xff]  ;;  %v6191_v13 = vld [vmem:[%s6426_s4 + $0x100] sm:$0xff]  }
 0x183   : > { %4620 = vmatprep.subr.bf16.mxu0 %v5074_v5  ;;  %v6038_v39 = vpack.c.bf16 %v2409_v30, %v2408_v51  ;;  %v933_v37 = vld [vmem:[#allocation2 + $0x78] sm:$0xff]  ;;  %v5088_v30 = vld [vmem:[%s6426_s4 + $0x1c8] sm:$0xff]  }
 0x184   : > { %v6061_v54 = vpack.c.bf16 %v934_v61, %v933_v37  ;;  %v6121_v37 = vpack.c.bf16 %v950_v34, %v949_v53  ;;  %v5094_v61 = vld [vmem:[%s6426_s4 + $0x1e0] sm:$0xff]   ;;  %v3011_v34 = vld [vmem:[#allocation2 + $0xa9] sm:$0xff] }
 0x185   : > { %4589 = vmatmul.mubr.bf16.gmra.mrb[4].mxu0 %v5973_v62 }
 0x186   : > { %4592 = vmatprep.mubr.bf16.mxu0 %v5978_v12  ;;  %4621 = vmatpush3.bf16.msra.mxu0 %v5074_v5  ;;  %v935_v5 = vld [vmem:[#allocation2 + $0x90] sm:$0xff] }
 0x187   : > { %4622 = vmatprep.subr.bf16.mxu0 %v5076_v1  ;;  %v6066_v49 = vpack.c.bf16 %v936_v45, %v935_v5  ;;  %v1470_v45 = vld [vmem:[#allocation2 + $0x2] sm:$0xff] }
 0x189   : > { %4369 = vmatmul.mubr.bf16.gmra.mrb[24].mxu1 %v1032_v4  ;;  %v2402_v4 = vld [vmem:[#allocation2 + $0xc2] sm:$0xff] }
 0x18a   : > { %4372 = vmatprep.mubr.bf16.mxu1 %v1033_v16  ;;  %4623 = vmatpush3.bf16.msra.mxu0 %v5076_v1  ;;  %v2403_v16 = vld [vmem:[#allocation2 + $0xca] sm:$0xff]  ;;  %v2414_v1 = vld [vmem:[#allocation2 + $0x152] sm:$0xff] }
 0x18b   : > { %4624 = vmatprep.subr.bf16.mxu0 %v5078_v55  ;;  %v6009_v0 = vpack.c.bf16 %v2403_v16, %v2402_v4  ;;  %v6079_v4 = vpack.c.bf16 %v938_v57, %v937_v7  ;;  %v5091_v16 = vld [vmem:[%s6426_s4 + $0xb8] sm:$0xff]   ;;  %v5098_v7 = vld [vmem:[%s6426_s4 + $0x1f0] sm:$0xff]  }
 0x18c   : > { %v5100_v57 = vld [vmem:[%s6426_s4 + $0x1f8] sm:$0xff]  }
 0x18d   : > { %4593 = vmatmul.mubr.bf16.gmra.mrb[8].mxu0 %v5991_v32 }
 0x18e   : > { %4596 = vmatprep.mubr.bf16.mxu0 %v5996_v24  ;;  %4625 = vmatpush3.bf16.msra.mxu0 %v5078_v55  ;;  %v2415_v55 = vld [vmem:[#allocation2 + $0x15a] sm:$0xff] }
 0x18f   : > { %4626 = vmatprep.subr.bf16.mxu0 %v5080_v36  ;;  %v6070_v28 = vpack.c.bf16 %v2415_v55, %v2414_v1  ;;  %v5096_v1 = vld [vmem:[%s6426_s4 + $0x1e8] sm:$0xff]  }
 0x190   : > { %v953_v55 = vld [vmem:[#allocation2 + $0x168] sm:$0xff] }
 0x191   : > { %4373 = vmatmul.mubr.bf16.gmra.mrb[28].mxu1 %v6002_v43 }
 0x192   : > { %4392 = vmatprep.mubr.bf16.mxu1 %v6000_v38  ;;  %4627 = vmatpush3.bf16.msra.mxu0 %v5080_v36  ;;  %v6075_v36 = vpack.c.bf16 %v2417_v15, %v2416_v59  ;;  %v954_v59 = vld [vmem:[#allocation2 + $0x170] sm:$0xff] }
 0x193   : > { %4628 = vmatprep.subr.bf16.mxu0 %v5082_v50 }
 0x195   : > { %4597 = vmatmul.mubr.bf16.gmra.mrb[12].mxu0 %v6009_v0 }
 0x196   : > { %4600 = vmatprep.mubr.bf16.mxu0 %v6014_v21  ;;  %4629 = vmatpush3.bf16.msra.mxu0 %v5082_v50  ;;  %v940_v50 = vld [vmem:[#allocation2 + $0xc8] sm:$0xff] }
 0x197   : > { %4630 = vmatprep.subr.bf16.mxu0 %v5084_v2  ;;  %v6084_v60 = vpack.c.bf16 %v940_v50, %v939_v14  ;;  %v5095_v14 = vld [vmem:[%s6426_s4 + $0xc8] sm:$0xff]   ;;  %v5102_v50 = vld [vmem:[%s6426_s4 + $0x200] sm:$0xff]  }
 0x199   : > { %4393 = vmatmul.mubr.bf16.vlgmr.msra.gmra.mrb[0].mxu1 %v6018_v19 }
 0x19a   : > { %4396 = vmatprep.mubr.bf16.mxu1 %v6023_v8  ;;  %4425 = vmatpush3.bf16.msra.mxu1 %v5935_v9  ;;  %v6043_v9 = vpack.c.bf16 %v930_v47, %v929_v25  ;;  %v946_v25 = vld [vmem:[#allocation2 + $0x110] sm:$0xff]  ;;  %v947_v47 = vld [vmem:[#allocation2 + $0x120] sm:$0xff] }
 0x19b   : > { %4426 = vmatprep.subr.bf16.mxu1 %v5079_v56  ;;  %4631 = vmatpush3.bf16.msra.mxu0 %v5084_v2  ;;  %v2419_v2 = vld [vmem:[#allocation2 + $0x18a] sm:$0xff]  ;;  %v6112_v33 = vpack.c.bf16 %v948_v22, %v947_v47  ;;  %v3007_v47 = vld [vmem:[#allocation2 + $0x79] sm:$0xff] }
 0x19c   : > { %4664 = vmatprep.subr.bf16.mxu0 %v6028_v26  ;;  %v2435_v20 = vpack.c.bf16 %v2419_v2, %v2418_v11  ;;  %v5103_v11 = vld [vmem:[%s6426_s4 + $0xe8] sm:$0xff]   ;;  %v5105_v2 = vld [vmem:[%s6426_s4 + $0xf0] sm:$0xff]  }
 0x19d   : > { %4601 = vmatmul.mubr.bf16.gmra.mrb[16].mxu0 %v6033_v63  ;;  %v3009_v22 = vld [vmem:[#allocation2 + $0x91] sm:$0xff] }
 0x19e   : > { %4604 = vmatprep.mubr.bf16.mxu0 %v6038_v39  ;;  %4427 = vmatpush3.bf16.msra.mxu1 %v5079_v56  ;;  %v943_v56 = vld [vmem:[#allocation2 + $0xf0] sm:$0xff] }
 0x19f   : > { %4428 = vmatprep.subr.bf16.mxu1 %v5081_v41  ;;  %v6097_v51 = vpack.c.bf16 %v944_v31, %v943_v56  ;;  %v3003_v56 = vld [vmem:[#allocation2 + $0x49] sm:$0xff]  ;;  %v3005_v31 = vld [vmem:[#allocation2 + $0x61] sm:$0xff] }
 0x1a1   : > { %4397 = vmatmul.mubr.bf16.gmra.mrb[4].mxu1 %v6043_v9 }
 0x1a2   : > { %4400 = vmatprep.mubr.bf16.mxu1 %v6048_v52  ;;  %4429 = vmatpush3.bf16.msra.mxu1 %v5081_v41  ;;  %v945_v41 = vld [vmem:[#allocation2 + $0x108] sm:$0xff] }
 0x1a3   : > { %4430 = vmatprep.subr.bf16.mxu1 %v5083_v42  ;;  %v6107_v23 = vpack.c.bf16 %v946_v25, %v945_v41  ;;  %v5106_v25 = vld [vmem:[%s6426_s4 + $0x210] sm:$0xff]  }
 0x1a5   : > { %4605 = vmatmul.mubr.bf16.gmra.mrb[20].mxu0 %v6052_v46 }
 0x1a6   : > { %4608 = vmatprep.mubr.bf16.mxu0 %v6057_v35  ;;  %4431 = vmatpush3.bf16.msra.mxu1 %v5083_v42  ;;  %v5090_v42 = vld [vmem:[%s6426_s4 + $0x1d0] sm:$0xff]  }
 0x1a7   : > { %4432 = vmatprep.subr.bf16.mxu1 %v5085_v29 }
 0x1a9   : > { %4401 = vmatmul.mubr.bf16.gmra.mrb[8].mxu1 %v6061_v54 }
 0x1aa   : > { %4404 = vmatprep.mubr.bf16.mxu1 %v6066_v49  ;;  %4433 = vmatpush3.bf16.msra.mxu1 %v5085_v29  ;;  %v952_v29 = vld [vmem:[#allocation2 + $0x158] sm:$0xff] }
 0x1ab   : > { %4434 = vmatprep.subr.bf16.mxu1 %v5087_v18  ;;  %v6126_v5 = vpack.c.bf16 %v952_v29, %v951_v3  ;;  %v3012_v3 = vld [vmem:[#allocation2 + $0xb1] sm:$0xff]  ;;  %v3014_v29 = vld [vmem:[#allocation2 + $0xc9] sm:$0xff] }
 0x1ad   : > { %4609 = vmatmul.mubr.bf16.gmra.mrb[24].mxu0 %v6070_v28 }
 0x1ae   : > { %4612 = vmatprep.mubr.bf16.mxu0 %v6075_v36  ;;  %4435 = vmatpush3.bf16.msra.mxu1 %v5087_v18  ;;  %v1471_v18 = vld [vmem:[#allocation2 + $0xa] sm:$0xff] }
 0x1af   : > { %4436 = vmatprep.subr.bf16.mxu1 %v5089_v44  ;;  %v1502_v15 = vpack.c.bf16 %v1471_v18, %v1470_v45  ;;  %v5110_v45 = vld [vmem:[%s6426_s4 + $0x228] sm:$0xff]  }
 0x1b1   : > { %4405 = vmatmul.mubr.bf16.gmra.mrb[12].mxu1 %v6079_v4 }
 0x1b2   : > { %4408 = vmatprep.mubr.bf16.mxu1 %v6084_v60  ;;  %4437 = vmatpush3.bf16.msra.mxu1 %v5089_v44  ;;  %v6135_v44 = vpack.c.bf16 %v954_v59, %v953_v55  ;;  %v3016_v55 = vld [vmem:[#allocation2 + $0xe1] sm:$0xff]  ;;  %v3018_v59 = vld [vmem:[#allocation2 + $0xf9] sm:$0xff] }
 0x1b3   : > { %4438 = vmatprep.subr.bf16.mxu1 %v5091_v16 }
 0x1b5   : > { %4613 = vmatmul.mubr.bf16.gmra.mrb[28].mxu0 %v2435_v20 }
 0x1b6   : > { %4632 = vmatprep.mubr.bf16.mxu0 %v6023_v8  ;;  %4439 = vmatpush3.bf16.msra.mxu1 %v5091_v16  ;;  %v5097_v16 = vld [vmem:[%s6426_s4 + $0xd0] sm:$0xff]  }
 0x1b7   : > { %4472 = vmatprep.subr.bf16.mxu1 %v6091_v58 }
 0x1b9   : > { %4409 = vmatmul.mubr.bf16.gmra.mrb[16].mxu1 %v6094_v27 }
 0x1ba   : > { %4412 = vmatprep.mubr.bf16.mxu1 %v6097_v51 }
 0x1bd   : > { %4633 = vmatmul.mubr.bf16.vlgmr.msra.gmra.mrb[0].mxu0 %v6043_v9 }
 0x1be   : > { %4665 = vmatpush3.bf16.msra.mxu0 %v6028_v26  ;;  %4636 = vmatprep.mubr.bf16.mxu0 %v6048_v52  ;;  %v5092_v26 = vld [vmem:[%s6426_s4 + $0x1d8] sm:$0xff]  }
 0x1bf   : > { %4666 = vmatprep.subr.bf16.mxu0 %v5088_v30 }
 0x1c1   : > { %4413 = vmatmul.mubr.bf16.gmra.mrb[20].mxu1 %v6107_v23 }
 0x1c2   : > { %4416 = vmatprep.mubr.bf16.mxu1 %v6112_v33  ;;  %4667 = vmatpush3.bf16.msra.mxu0 %v5088_v30 }
 0x1c3   : > { %4668 = vmatprep.subr.bf16.mxu0 %v5090_v42 }
 0x1c5   : > { %4637 = vmatmul.mubr.bf16.gmra.mrb[4].mxu0 %v6061_v54 }
 0x1c6   : > { %4640 = vmatprep.mubr.bf16.mxu0 %v6066_v49  ;;  %4669 = vmatpush3.bf16.msra.mxu0 %v5090_v42 }
 0x1c7   : > { %4670 = vmatprep.subr.bf16.mxu0 %v5092_v26 }
 0x1c9   : > { %4417 = vmatmul.mubr.bf16.gmra.mrb[24].mxu1 %v6121_v37 }
 0x1ca   : > { %4420 = vmatprep.mubr.bf16.mxu1 %v6126_v5  ;;  %4671 = vmatpush3.bf16.msra.mxu0 %v5092_v26  ;;  %v5108_v26 = vld [vmem:[%s6426_s4 + $0x218] sm:$0xff]  }
 0x1cb   : > { %4672 = vmatprep.subr.bf16.mxu0 %v5094_v61 }
 0x1cd   : > { %4641 = vmatmul.mubr.bf16.gmra.mrb[8].mxu0 %v6079_v4 }
 0x1ce   : > { %4644 = vmatprep.mubr.bf16.mxu0 %v6084_v60  ;;  %4673 = vmatpush3.bf16.msra.mxu0 %v5094_v61  ;;  %v3038_v61 = vpack.c.bf16 %v3012_v3, %v3011_v34  ;;  %v3324_v34 = vld [vmem:[#allocation2 + $0xfa] sm:$0xff] }
 0x1cf   : > { %4674 = vmatprep.subr.bf16.mxu0 %v5096_v1 }
 0x1d1   : > { %4421 = vmatmul.mubr.bf16.gmra.mrb[28].mxu1 %v6135_v44 }
 0x1d2   : > { %4440 = vmatprep.mubr.bf16.mxu1 %v1502_v15  ;;  %4675 = vmatpush3.bf16.msra.mxu0 %v5096_v1  ;;  %v3015_v1 = vld [vmem:[#allocation2 + $0xd9] sm:$0xff] }
 0x1d3   : > { %4676 = vmatprep.subr.bf16.mxu0 %v5098_v7  ;;  %v6220_v15 = vpack.c.bf16 %v3016_v55, %v3015_v1  ;;  %v3329_v55 = vld [vmem:[#allocation2 + $0x13a] sm:$0xff] }
 0x1d5   : > { %4645 = vmatmul.mubr.bf16.gmra.mrb[12].mxu0 %v6094_v27 }
 0x1d6   : > { %4648 = vmatprep.mubr.bf16.mxu0 %v6097_v51  ;;  %4677 = vmatpush3.bf16.msra.mxu0 %v5098_v7  ;;  %v5112_v7 = vld [vmem:[%s6426_s4 + $0x238] sm:$0xff]  }
 0x1d7   : > { %4678 = vmatprep.subr.bf16.mxu0 %v5100_v57 }
 0x1d9   : > { %4441 = vmatmul.mubr.bf16.vlgmr.msra.gmra.mrb[0].mxu1 %v5945_v17  ;;  %v5099_v17 = vld [vmem:[%s6426_s4 + $0xd8] sm:$0xff]  }
 0x1da   : > { %4444 = vmatprep.mubr.bf16.mxu1 %v5956_v10  ;;  %4473 = vmatpush3.bf16.msra.mxu1 %v6091_v58  ;;  %v5101_v10 = vld [vmem:[%s6426_s4 + $0xe0] sm:$0xff]  }
 0x1db   : > { %4474 = vmatprep.subr.bf16.mxu1 %v5095_v14  ;;  %4679 = vmatpush3.bf16.msra.mxu0 %v5100_v57  ;;  %v3002_v58 = vld [vmem:[#allocation2 + $0x39] sm:$0xff] }
 0x1dc   : > { %4712 = vmatprep.subr.bf16.mxu0 %v5102_v50 }
 0x1dd   : > { %4649 = vmatmul.mubr.bf16.gmra.mrb[16].mxu0 %v6107_v23 }
 0x1de   : > { %4652 = vmatprep.mubr.bf16.mxu0 %v6112_v33  ;;  %4475 = vmatpush3.bf16.msra.mxu1 %v5095_v14  ;;  %v3020_v14 = vld [vmem:[#allocation2 + $0x111] sm:$0xff] }
 0x1df   : > { %4476 = vmatprep.subr.bf16.mxu1 %v5097_v16 }
 0x1e1   : > { %4445 = vmatmul.mubr.bf16.gmra.mrb[4].mxu1 %v5961_v48  ;;  %v2723_v48 = vld [vmem:[#allocation2 + $0x180] sm:$0xff] }
 0x1e2   : > { %4448 = vmatprep.mubr.bf16.mxu1 %v5973_v62  ;;  %4477 = vmatpush3.bf16.msra.mxu1 %v5097_v16  ;;  %v2724_v62 = vld [vmem:[#allocation2 + $0x188] sm:$0xff] }
 0x1e3   : > { %4478 = vmatprep.subr.bf16.mxu1 %v5099_v17  ;;  %v6178_v20 = vpack.c.bf16 %v2724_v62, %v2723_v48  ;;  %v3024_v16 = vld [vmem:[#allocation2 + $0x141] sm:$0xff]  ;;  %v3030_v62 = vld [vmem:[#allocation2 + $0x189] sm:$0xff] }
 0x1e5   : > { %4653 = vmatmul.mubr.bf16.gmra.mrb[20].mxu0 %v6121_v37 }
 0x1e6   : > { %4656 = vmatprep.mubr.bf16.mxu0 %v6126_v5  ;;  %4479 = vmatpush3.bf16.msra.mxu1 %v5099_v17  ;;  %v3025_v17 = vld [vmem:[#allocation2 + $0x151] sm:$0xff] }
 0x1e7   : > { %4480 = vmatprep.subr.bf16.mxu1 %v5101_v10 }
 0x1e9   : > { %4449 = vmatmul.mubr.bf16.gmra.mrb[8].mxu1 %v5978_v12  ;;  %v5107_v12 = vld [vmem:[%s6426_s4 + $0xf8] sm:$0xff]  }
 0x1ea   : > { %4452 = vmatprep.mubr.bf16.mxu1 %v5991_v32  ;;  %4481 = vmatpush3.bf16.msra.mxu1 %v5101_v10  ;;  %v3001_v32 = vld [vmem:[#allocation2 + $0x31] sm:$0xff]  ;;  %v3026_v10 = vld [vmem:[#allocation2 + $0x159] sm:$0xff] }
 0x1eb   : > { %4482 = vmatprep.subr.bf16.mxu1 %v5103_v11  ;;  %v3033_v6 = vpack.c.bf16 %v3002_v58, %v3001_v32  ;;  %v6249_v48 = vpack.c.bf16 %v3026_v10, %v3025_v17  ;;  %v3031_v32 = vld [vmem:[#allocation2 + $0x199] sm:$0xff]  ;;  %v3032_v58 = vld [vmem:[#allocation2 + $0x1a1] sm:$0xff] }
 0x1ed   : > { %4657 = vmatmul.mubr.bf16.gmra.mrb[24].mxu0 %v6135_v44 }
 0x1ee   : > { %4660 = vmatprep.mubr.bf16.mxu0 %v6178_v20  ;;  %4483 = vmatpush3.bf16.msra.mxu1 %v5103_v11 }
 0x1ef   : > { %4484 = vmatprep.subr.bf16.mxu1 %v5105_v2 }
 0x1f1   : > { %4453 = vmatmul.mubr.bf16.gmra.mrb[12].mxu1 %v5996_v24  ;;  %v3004_v24 = vld [vmem:[#allocation2 + $0x51] sm:$0xff] }
 0x1f2   : > { %4456 = vmatprep.mubr.bf16.mxu1 %v6009_v0  ;;  %4485 = vmatpush3.bf16.msra.mxu1 %v5105_v2  ;;  %v3006_v0 = vld [vmem:[#allocation2 + $0x69] sm:$0xff]  ;;  %v3034_v30 = vpack.c.bf16 %v3004_v24, %v3003_v56 }
 0x1f3   : > { %4486 = vmatprep.subr.bf16.mxu1 %v5107_v12  ;;  %v3035_v41 = vpack.c.bf16 %v3006_v0, %v3005_v31  ;;  %v5249_v2 = vld [vmem:[%s6426_s4 + $0x128] sm:$0xff]   ;;  %v3310_v31 = vld [vmem:[#allocation2 + $0x52] sm:$0xff] }
 0x1f4   : > { %v3309_v24 = vld [vmem:[#allocation2 + $0x4a] sm:$0xff] }
 0x1f5   : > { %4661 = vmatmul.mubr.bf16.gmra.mrb[28].mxu0 %v6000_v38  ;;  %v5104_v38 = vld [vmem:[%s6426_s4 + $0x208] sm:$0xff]  }
 0x1f6   : > { %4680 = vmatprep.mubr.bf16.mxu0 %v3033_v6  ;;  %4487 = vmatpush3.bf16.msra.mxu1 %v5107_v12  ;;  %v3307_v6 = vld [vmem:[#allocation2 + $0x32] sm:$0xff]  ;;  %v3312_v0 = vld [vmem:[#allocation2 + $0x6a] sm:$0xff] }
 0x1f7   : > { %4760 = vmatprep.subr.bf16.mxu1 %v6191_v13 }
 0x1f9   : > { %4457 = vmatmul.mubr.bf16.gmra.mrb[16].mxu1 %v6014_v21  ;;  %v3008_v21 = vld [vmem:[#allocation2 + $0x81] sm:$0xff] }
 0x1fa   : > { %4460 = vmatprep.mubr.bf16.mxu1 %v6033_v63  ;;  %v3010_v63 = vld [vmem:[#allocation2 + $0x99] sm:$0xff]  ;;  %v3036_v42 = vpack.c.bf16 %v3008_v21, %v3007_v47 }
 0x1fb   : > { %v3037_v53 = vpack.c.bf16 %v3010_v63, %v3009_v22  ;;  %v3316_v47 = vld [vmem:[#allocation2 + $0x9a] sm:$0xff]  ;;  %v3318_v63 = vld [vmem:[#allocation2 + $0xb2] sm:$0xff] }
 0x1fd   : > { %4681 = vmatmul.mubr.bf16.vlgmr.msra.gmra.mrb[0].mxu0 %v3034_v30  ;;  %v3340_v30 = vpack.c.bf16 %v3310_v31, %v3309_v24 }
 0x1fe   : > { %4713 = vmatpush3.bf16.msra.mxu0 %v5102_v50  ;;  %4684 = vmatprep.mubr.bf16.mxu0 %v3035_v41  ;;  %v5245_v50 = vld [vmem:[%s6426_s4 + $0x108] sm:$0xff]  }
 0x1ff   : > { %4714 = vmatprep.subr.bf16.mxu0 %v5104_v38  ;;  %v3314_v41 = vld [vmem:[#allocation2 + $0x82] sm:$0xff] }
 0x201   : > { %4461 = vmatmul.mubr.bf16.gmra.mrb[20].mxu1 %v6038_v39  ;;  %v5109_v39 = vld [vmem:[%s6426_s4 + $0x220] sm:$0xff]  }
 0x202   : > { %4464 = vmatprep.mubr.bf16.mxu1 %v6052_v46  ;;  %4715 = vmatpush3.bf16.msra.mxu0 %v5104_v38  ;;  %v3013_v46 = vld [vmem:[#allocation2 + $0xc1] sm:$0xff] }
 0x203   : > { %4716 = vmatprep.subr.bf16.mxu0 %v5106_v25  ;;  %v3039_v18 = vpack.c.bf16 %v3014_v29, %v3013_v46  ;;  %v3313_v38 = vld [vmem:[#allocation2 + $0x7a] sm:$0xff]  ;;  %v3326_v29 = vld [vmem:[#allocation2 + $0x112] sm:$0xff] }
 0x204   : > { %v3342_v21 = vpack.c.bf16 %v3314_v41, %v3313_v38  ;;  %v3654_v41 = vld [vmem:[%s6304_s13 + $0x10] sm:$0xff] }
 0x205   : > { %4685 = vmatmul.mubr.bf16.gmra.mrb[4].mxu0 %v3036_v42  ;;  %v3320_v42 = vld [vmem:[#allocation2 + $0xca] sm:$0xff] }
 0x206   : > { %4688 = vmatprep.mubr.bf16.mxu0 %v3037_v53  ;;  %4717 = vmatpush3.bf16.msra.mxu0 %v5106_v25  ;;  %v3315_v25 = vld [vmem:[#allocation2 + $0x92] sm:$0xff] }
 0x207   : > { %4718 = vmatprep.subr.bf16.mxu0 %v5108_v26  ;;  %v3343_v22 = vpack.c.bf16 %v3316_v47, %v3315_v25 }
 0x209   : > { %4465 = vmatmul.mubr.bf16.gmra.mrb[24].mxu1 %v6057_v35  ;;  %v5111_v35 = vld [vmem:[%s6426_s4 + $0x230] sm:$0xff]  }
 0x20a   : > { %4468 = vmatprep.mubr.bf16.mxu1 %v6070_v28  ;;  %4719 = vmatpush3.bf16.msra.mxu0 %v5108_v26  ;;  %v3017_v28 = vld [vmem:[#allocation2 + $0xf1] sm:$0xff] }
 0x20b   : > { %4720 = vmatprep.subr.bf16.mxu0 %v5109_v39  ;;  %v6225_v57 = vpack.c.bf16 %v3018_v59, %v3017_v28  ;;  %v3330_v28 = vld [vmem:[#allocation2 + $0x142] sm:$0xff]  ;;  %v3331_v59 = vld [vmem:[#allocation2 + $0x152] sm:$0xff] }
 0x20d   : > { %4689 = vmatmul.mubr.bf16.gmra.mrb[8].mxu0 %v3038_v61  ;;  %v3328_v61 = vld [vmem:[#allocation2 + $0x12a] sm:$0xff] }
 0x20e   : > { %4692 = vmatprep.mubr.bf16.mxu0 %v3039_v18  ;;  %4721 = vmatpush3.bf16.msra.mxu0 %v5109_v39  ;;  %v3322_v39 = vld [vmem:[#allocation2 + $0xe2] sm:$0xff] }
 0x20f   : > { %4722 = vmatprep.subr.bf16.mxu0 %v5110_v45 }
 0x211   : > { %4469 = vmatmul.mubr.bf16.gmra.mrb[28].mxu1 %v6075_v36  ;;  %v3019_v36 = vld [vmem:[#allocation2 + $0x109] sm:$0xff] }
 0x212   : > { %4488 = vmatprep.mubr.bf16.mxu1 %v6018_v19  ;;  %4723 = vmatpush3.bf16.msra.mxu0 %v5110_v45  ;;  %v6232_v19 = vpack.c.bf16 %v3020_v14, %v3019_v36  ;;  %v2110_v36 = vld [vmem:[#allocation2 + $0x169] sm:$0xff]  ;;  %v2111_v14 = vld [vmem:[#allocation2 + $0x171] sm:$0xff] }
 0x213   : > { %4724 = vmatprep.subr.bf16.mxu0 %v5111_v35 }
 0x215   : > { %4693 = vmatmul.mubr.bf16.gmra.mrb[12].mxu0 %v6220_v15 }
 0x216   : > { %4696 = vmatprep.mubr.bf16.mxu0 %v6225_v57  ;;  %4725 = vmatpush3.bf16.msra.mxu0 %v5111_v35  ;;  %v2104_v35 = vld [vmem:[#allocation2 + $0x121] sm:$0xff] }
 0x217   : > { %4726 = vmatprep.subr.bf16.mxu0 %v5112_v7 }
 0x219   : > { %4489 = vmatmul.mubr.bf16.vlgmr.msra.gmra.mrb[0].mxu1 %v6023_v8  ;;  %v5246_v8 = vld [vmem:[%s6426_s4 + $0x110] sm:$0xff]  }
 0x21a   : > { %4492 = vmatprep.mubr.bf16.mxu1 %v6043_v9  ;;  %4768 = vmatpush3.bf16.msra.mxu1 %v6191_v13  ;;  %v3023_v9 = vld [vmem:[#allocation2 + $0x139] sm:$0xff] }
 0x21b   : > { %4761 = vmatprep.subr.bf16.mxu1 %v5245_v50  ;;  %4727 = vmatpush3.bf16.msra.mxu0 %v5112_v7  ;;  %v6244_v11 = vpack.c.bf16 %v3024_v16, %v3023_v9  ;;  %v3308_v13 = vld [vmem:[#allocation2 + $0x3a] sm:$0xff]  ;;  %v3350_v7 = vpack.c.bf16 %v3330_v28, %v3329_v55  ;;  %v3335_v9 = vld [vmem:[#allocation2 + $0x182] sm:$0xff]  ;;  %v3336_v16 = vld [vmem:[#allocation2 + $0x18a] sm:$0xff] }
 0x21c   : > { %v3339_v56 = vpack.c.bf16 %v3308_v13, %v3307_v6  ;;  %v3353_v10 = vpack.c.bf16 %v3336_v16, %v3335_v9 }
 0x21d   : > { %4697 = vmatmul.mubr.bf16.gmra.mrb[16].mxu0 %v6232_v19 }
 0x21e   : > { %4700 = vmatprep.mubr.bf16.mxu0 %v5970_v40  ;;  %4769 = vmatpush3.bf16.msra.mxu1 %v5245_v50  ;;  %v5247_v40 = vld [vmem:[%s6426_s4 + $0x118] sm:$0xff]   ;;  %v3333_v50 = vld [vmem:[#allocation2 + $0x16a] sm:$0xff] }
 0x21f   : > { %4762 = vmatprep.subr.bf16.mxu1 %v5246_v8 }
 0x221   : > { %4493 = vmatmul.mubr.bf16.gmra.mrb[4].mxu1 %v6048_v52  ;;  %v5248_v52 = vld [vmem:[%s6426_s4 + $0x120] sm:$0xff]  }
 0x222   : > { %4496 = vmatprep.mubr.bf16.mxu1 %v6061_v54  ;;  %4770 = vmatpush3.bf16.msra.mxu1 %v5246_v8  ;;  %v3029_v54 = vld [vmem:[#allocation2 + $0x181] sm:$0xff]  ;;  %v3334_v8 = vld [vmem:[#allocation2 + $0x172] sm:$0xff] }
 0x223   : > { %4763 = vmatprep.subr.bf16.mxu1 %v5247_v40  ;;  %v6261_v12 = vpack.c.bf16 %v3030_v62, %v3029_v54  ;;  %v3352_v17 = vpack.c.bf16 %v3334_v8, %v3333_v50 }
 0x225   : > { %4701 = vmatmul.mubr.bf16.gmra.mrb[20].mxu0 %v6244_v11 }
 0x226   : > { %4704 = vmatprep.mubr.bf16.mxu0 %v6249_v48  ;;  %4771 = vmatpush3.bf16.msra.mxu1 %v5247_v40  ;;  %v3337_v40 = vld [vmem:[#allocation2 + $0x19a] sm:$0xff] }
 0x227   : > { %4764 = vmatprep.subr.bf16.mxu1 %v5248_v52 }
 0x229   : > { %4497 = vmatmul.mubr.bf16.gmra.mrb[8].mxu1 %v6066_v49  ;;  %v5250_v49 = vld [vmem:[%s6426_s4 + $0x130] sm:$0xff]  }
 0x22a   : > { %4500 = vmatprep.mubr.bf16.mxu1 %v6079_v4  ;;  %4772 = vmatpush3.bf16.msra.mxu1 %v5248_v52  ;;  %v3048_v4 = vpack.c.bf16 %v3032_v58, %v3031_v32 }
 0x22b   : > { %4765 = vmatprep.subr.bf16.mxu1 %v5249_v2 }
 0x22d   : > { %4705 = vmatmul.mubr.bf16.gmra.mrb[24].mxu0 %v6002_v43  ;;  %v5251_v43 = vld [vmem:[%s6426_s4 + $0x138] sm:$0xff]  }
 0x22e   : > { %4708 = vmatprep.mubr.bf16.mxu0 %v6261_v12  ;;  %4773 = vmatpush3.bf16.msra.mxu1 %v5249_v2 }
 0x22f   : > { %4766 = vmatprep.subr.bf16.mxu1 %v5250_v49 }
 0x231   : > { %4501 = vmatmul.mubr.bf16.gmra.mrb[12].mxu1 %v6084_v60  ;;  %v3311_v60 = vld [vmem:[#allocation2 + $0x62] sm:$0xff] }
 0x232   : > { %4504 = vmatprep.mubr.bf16.mxu1 %v6094_v27  ;;  %4774 = vmatpush3.bf16.msra.mxu1 %v5250_v49  ;;  %v3341_v27 = vpack.c.bf16 %v3312_v0, %v3311_v60 }
 0x233   : > { %4767 = vmatprep.subr.bf16.mxu1 %v5251_v43 }
 0x235   : > { %4709 = vmatmul.mubr.bf16.gmra.mrb[28].mxu0 %v3048_v4 }
 0x236   : > { %4728 = vmatprep.mubr.bf16.mxu0 %v3339_v56  ;;  %4775 = vmatpush3.bf16.msra.mxu1 %v5251_v43 }
 0x239   : > { %4505 = vmatmul.mubr.bf16.gmra.mrb[16].mxu1 %v6097_v51  ;;  %v3317_v51 = vld [vmem:[#allocation2 + $0xaa] sm:$0xff] }
 0x23a   : > { %4508 = vmatprep.mubr.bf16.mxu1 %v6107_v23  ;;  %v3319_v23 = vld [vmem:[#allocation2 + $0xc2] sm:$0xff]  ;;  %v3344_v26 = vpack.c.bf16 %v3318_v63, %v3317_v51 }
 0x23b   : > { %v3345_v53 = vpack.c.bf16 %v3320_v42, %v3319_v23  ;;  %v3655_v42 = vld [vmem:[%s6304_s13 + $0x18] sm:$0xff] }
 0x23d   : > { %4729 = vmatmul.mubr.bf16.vlgmr.msra.gmra.mrb[0].mxu0 %v3340_v30  ;;  %v6309_v30 = vld [vmem:[%s6427_s5] ss:$0 sm:$0xff] }
 0x23e   : > { %4732 = vmatprep.mubr.bf16.mxu0 %v3341_v27 }
 0x241   : > { %4509 = vmatmul.mubr.bf16.gmra.mrb[20].mxu1 %v6112_v33  ;;  %v3321_v33 = vld [vmem:[#allocation2 + $0xda] sm:$0xff] }
 0x242   : > { %4512 = vmatprep.mubr.bf16.mxu1 %v6121_v37  ;;  %v3323_v37 = vld [vmem:[#allocation2 + $0xf2] sm:$0xff]  ;;  %v3346_v3 = vpack.c.bf16 %v3322_v39, %v3321_v33  ;;  %v3653_v39 = vld [vmem:[%s6304_s13 + $0x8] sm:$0xff] }
 0x243   : > { %v3347_v46 = vpack.c.bf16 %v3324_v34, %v3323_v37 }
 0x245   : > { %4733 = vmatmul.mubr.bf16.gmra.mrb[4].mxu0 %v3342_v21 }
 0x246   : > { %4736 = vmatprep.mubr.bf16.mxu0 %v3343_v22  ;;  %v3652_v22 = vld [vmem:[%s6304_s13] sm:$0xff] }
 0x249   : > { %4513 = vmatmul.mubr.bf16.gmra.mrb[24].mxu1 %v6126_v5  ;;  %v3325_v5 = vld [vmem:[#allocation2 + $0x10a] sm:$0xff] }
 0x24a   : > { %4516 = vmatprep.mubr.bf16.mxu1 %v6135_v44  ;;  %v3327_v44 = vld [vmem:[#allocation2 + $0x122] sm:$0xff]  ;;  %v3348_v45 = vpack.c.bf16 %v3326_v29, %v3325_v5 }
 0x24b   : > { %v3349_v18 = vpack.c.bf16 %v3328_v61, %v3327_v44  ;;  %v3658_v61 = vld [vmem:[%s6304_s13 + $0x30] sm:$0xff] }
 0x24d   : > { %4737 = vmatmul.mubr.bf16.gmra.mrb[8].mxu0 %v3344_v26 }
 0x24e   : > { %4740 = vmatprep.mubr.bf16.mxu0 %v3345_v53 }
 0x251   : > { %4517 = vmatmul.mubr.bf16.gmra.mrb[28].mxu1 %v6178_v20  ;;  %v2105_v20 = vld [vmem:[#allocation2 + $0x129] sm:$0xff] }
 0x252   : > { %4552 = vmatprep.mubr.bf16.mxu1 %v6220_v15  ;;  %v2125_v1 = vpack.c.bf16 %v2105_v20, %v2104_v35  ;;  %v3332_v15 = vld [vmem:[#allocation2 + $0x15a] sm:$0xff] }
 0x253   : > { %v3656_v20 = vld [vmem:[%s6304_s13 + $0x20] sm:$0xff] }
 0x255   : > { %4741 = vmatmul.mubr.bf16.gmra.mrb[12].mxu0 %v3346_v3 }
 0x256   : > { %4744 = vmatprep.mubr.bf16.mxu0 %v3347_v46 }
 0x259   : > { %4553 = vmatmul.mubr.bf16.vlgmr.msra.gmra.mrb[16].mxu1 %v6225_v57  ;;  %v3351_v57 = vpack.c.bf16 %v3332_v15, %v3331_v59  ;;  %v3659_v59 = vld [vmem:[%s6304_s13 + $0x38] sm:$0xff] }
 0x25a   : > { %4556 = vmatprep.mubr.bf16.mxu1 %v6232_v19  ;;  %v2128_v19 = vpack.c.bf16 %v2111_v14, %v2110_v36  ;;  %v3657_v36 = vld [vmem:[%s6304_s13 + $0x28] sm:$0xff] }
 0x25d   : > { %4745 = vmatmul.mubr.bf16.gmra.mrb[16].mxu0 %v3348_v45 }
 0x25e   : > { %4748 = vmatprep.mubr.bf16.mxu0 %v3349_v18 }
 0x261   : > { %4557 = vmatmul.mubr.bf16.gmra.mrb[20].mxu1 %v2125_v1 }
 0x262   : > { %4560 = vmatprep.mubr.bf16.mxu1 %v6244_v11  ;;  %v3338_v11 = vld [vmem:[#allocation2 + $0x1a2] sm:$0xff] }
 0x263   : > { %v3354_v52 = vpack.c.bf16 %v3338_v11, %v3337_v40 }
 0x265   : > { %4749 = vmatmul.mubr.bf16.gmra.mrb[20].mxu0 %v3350_v7 }
 0x266   : > { %4752 = vmatprep.mubr.bf16.mxu0 %v3351_v57 }
 0x269   : > { %4561 = vmatmul.mubr.bf16.gmra.mrb[24].mxu1 %v6249_v48 }
 0x26a   : > { %4564 = vmatprep.mubr.bf16.mxu1 %v2128_v19 }
 0x26d   : > { %4753 = vmatmul.mubr.bf16.gmra.mrb[24].mxu0 %v3352_v17 }
 0x26e   : > { %4756 = vmatprep.mubr.bf16.mxu0 %v3353_v10  ;;  %v3662_v10 = vld [vmem:[%s6304_s13 + $0x50] sm:$0xff] }
 0x271   : > { %4565 = vmatmul.mubr.bf16.gmra.mrb[28].mxu1 %v6261_v12 }
 0x275   : > { %4757 = vmatmul.mubr.bf16.gmra.mrb[28].mxu0 %v3354_v52 }
 0x2ec   : > { %v4490_v54 = vpop.f32.mrb[0].mxu1 }
 0x2ed   : > { %v1923_v62 = vpop.f32.mrb[1].mxu1 }
 0x2ee   : > { %v4491_v2 = vpop.f32.mrb[2].mxu1 }
 0x2ef   : > { %v1926_v32 = vpop.f32.mrb[3].mxu1 }
 0x2f4   : > { %v4494_v58 = vpop.f32.mrb[4].mxu1 }
 0x2f5   : > { %v1939_v48 = vpop.f32.mrb[5].mxu1 }
 0x2f6   : > { %v4495_v49 = vpop.f32.mrb[6].mxu1 }
 0x2f7   : > { %v1942_v4 = vpop.f32.mrb[7].mxu1 }
 0x2fc   : > { %v4498_v6 = vpop.f32.mrb[8].mxu1 }
 0x2fd   : > { %v6286_v13 = vpop.f32.mrb[9].mxu1 }
 0x2fe   : > { %v6288_v43 = vpop.f32.mrb[10].mxu1 }
 0x2ff   : > { %v6290_v56 = vpop.f32.mrb[11].mxu1 }
 0x304   : > { %v6292_v24 = vpop.f32.mrb[12].mxu1 }
 0x305   : > { %v6294_v12 = vpop.f32.mrb[13].mxu1 }
 0x306   : > { %v6296_v31 = vpop.f32.mrb[14].mxu1 }
 0x307   : > { %v6298_v60 = vpop.f32.mrb[15].mxu1 }
 0x310   : > { %v4730_v0 = vpop.f32.mrb[0].mxu0 }
 0x311   : > { %v4776_v27 = vadd.f32 %v4730_v0, %v4490_v54  ;;  %v3454_v38 = vpop.f32.mrb[1].mxu0  ;;  %v3660_v54 = vld [vmem:[%s6304_s13 + $0x40] sm:$0xff] }
 0x312   : > { %v4777_v25 = vadd.f32 %v3454_v38, %v1923_v62  ;;  %v4731_v47 = vpop.f32.mrb[2].mxu0 }
 0x313   : > { %v3622_v21 = vadd.f32 %v4776_v27, %v6309_v30  ;;  %v4778_v51 = vadd.f32 %v4731_v47, %v4491_v2  ;;  %v3457_v63 = vpop.f32.mrb[3].mxu0 }
 0x314   : > { %v3620_v23 = vadd.f32 %v4777_v25, %v6309_v30  ;;  %v4779_v26 = vadd.f32 %v3457_v63, %v1926_v32 }
 0x315   : > { %v3686_v53 = vadd.f32 %v3654_v41, %v3622_v21  ;;  %v3623_v33 = vadd.f32 %v4778_v51, %v6309_v30  ;;  %v3664_v51 = vld [vmem:[%s6304_s13 + $0x60] sm:$0xff] }
 0x316   : > { %v3684_v37 = vadd.f32 %v3652_v22, %v3620_v23  ;;  %v3621_v34 = vadd.f32 %v4779_v26, %v6309_v30  ;;  %v3667_v26 = vld [vmem:[%s6304_s13 + $0x78] sm:$0xff] }
 0x317   : > { %3718 = vst [vmem:[%s6317_s17 + $0x10] sm:$0xff] %v3686_v53  ;;  %v3687_v3 = vadd.f32 %v3655_v42, %v3623_v33 }
 0x318   : > { %3716 = vst [vmem:[%s6317_s17] sm:$0xff] %v3684_v37  ;;  %v3685_v46 = vadd.f32 %v3653_v39, %v3621_v34  ;;  %v4734_v5 = vpop.f32.mrb[4].mxu0  ;;  %v3665_v39 = vld [vmem:[%s6304_s13 + $0x68] sm:$0xff] }
 0x319   : > { %3719 = vst [vmem:[%s6317_s17 + $0x18] sm:$0xff] %v3687_v3  ;;  %v4780_v29 = vadd.f32 %v4734_v5, %v4494_v58  ;;  %v3470_v44 = vpop.f32.mrb[5].mxu0  ;;  %v3663_v58 = vld [vmem:[%s6304_s13 + $0x58] sm:$0xff] }
 0x31a   : > { %3717 = vst [vmem:[%s6317_s17 + $0x8] sm:$0xff] %v3685_v46  ;;  %v4781_v45 = vadd.f32 %v3470_v44, %v1939_v48  ;;  %v4735_v18 = vpop.f32.mrb[6].mxu0 }
 0x31b   : > { %v3626_v35 = vadd.f32 %v4780_v29, %v6309_v30  ;;  %v4782_v1 = vadd.f32 %v4735_v18, %v4495_v49  ;;  %v3473_v55 = vpop.f32.mrb[7].mxu0 }
 0x31c   : > { %v3624_v28 = vadd.f32 %v4781_v45, %v6309_v30  ;;  %v4783_v15 = vadd.f32 %v3473_v55, %v1942_v4  ;;  %v3670_v45 = vld [vmem:[%s6304_s13 + $0x90] sm:$0xff] }
 0x31d   : > { %v3690_v7 = vadd.f32 %v3658_v61, %v3626_v35  ;;  %v3627_v57 = vadd.f32 %v4782_v1, %v6309_v30  ;;  %v3668_v1 = vld [vmem:[%s6304_s13 + $0x80] sm:$0xff] }
 0x31e   : > { %v3688_v14 = vadd.f32 %v3656_v20, %v3624_v28  ;;  %v3625_v19 = vadd.f32 %v4783_v15, %v6309_v30  ;;  %v3671_v15 = vld [vmem:[%s6304_s13 + $0x98] sm:$0xff] }
 0x31f   : > { %3722 = vst [vmem:[%s6317_s17 + $0x30] sm:$0xff] %v3690_v7  ;;  %v3691_v50 = vadd.f32 %v3659_v59, %v3627_v57 }
 0x320   : > { %3720 = vst [vmem:[%s6317_s17 + $0x20] sm:$0xff] %v3688_v14  ;;  %v3689_v8 = vadd.f32 %v3657_v36, %v3625_v19  ;;  %v4738_v9 = vpop.f32.mrb[8].mxu0  ;;  %v3669_v19 = vld [vmem:[%s6304_s13 + $0x88] sm:$0xff] }
 0x321   : > { %3723 = vst [vmem:[%s6317_s17 + $0x38] sm:$0xff] %v3691_v50  ;;  %v4784_v16 = vadd.f32 %v4738_v9, %v4498_v6  ;;  %v3486_v17 = vpop.f32.mrb[9].mxu0  ;;  %v3661_v6 = vld [vmem:[%s6304_s13 + $0x48] sm:$0xff] }
 0x322   : > { %3721 = vst [vmem:[%s6317_s17 + $0x28] sm:$0xff] %v3689_v8  ;;  %v4785_v40 = vadd.f32 %v3486_v17, %v6286_v13  ;;  %v4739_v11 = vpop.f32.mrb[10].mxu0 }
 0x323   : > { %v3630_v52 = vadd.f32 %v4784_v16, %v6309_v30  ;;  %v4786_v62 = vadd.f32 %v4739_v11, %v6288_v43  ;;  %v3489_v2 = vpop.f32.mrb[11].mxu0 }
 0x324   : > { %v3628_v32 = vadd.f32 %v4785_v40, %v6309_v30  ;;  %v4787_v48 = vadd.f32 %v3489_v2, %v6290_v56  ;;  %v3666_v56 = vld [vmem:[%s6304_s13 + $0x70] sm:$0xff] }
 0x325   : > { %v3694_v49 = vadd.f32 %v3662_v10, %v3630_v52  ;;  %v3631_v4 = vadd.f32 %v4786_v62, %v6309_v30  ;;  %v3674_v62 = vld [vmem:[%s6304_s13 + $0xb0] sm:$0xff] }
 0x326   : > { %v3692_v13 = vadd.f32 %v3660_v54, %v3628_v32  ;;  %v3629_v0 = vadd.f32 %v4787_v48, %v6309_v30  ;;  %v3672_v48 = vld [vmem:[%s6304_s13 + $0xa0] sm:$0xff] }
 0x327   : > { %3726 = vst [vmem:[%s6317_s17 + $0x50] sm:$0xff] %v3694_v49  ;;  %v3695_v27 = vadd.f32 %v3663_v58, %v3631_v4 }
 0x328   : > { %3724 = vst [vmem:[%s6317_s17 + $0x40] sm:$0xff] %v3692_v13  ;;  %v3693_v43 = vadd.f32 %v3661_v6, %v3629_v0  ;;  %v4742_v38 = vpop.f32.mrb[12].mxu0  ;;  %v3675_v13 = vld [vmem:[%s6304_s13 + $0xb8] sm:$0xff] }
 0x329   : > { %3727 = vst [vmem:[%s6317_s17 + $0x58] sm:$0xff] %v3695_v27  ;;  %v4788_v41 = vadd.f32 %v4742_v38, %v6292_v24  ;;  %v3502_v25 = vpop.f32.mrb[13].mxu0 }
 0x32a   : > { %3725 = vst [vmem:[%s6317_s17 + $0x48] sm:$0xff] %v3693_v43  ;;  %v4789_v47 = vadd.f32 %v3502_v25, %v6294_v12  ;;  %v4743_v21 = vpop.f32.mrb[14].mxu0 }
 0x32b   : > { %v3634_v22 = vadd.f32 %v4788_v41, %v6309_v30  ;;  %v4790_v63 = vadd.f32 %v4743_v21, %v6296_v31  ;;  %v3505_v23 = vpop.f32.mrb[15].mxu0  ;;  %v3673_v41 = vld [vmem:[%s6304_s13 + $0xa8] sm:$0xff] }
 0x32c   : > { %v3632_v42 = vadd.f32 %v4789_v47, %v6309_v30  ;;  %v4791_v24 = vadd.f32 %v3505_v23, %v6298_v60  ;;  %v4554_v53 = vpop.f32.mrb[16].mxu1 }
 0x32d   : > { %v3698_v33 = vadd.f32 %v3666_v56, %v3634_v22  ;;  %v3635_v12 = vadd.f32 %v4790_v63, %v6309_v30  ;;  %v2293_v37 = vpop.f32.mrb[17].mxu1 }
 0x32e   : > { %v3696_v34 = vadd.f32 %v3664_v51, %v3632_v42  ;;  %v3633_v3 = vadd.f32 %v4791_v24, %v6309_v30  ;;  %v4555_v31 = vpop.f32.mrb[18].mxu1  ;;  %v3678_v24 = vld [vmem:[%s6304_s13 + $0xd0] sm:$0xff] }
 0x32f   : > { %3730 = vst [vmem:[%s6317_s17 + $0x70] sm:$0xff] %v3698_v33  ;;  %v3699_v46 = vadd.f32 %v3667_v26, %v3635_v12  ;;  %v2296_v5 = vpop.f32.mrb[19].mxu1 }
 0x330   : > { %3728 = vst [vmem:[%s6317_s17 + $0x60] sm:$0xff] %v3696_v34  ;;  %v3697_v29 = vadd.f32 %v3665_v39, %v3633_v3  ;;  %v4746_v60 = vpop.f32.mrb[16].mxu0  ;;  %v3676_v39 = vld [vmem:[%s6304_s13 + $0xc0] sm:$0xff] }
 0x331   : > { %3731 = vst [vmem:[%s6317_s17 + $0x78] sm:$0xff] %v3699_v46  ;;  %v4792_v44 = vadd.f32 %v4746_v60, %v4554_v53  ;;  %v3518_v61 = vpop.f32.mrb[17].mxu0 }
 0x332   : > { %3729 = vst [vmem:[%s6317_s17 + $0x68] sm:$0xff] %v3697_v29  ;;  %v4793_v18 = vadd.f32 %v3518_v61, %v2293_v37  ;;  %v4747_v35 = vpop.f32.mrb[18].mxu0 }
 0x333   : > { %v3638_v20 = vadd.f32 %v4792_v44, %v6309_v30  ;;  %v4794_v55 = vadd.f32 %v4747_v35, %v4555_v31  ;;  %v3521_v28 = vpop.f32.mrb[19].mxu0  ;;  %v3679_v31 = vld [vmem:[%s6304_s13 + $0xd8] sm:$0xff]  ;;  %v3677_v44 = vld [vmem:[%s6304_s13 + $0xc8] sm:$0xff] }
 0x334   : > { %v3636_v59 = vadd.f32 %v4793_v18, %v6309_v30  ;;  %v4795_v7 = vadd.f32 %v3521_v28, %v2296_v5  ;;  %v4558_v57 = vpop.f32.mrb[20].mxu1 }
 0x335   : > { %v3702_v36 = vadd.f32 %v3670_v45, %v3638_v20  ;;  %v3639_v14 = vadd.f32 %v4794_v55, %v6309_v30  ;;  %v2309_v50 = vpop.f32.mrb[21].mxu1 }
 0x336   : > { %v3700_v8 = vadd.f32 %v3668_v1, %v3636_v59  ;;  %v3637_v9 = vadd.f32 %v4795_v7, %v6309_v30  ;;  %v4559_v16 = vpop.f32.mrb[22].mxu1  ;;  %v3682_v7 = vld [vmem:[%s6304_s13 + $0xf0] sm:$0xff] }
 0x337   : > { %3734 = vst [vmem:[%s6317_s17 + $0x90] sm:$0xff] %v3702_v36  ;;  %v3703_v17 = vadd.f32 %v3671_v15, %v3639_v14  ;;  %v2312_v10 = vpop.f32.mrb[23].mxu1 }
 0x338   : > { %3732 = vst [vmem:[%s6317_s17 + $0x80] sm:$0xff] %v3700_v8  ;;  %v3701_v40 = vadd.f32 %v3669_v19, %v3637_v9  ;;  %v4750_v11 = vpop.f32.mrb[20].mxu0  ;;  %v3680_v19 = vld [vmem:[%s6304_s13 + $0xe0] sm:$0xff] }
 0x339   : > { %3735 = vst [vmem:[%s6317_s17 + $0x98] sm:$0xff] %v3703_v17  ;;  %v4796_v52 = vadd.f32 %v4750_v11, %v4558_v57  ;;  %v3534_v54 = vpop.f32.mrb[21].mxu0  ;;  %v3681_v11 = vld [vmem:[%s6304_s13 + $0xe8] sm:$0xff] }
 0x33a   : > { %3733 = vst [vmem:[%s6317_s17 + $0x88] sm:$0xff] %v3701_v40  ;;  %v4797_v2 = vadd.f32 %v3534_v54, %v2309_v50  ;;  %v4751_v32 = vpop.f32.mrb[22].mxu0 }
 0x33b   : > { %v3642_v58 = vadd.f32 %v4796_v52, %v6309_v30  ;;  %v4798_v49 = vadd.f32 %v4751_v32, %v4559_v16  ;;  %v3537_v4 = vpop.f32.mrb[23].mxu0  ;;  %v3683_v16 = vld [vmem:[%s6304_s13 + $0xf8] sm:$0xff] }
 0x33c   : > { %v3640_v6 = vadd.f32 %v4797_v2, %v6309_v30  ;;  %v4799_v0 = vadd.f32 %v3537_v4, %v2312_v10  ;;  %v4562_v27 = vpop.f32.mrb[24].mxu1 }
 0x33d   : > { %v3706_v43 = vadd.f32 %v3674_v62, %v3642_v58  ;;  %v3643_v38 = vadd.f32 %v4798_v49, %v6309_v30  ;;  %v2325_v25 = vpop.f32.mrb[25].mxu1 }
 0x33e   : > { %v3704_v56 = vadd.f32 %v3672_v48, %v3640_v6  ;;  %v3641_v47 = vadd.f32 %v4799_v0, %v6309_v30  ;;  %v4563_v21 = vpop.f32.mrb[26].mxu1 }
 0x33f   : > { %3738 = vst [vmem:[%s6317_s17 + $0xb0] sm:$0xff] %v3706_v43  ;;  %v3707_v22 = vadd.f32 %v3675_v13, %v3643_v38  ;;  %v2328_v51 = vpop.f32.mrb[27].mxu1 }
 0x340   : > { %3736 = vst [vmem:[%s6317_s17 + $0xa0] sm:$0xff] %v3704_v56  ;;  %v3705_v63 = vadd.f32 %v3673_v41, %v3641_v47  ;;  %v4754_v23 = vpop.f32.mrb[24].mxu0 }
 0x341   : > { %3739 = vst [vmem:[%s6317_s17 + $0xb8] sm:$0xff] %v3707_v22  ;;  %v4800_v42 = vadd.f32 %v4754_v23, %v4562_v27  ;;  %v3550_v26 = vpop.f32.mrb[25].mxu0 }
 0x342   : > { %3737 = vst [vmem:[%s6317_s17 + $0xa8] sm:$0xff] %v3705_v63  ;;  %v4801_v53 = vadd.f32 %v3550_v26, %v2325_v25  ;;  %v4755_v33 = vpop.f32.mrb[26].mxu0 }
 0x343   : > { %v3646_v12 = vadd.f32 %v4800_v42, %v6309_v30  ;;  %v4802_v37 = vadd.f32 %v4755_v33, %v4563_v21  ;;  %v3553_v34 = vpop.f32.mrb[27].mxu0 }
 0x344   : > { %v3644_v3 = vadd.f32 %v4801_v53, %v6309_v30  ;;  %v4803_v46 = vadd.f32 %v3553_v34, %v2328_v51  ;;  %v4566_v5 = vpop.f32.mrb[28].mxu1 }
 0x345   : > { %v3710_v29 = vadd.f32 %v3678_v24, %v3646_v12  ;;  %v3647_v60 = vadd.f32 %v4802_v37, %v6309_v30  ;;  %v2341_v61 = vpop.f32.mrb[29].mxu1 }
 0x346   : > { %v3708_v45 = vadd.f32 %v3676_v39, %v3644_v3  ;;  %v3645_v18 = vadd.f32 %v4803_v46, %v6309_v30  ;;  %v4567_v35 = vpop.f32.mrb[30].mxu1 }
 0x347   : > { %3742 = vst [vmem:[%s6317_s17 + $0xd0] sm:$0xff] %v3710_v29  ;;  %v3711_v20 = vadd.f32 %v3679_v31, %v3647_v60  ;;  %v2344_v1 = vpop.f32.mrb[31].mxu1 }
 0x348   : > { %3740 = vst [vmem:[%s6317_s17 + $0xc0] sm:$0xff] %v3708_v45  ;;  %v3709_v55 = vadd.f32 %v3677_v44, %v3645_v18  ;;  %v4758_v28 = vpop.f32.mrb[28].mxu0 }
 0x349   : > { %3743 = vst [vmem:[%s6317_s17 + $0xd8] sm:$0xff] %v3711_v20  ;;  %v4804_v59 = vadd.f32 %v4758_v28, %v4566_v5  ;;  %v3566_v15 = vpop.f32.mrb[29].mxu0 }
 0x34a   : > { %3741 = vst [vmem:[%s6317_s17 + $0xc8] sm:$0xff] %v3709_v55  ;;  %v4805_v57 = vadd.f32 %v3566_v15, %v2341_v61  ;;  %v4759_v36 = vpop.f32.mrb[30].mxu0 }
 0x34b   : > { %v3650_v14 = vadd.f32 %v4804_v59, %v6309_v30  ;;  %v4806_v50 = vadd.f32 %v4759_v36, %v4567_v35  ;;  %v3569_v8 = vpop.f32.mrb[31].mxu0 }
 0x34c   : > { %v3648_v9 = vadd.f32 %v4805_v57, %v6309_v30  ;;  %v4807_v17 = vadd.f32 %v3569_v8, %v2344_v1 }
 0x34d   : > { %v3714_v10 = vadd.f32 %v3682_v7, %v3650_v14  ;;  %v3651_v40 = vadd.f32 %v4806_v50, %v6309_v30 }
 0x34e   : > { %v3712_v52 = vadd.f32 %v3680_v19, %v3648_v9  ;;  %v3649_v54 = vadd.f32 %v4807_v17, %v6309_v30 }
 0x34f   : > { %3746 = vst [vmem:[%s6317_s17 + $0xf0] sm:$0xff] %v3714_v10  ;;  %v3715_v62 = vadd.f32 %v3683_v16, %v3651_v40 }
 0x350   : > { %3744 = vst [vmem:[%s6317_s17 + $0xe0] sm:$0xff] %v3712_v52  ;;  %v3713_v2 = vadd.f32 %v3681_v11, %v3649_v54 }
 0x351   : > { %3747 = vst [vmem:[%s6317_s17 + $0xf8] sm:$0xff] %v3715_v62 }
 0x352   : > { %3745 = vst [vmem:[%s6317_s17 + $0xe8] sm:$0xff] %v3713_v2 }
 0x353 PF: > { %s17_s24 = sadd.s32 1, %s5258_s24  }
 0x354   : > { %p14_p4 = scmp.ge.s32.totalorder %s17_s24, 4  }
 0x356   :  { %16 = sbr.rel (!%p14_p4) target bundleno = 1 (0x1), region = 91 }

</bundles_post_ra>
